<compile_context>
chip_gen: v7x
topology: tpu7x:2x2x1
jax: 0.10.0
libtpu: 0.0.40
codegen_flags: <defaults>
</compile_context>

<pallas_src>
import jax
import jax.numpy as jnp
import numpy as np
from jax.experimental import pallas as pl
from jax.experimental.pallas import tpu as pltpu

EPS = 1e-5


def _conv3x3_instnorm(x_b, w_ref, b_ref, H, W, C):
    """ReflectionPad(1) + 3x3 conv + bias + InstanceNorm for one image.

    x_b:   (H, W, C) bf16, unpadded
    w_ref: (3, 3*C, C) bf16 VMEM ref, layout [ki, kj*C + cin, cout]
    b_ref: (1, C) f32 VMEM ref
    returns (H*W, C) float32, instance-normalized (biased var, eps=1e-5).
    """
    # Row reflection (rows of ReflectionPad2d(1)): [x[1], x[0..H-1], x[H-2]].
    xr = jnp.concatenate([x_b[1:2], x_b, x_b[H - 2:H - 1]], axis=0)        # (H+2, W, C)
    # Fold the 3 column taps into the lane dim:
    #   xcat[r, j, kj*C:(kj+1)*C] == reflect_pad(x)[r, j + kj, :]
    # Built once (~3 shifted slab copies) instead of 9 strided per-tap slices.
    left = jnp.concatenate([xr[:, 1:2, :], xr[:, :W - 1, :]], axis=1)      # kj = 0
    right = jnp.concatenate([xr[:, 1:, :], xr[:, W - 2:W - 1, :]], axis=1)  # kj = 2
    xcat = jnp.concatenate([left, xr, right], axis=-1)                     # (H+2, W, 3C)

    # Bias folded into the accumulator init; 3 bf16 matmuls with K=3C, f32 acc.
    acc = jnp.broadcast_to(b_ref[...].astype(jnp.float32), (H * W, C))
    for ki in range(3):                                    # static unroll (MXU)
        lhs = xcat[ki:ki + H].reshape(H * W, 3 * C)
        acc = acc + jnp.dot(lhs, w_ref[ki], preferred_element_type=jnp.float32)

    # Single-pass InstanceNorm stats (sum / sum-of-squares), all f32.
    inv_n = 1.0 / float(H * W)
    s1 = jnp.sum(acc, axis=0, keepdims=True)
    s2 = jnp.sum(acc * acc, axis=0, keepdims=True)
    mean = s1 * inv_n
    var = jnp.maximum(s2 * inv_n - mean * mean, 0.0)       # guard cancellation
    return (acc - mean) * jax.lax.rsqrt(var + EPS)


def _resblock_kernel(x_ref, w1_ref, b1_ref, w2_ref, b2_ref, o_ref):
    # x_ref/o_ref: (1, H, W, C); w*: (3, 3*C, C) bf16; b*: (1, C) f32.
    _, H, W, C = o_ref.shape
    x = x_ref[0]                       # keep input dtype; no full f32 slab copy

    h = _conv3x3_instnorm(x.astype(jnp.bfloat16), w1_ref, b1_ref, H, W, C)
    h = jnp.maximum(h, 0.0)            # ReLU in f32

    y = _conv3x3_instnorm(h.reshape(H, W, C).astype(jnp.bfloat16),
                          w2_ref, b2_ref, H, W, C)

    o_ref[0] = (x.astype(jnp.float32) + y.reshape(H, W, C)).astype(o_ref.dtype)


def residual_block(x_nchw, w1, b1, w2, b2):
    """x_nchw: (N, C, H, W); w*: (C, C, 3, 3) torch OIHW; b*: (C,)."""
    N, C, H, W = x_nchw.shape
    Cp = ((C + 127) // 128) * 128          # lane-dense channel dim (>= 128)

    x = jnp.transpose(x_nchw, (0, 2, 3, 1))                      # NHWC
    if Cp != C:
        x = jnp.pad(x, ((0, 0), (0, 0), (0, 0), (0, Cp - C)))

    def prep_w(w):
        wk = jnp.transpose(w, (2, 3, 1, 0))                      # (kh, kw, Cin, Cout)
        wk = jnp.pad(wk, ((0, 0), (0, 0), (0, Cp - C), (0, Cp - C)))
        return wk.reshape(3, 3 * Cp, Cp).astype(jnp.bfloat16)    # fold kj into K

    def prep_b(b):
        return jnp.pad(b, (0, Cp - C)).reshape(1, Cp).astype(jnp.float32)

    w1k, w2k = prep_w(w1), prep_w(w2)
    b1k, b2k = prep_b(b1), prep_b(b2)

    act_bytes = 2 * N * H * W * Cp * 4                 # read x block + write out
    wgt_bytes = 2 * (9 * Cp * Cp) * 2 + 2 * Cp * 4     # bf16 weights + f32 biases
    cost = pl.CostEstimate(flops=4 * N * H * W * 9 * Cp * Cp,   # two 3x3 convs
                           transcendentals=2 * N * Cp,           # rsqrt per chan
                           bytes_accessed=act_bytes + wgt_bytes)

    out = pl.pallas_call(
        _resblock_kernel,
        out_shape=jax.ShapeDtypeStruct((N, H, W, Cp), x.dtype),
        grid=(N,),
        in_specs=[
            pl.BlockSpec((1, H, W, Cp), lambda n: (n, 0, 0, 0)),
            pl.BlockSpec((3, 3 * Cp, Cp), lambda n: (0, 0, 0)),
            pl.BlockSpec((1, Cp), lambda n: (0, 0)),
            pl.BlockSpec((3, 3 * Cp, Cp), lambda n: (0, 0, 0)),
            pl.BlockSpec((1, Cp), lambda n: (0, 0)),
        ],
        out_specs=pl.BlockSpec((1, H, W, Cp), lambda n: (n, 0, 0, 0)),
        compiler_params=pltpu.CompilerParams(
            dimension_semantics=("parallel",),
            vmem_limit_bytes=64 * 1024 * 1024,
        ),
        cost_estimate=cost,
    )(x, w1k, b1k, w2k, b2k)

    if Cp != C:
        out = out[..., :C]
    return jnp.transpose(out, (0, 3, 1, 2))                      # back to NCHW


def _reference(x, w1, b1, w2, b2):
    """Pure-JAX f32 reference of the PyTorch forward, for verification."""
    def conv_in(z, w, b):
        zp = jnp.pad(z, ((0, 0), (0, 0), (1, 1), (1, 1)), mode="reflect")
        y = jax.lax.conv_general_dilated(
            zp, w, (1, 1), "VALID",
            dimension_numbers=("NCHW", "OIHW", "NCHW")) + b[None, :, None, None]
        m = y.mean(axis=(2, 3), keepdims=True)
        v = ((y - m) ** 2).mean(axis=(2, 3), keepdims=True)
        return (y - m) * jax.lax.rsqrt(v + EPS)

    h = jnp.maximum(conv_in(x, w1, b1), 0.0)
    return x + conv_in(h, w2, b2)


if __name__ == "__main__":
    N, C, H, W = 2, 4, 16, 16
    key = jax.random.PRNGKey(0)
    kx, k1, k2, k3, k4 = jax.random.split(key, 5)

    x = jax.random.normal(kx, (N, C, H, W), jnp.float32)

    # Deterministic "PyTorch-like" init: U(-1/sqrt(fan_in), 1/sqrt(fan_in)).
    fan_in = C * 3 * 3
    bound = 1.0 / np.sqrt(fan_in)
    w1 = jax.random.uniform(k1, (C, C, 3, 3), jnp.float32, -bound, bound)
    b1 = jax.random.uniform(k2, (C,), jnp.float32, -bound, bound)
    w2 = jax.random.uniform(k3, (C, C, 3, 3), jnp.float32, -bound, bound)
    b2 = jax.random.uniform(k4, (C,), jnp.float32, -bound, bound)

    out = jax.jit(residual_block)(x, w1, b1, w2, b2)
    out = jax.block_until_ready(out)

    ref = _reference(x, w1, b1, w2, b2)
    # Matmul operands run as bf16 on the MXU (f32 accumulate), so compare with
    # a tolerance appropriate for bf16-rounded inputs/weights.
    np.testing.assert_allclose(np.asarray(out), np.asarray(ref),
                               rtol=2e-2, atol=2e-2)
    print("KERNEL_OK")
</pallas_src>

<mosaic_0001>
module attributes {stable_mosaic.version = 11 : i64} {
  func.func @_resblock_kernel(%arg0: i32, %arg1: memref<1x16x16x128xf32, #tpu.memory_space<vmem>>, %arg2: memref<3x384x128xbf16, #tpu.memory_space<vmem>>, %arg3: memref<1x128xf32, #tpu.memory_space<vmem>>, %arg4: memref<3x384x128xbf16, #tpu.memory_space<vmem>>, %arg5: memref<1x128xf32, #tpu.memory_space<vmem>>, %arg6: memref<1x16x16x128xf32, #tpu.memory_space<vmem>>) attributes {dimension_semantics = [#tpu.dimension_semantics<parallel>], iteration_bounds = array<i64: 2>, scalar_prefetch = 0 : i64, scratch_operands = 0 : i64, tpu.core_type = #tpu.core_type<tc>, window_params = [{transform_indices = @transform_0, window_bounds = array<i64: 1, 16, 16, 128>}, {pipeline_mode = #tpu.pipeline_mode<synchronous>, transform_indices = @transform_1, window_bounds = array<i64: 3, 384, 128>}, {pipeline_mode = #tpu.pipeline_mode<synchronous>, transform_indices = @transform_2, window_bounds = array<i64: 1, 128>}, {pipeline_mode = #tpu.pipeline_mode<synchronous>, transform_indices = @transform_3, window_bounds = array<i64: 3, 384, 128>}, {pipeline_mode = #tpu.pipeline_mode<synchronous>, transform_indices = @transform_4, window_bounds = array<i64: 1, 128>}, {transform_indices = @transform_5, window_bounds = array<i64: 1, 16, 16, 128>}]} {
    %c0 = arith.constant 0 : index
    %c0_0 = arith.constant 0 : index
    %c0_1 = arith.constant 0 : index
    %c0_2 = arith.constant 0 : index
    %0 = vector.load %arg1[%c0, %c0_0, %c0_1, %c0_2] : memref<1x16x16x128xf32, #tpu.memory_space<vmem>>, vector<1x16x16x128xf32>
    %1 = vector.shape_cast %0 : vector<1x16x16x128xf32> to vector<16x16x128xf32>
    %2 = arith.truncf %1 : vector<16x16x128xf32> to vector<16x16x128xbf16>
    %3 = vector.extract_strided_slice %2 {offsets = [1, 0, 0], sizes = [1, 16, 128], strides = [1, 1, 1]} : vector<16x16x128xbf16> to vector<1x16x128xbf16>
    %4 = vector.extract_strided_slice %2 {offsets = [14, 0, 0], sizes = [1, 16, 128], strides = [1, 1, 1]} : vector<16x16x128xbf16> to vector<1x16x128xbf16>
    %5 = tpu.concatenate %3, %2, %4 in 0 : vector<1x16x128xbf16>, vector<16x16x128xbf16>, vector<1x16x128xbf16> -> vector<18x16x128xbf16>
    %6 = vector.extract_strided_slice %5 {offsets = [0, 1, 0], sizes = [18, 1, 128], strides = [1, 1, 1]} : vector<18x16x128xbf16> to vector<18x1x128xbf16>
    %7 = vector.extract_strided_slice %5 {offsets = [0, 0, 0], sizes = [18, 15, 128], strides = [1, 1, 1]} : vector<18x16x128xbf16> to vector<18x15x128xbf16>
    %8 = tpu.concatenate %6, %7 in 1 : vector<18x1x128xbf16>, vector<18x15x128xbf16> -> vector<18x16x128xbf16>
    %9 = vector.extract_strided_slice %5 {offsets = [0, 1, 0], sizes = [18, 15, 128], strides = [1, 1, 1]} : vector<18x16x128xbf16> to vector<18x15x128xbf16>
    %10 = vector.extract_strided_slice %5 {offsets = [0, 14, 0], sizes = [18, 1, 128], strides = [1, 1, 1]} : vector<18x16x128xbf16> to vector<18x1x128xbf16>
    %11 = tpu.concatenate %9, %10 in 1 : vector<18x15x128xbf16>, vector<18x1x128xbf16> -> vector<18x16x128xbf16>
    %12 = tpu.concatenate %8, %5, %11 in 2 : vector<18x16x128xbf16>, vector<18x16x128xbf16>, vector<18x16x128xbf16> -> vector<18x16x384xbf16>
    %c0_3 = arith.constant 0 : index
    %c0_4 = arith.constant 0 : index
    %13 = vector.load %arg3[%c0_3, %c0_4] : memref<1x128xf32, #tpu.memory_space<vmem>>, vector<1x128xf32>
    %14 = vector.shape_cast %13 : vector<1x128xf32> to vector<1x128xf32>
    %15 = vector.broadcast %14 : vector<1x128xf32> to vector<256x128xf32>
    %16 = vector.extract_strided_slice %12 {offsets = [0, 0, 0], sizes = [16, 16, 384], strides = [1, 1, 1]} : vector<18x16x384xbf16> to vector<16x16x384xbf16>
    %17 = vector.shape_cast %16 : vector<16x16x384xbf16> to vector<256x384xbf16>
    %c0_5 = arith.constant 0 : index
    %c0_6 = arith.constant 0 : index
    %c0_7 = arith.constant 0 : index
    %18 = vector.load %arg2[%c0_5, %c0_6, %c0_7] : memref<3x384x128xbf16, #tpu.memory_space<vmem>>, vector<1x384x128xbf16>
    %19 = vector.shape_cast %18 : vector<1x384x128xbf16> to vector<384x128xbf16>
    %cst = arith.constant dense<0.000000e+00> : vector<256x128xf32>
    %20 = tpu.matmul %17, %19, %cst {dimension_numbers = #tpu.dot_dimension_numbers<[1], [0], [0], [1], [0, 0, 1, 1], [], []>} : vector<256x384xbf16>, vector<384x128xbf16>, vector<256x128xf32> -> vector<256x128xf32>
    %21 = arith.addf %15, %20 : vector<256x128xf32>
    %22 = vector.extract_strided_slice %12 {offsets = [1, 0, 0], sizes = [16, 16, 384], strides = [1, 1, 1]} : vector<18x16x384xbf16> to vector<16x16x384xbf16>
    %23 = vector.shape_cast %22 : vector<16x16x384xbf16> to vector<256x384xbf16>
    %c1 = arith.constant 1 : index
    %c0_8 = arith.constant 0 : index
    %c0_9 = arith.constant 0 : index
    %24 = vector.load %arg2[%c1, %c0_8, %c0_9] : memref<3x384x128xbf16, #tpu.memory_space<vmem>>, vector<1x384x128xbf16>
    %25 = vector.shape_cast %24 : vector<1x384x128xbf16> to vector<384x128xbf16>
    %cst_10 = arith.constant dense<0.000000e+00> : vector<256x128xf32>
    %26 = tpu.matmul %23, %25, %cst_10 {dimension_numbers = #tpu.dot_dimension_numbers<[1], [0], [0], [1], [0, 0, 1, 1], [], []>} : vector<256x384xbf16>, vector<384x128xbf16>, vector<256x128xf32> -> vector<256x128xf32>
    %27 = arith.addf %21, %26 : vector<256x128xf32>
    %28 = vector.extract_strided_slice %12 {offsets = [2, 0, 0], sizes = [16, 16, 384], strides = [1, 1, 1]} : vector<18x16x384xbf16> to vector<16x16x384xbf16>
    %29 = vector.shape_cast %28 : vector<16x16x384xbf16> to vector<256x384xbf16>
    %c2 = arith.constant 2 : index
    %c0_11 = arith.constant 0 : index
    %c0_12 = arith.constant 0 : index
    %30 = vector.load %arg2[%c2, %c0_11, %c0_12] : memref<3x384x128xbf16, #tpu.memory_space<vmem>>, vector<1x384x128xbf16>
    %31 = vector.shape_cast %30 : vector<1x384x128xbf16> to vector<384x128xbf16>
    %cst_13 = arith.constant dense<0.000000e+00> : vector<256x128xf32>
    %32 = tpu.matmul %29, %31, %cst_13 {dimension_numbers = #tpu.dot_dimension_numbers<[1], [0], [0], [1], [0, 0, 1, 1], [], []>} : vector<256x384xbf16>, vector<384x128xbf16>, vector<256x128xf32> -> vector<256x128xf32>
    %33 = arith.addf %27, %32 : vector<256x128xf32>
    %cst_14 = arith.constant dense<0.000000e+00> : vector<128xf32>
    %34 = vector.multi_reduction <add>, %33, %cst_14 [0] : vector<256x128xf32> to vector<128xf32>
    %35 = vector.shape_cast %34 : vector<128xf32> to vector<1x128xf32>
    %36 = arith.mulf %33, %33 : vector<256x128xf32>
    %cst_15 = arith.constant dense<0.000000e+00> : vector<128xf32>
    %37 = vector.multi_reduction <add>, %36, %cst_15 [0] : vector<256x128xf32> to vector<128xf32>
    %38 = vector.shape_cast %37 : vector<128xf32> to vector<1x128xf32>
    %cst_16 = arith.constant 3.906250e-03 : f32
    %39 = vector.broadcast %cst_16 : f32 to vector<1x128xf32>
    %40 = arith.mulf %35, %39 : vector<1x128xf32>
    %cst_17 = arith.constant 3.906250e-03 : f32
    %41 = vector.broadcast %cst_17 : f32 to vector<1x128xf32>
    %42 = arith.mulf %38, %41 : vector<1x128xf32>
    %43 = arith.mulf %40, %40 : vector<1x128xf32>
    %44 = arith.subf %42, %43 : vector<1x128xf32>
    %cst_18 = arith.constant 0.000000e+00 : f32
    %45 = vector.broadcast %cst_18 : f32 to vector<1x128xf32>
    %46 = arith.maximumf %44, %45 : vector<1x128xf32>
    %47 = vector.broadcast %40 : vector<1x128xf32> to vector<256x128xf32>
    %48 = arith.subf %33, %47 : vector<256x128xf32>
    %cst_19 = arith.constant 9.99999974E-6 : f32
    %49 = vector.broadcast %cst_19 : f32 to vector<1x128xf32>
    %50 = arith.addf %46, %49 : vector<1x128xf32>
    %51 = math.rsqrt %50 : vector<1x128xf32>
    %52 = vector.broadcast %51 : vector<1x128xf32> to vector<256x128xf32>
    %53 = arith.mulf %48, %52 : vector<256x128xf32>
    %cst_20 = arith.constant 0.000000e+00 : f32
    %54 = vector.broadcast %cst_20 : f32 to vector<256x128xf32>
    %55 = arith.maximumf %53, %54 : vector<256x128xf32>
    %56 = vector.shape_cast %55 : vector<256x128xf32> to vector<16x16x128xf32>
    %57 = arith.truncf %56 : vector<16x16x128xf32> to vector<16x16x128xbf16>
    %58 = vector.extract_strided_slice %57 {offsets = [1, 0, 0], sizes = [1, 16, 128], strides = [1, 1, 1]} : vector<16x16x128xbf16> to vector<1x16x128xbf16>
    %59 = vector.extract_strided_slice %57 {offsets = [14, 0, 0], sizes = [1, 16, 128], strides = [1, 1, 1]} : vector<16x16x128xbf16> to vector<1x16x128xbf16>
    %60 = tpu.concatenate %58, %57, %59 in 0 : vector<1x16x128xbf16>, vector<16x16x128xbf16>, vector<1x16x128xbf16> -> vector<18x16x128xbf16>
    %61 = vector.extract_strided_slice %60 {offsets = [0, 1, 0], sizes = [18, 1, 128], strides = [1, 1, 1]} : vector<18x16x128xbf16> to vector<18x1x128xbf16>
    %62 = vector.extract_strided_slice %60 {offsets = [0, 0, 0], sizes = [18, 15, 128], strides = [1, 1, 1]} : vector<18x16x128xbf16> to vector<18x15x128xbf16>
    %63 = tpu.concatenate %61, %62 in 1 : vector<18x1x128xbf16>, vector<18x15x128xbf16> -> vector<18x16x128xbf16>
    %64 = vector.extract_strided_slice %60 {offsets = [0, 1, 0], sizes = [18, 15, 128], strides = [1, 1, 1]} : vector<18x16x128xbf16> to vector<18x15x128xbf16>
    %65 = vector.extract_strided_slice %60 {offsets = [0, 14, 0], sizes = [18, 1, 128], strides = [1, 1, 1]} : vector<18x16x128xbf16> to vector<18x1x128xbf16>
    %66 = tpu.concatenate %64, %65 in 1 : vector<18x15x128xbf16>, vector<18x1x128xbf16> -> vector<18x16x128xbf16>
    %67 = tpu.concatenate %63, %60, %66 in 2 : vector<18x16x128xbf16>, vector<18x16x128xbf16>, vector<18x16x128xbf16> -> vector<18x16x384xbf16>
    %c0_21 = arith.constant 0 : index
    %c0_22 = arith.constant 0 : index
    %68 = vector.load %arg5[%c0_21, %c0_22] : memref<1x128xf32, #tpu.memory_space<vmem>>, vector<1x128xf32>
    %69 = vector.shape_cast %68 : vector<1x128xf32> to vector<1x128xf32>
    %70 = vector.broadcast %69 : vector<1x128xf32> to vector<256x128xf32>
    %71 = vector.extract_strided_slice %67 {offsets = [0, 0, 0], sizes = [16, 16, 384], strides = [1, 1, 1]} : vector<18x16x384xbf16> to vector<16x16x384xbf16>
    %72 = vector.shape_cast %71 : vector<16x16x384xbf16> to vector<256x384xbf16>
    %c0_23 = arith.constant 0 : index
    %c0_24 = arith.constant 0 : index
    %c0_25 = arith.constant 0 : index
    %73 = vector.load %arg4[%c0_23, %c0_24, %c0_25] : memref<3x384x128xbf16, #tpu.memory_space<vmem>>, vector<1x384x128xbf16>
    %74 = vector.shape_cast %73 : vector<1x384x128xbf16> to vector<384x128xbf16>
    %cst_26 = arith.constant dense<0.000000e+00> : vector<256x128xf32>
    %75 = tpu.matmul %72, %74, %cst_26 {dimension_numbers = #tpu.dot_dimension_numbers<[1], [0], [0], [1], [0, 0, 1, 1], [], []>} : vector<256x384xbf16>, vector<384x128xbf16>, vector<256x128xf32> -> vector<256x128xf32>
    %76 = arith.addf %70, %75 : vector<256x128xf32>
    %77 = vector.extract_strided_slice %67 {offsets = [1, 0, 0], sizes = [16, 16, 384], strides = [1, 1, 1]} : vector<18x16x384xbf16> to vector<16x16x384xbf16>
    %78 = vector.shape_cast %77 : vector<16x16x384xbf16> to vector<256x384xbf16>
    %c1_27 = arith.constant 1 : index
    %c0_28 = arith.constant 0 : index
    %c0_29 = arith.constant 0 : index
    %79 = vector.load %arg4[%c1_27, %c0_28, %c0_29] : memref<3x384x128xbf16, #tpu.memory_space<vmem>>, vector<1x384x128xbf16>
    %80 = vector.shape_cast %79 : vector<1x384x128xbf16> to vector<384x128xbf16>
    %cst_30 = arith.constant dense<0.000000e+00> : vector<256x128xf32>
    %81 = tpu.matmul %78, %80, %cst_30 {dimension_numbers = #tpu.dot_dimension_numbers<[1], [0], [0], [1], [0, 0, 1, 1], [], []>} : vector<256x384xbf16>, vector<384x128xbf16>, vector<256x128xf32> -> vector<256x128xf32>
    %82 = arith.addf %76, %81 : vector<256x128xf32>
    %83 = vector.extract_strided_slice %67 {offsets = [2, 0, 0], sizes = [16, 16, 384], strides = [1, 1, 1]} : vector<18x16x384xbf16> to vector<16x16x384xbf16>
    %84 = vector.shape_cast %83 : vector<16x16x384xbf16> to vector<256x384xbf16>
    %c2_31 = arith.constant 2 : index
    %c0_32 = arith.constant 0 : index
    %c0_33 = arith.constant 0 : index
    %85 = vector.load %arg4[%c2_31, %c0_32, %c0_33] : memref<3x384x128xbf16, #tpu.memory_space<vmem>>, vector<1x384x128xbf16>
    %86 = vector.shape_cast %85 : vector<1x384x128xbf16> to vector<384x128xbf16>
    %cst_34 = arith.constant dense<0.000000e+00> : vector<256x128xf32>
    %87 = tpu.matmul %84, %86, %cst_34 {dimension_numbers = #tpu.dot_dimension_numbers<[1], [0], [0], [1], [0, 0, 1, 1], [], []>} : vector<256x384xbf16>, vector<384x128xbf16>, vector<256x128xf32> -> vector<256x128xf32>
    %88 = arith.addf %82, %87 : vector<256x128xf32>
    %cst_35 = arith.constant dense<0.000000e+00> : vector<128xf32>
    %89 = vector.multi_reduction <add>, %88, %cst_35 [0] : vector<256x128xf32> to vector<128xf32>
    %90 = vector.shape_cast %89 : vector<128xf32> to vector<1x128xf32>
    %91 = arith.mulf %88, %88 : vector<256x128xf32>
    %cst_36 = arith.constant dense<0.000000e+00> : vector<128xf32>
    %92 = vector.multi_reduction <add>, %91, %cst_36 [0] : vector<256x128xf32> to vector<128xf32>
    %93 = vector.shape_cast %92 : vector<128xf32> to vector<1x128xf32>
    %cst_37 = arith.constant 3.906250e-03 : f32
    %94 = vector.broadcast %cst_37 : f32 to vector<1x128xf32>
    %95 = arith.mulf %90, %94 : vector<1x128xf32>
    %cst_38 = arith.constant 3.906250e-03 : f32
    %96 = vector.broadcast %cst_38 : f32 to vector<1x128xf32>
    %97 = arith.mulf %93, %96 : vector<1x128xf32>
    %98 = arith.mulf %95, %95 : vector<1x128xf32>
    %99 = arith.subf %97, %98 : vector<1x128xf32>
    %cst_39 = arith.constant 0.000000e+00 : f32
    %100 = vector.broadcast %cst_39 : f32 to vector<1x128xf32>
    %101 = arith.maximumf %99, %100 : vector<1x128xf32>
    %102 = vector.broadcast %95 : vector<1x128xf32> to vector<256x128xf32>
    %103 = arith.subf %88, %102 : vector<256x128xf32>
    %cst_40 = arith.constant 9.99999974E-6 : f32
    %104 = vector.broadcast %cst_40 : f32 to vector<1x128xf32>
    %105 = arith.addf %101, %104 : vector<1x128xf32>
    %106 = math.rsqrt %105 : vector<1x128xf32>
    %107 = vector.broadcast %106 : vector<1x128xf32> to vector<256x128xf32>
    %108 = arith.mulf %103, %107 : vector<256x128xf32>
    %109 = vector.shape_cast %108 : vector<256x128xf32> to vector<16x16x128xf32>
    %110 = arith.addf %1, %109 : vector<16x16x128xf32>
    %c0_41 = arith.constant 0 : index
    %c0_42 = arith.constant 0 : index
    %c0_43 = arith.constant 0 : index
    %c0_44 = arith.constant 0 : index
    %111 = vector.load %arg6[%c0_41, %c0_42, %c0_43, %c0_44] : memref<1x16x16x128xf32, #tpu.memory_space<vmem>>, vector<1x16x16x128xf32>
    %112 = vector.shape_cast %111 : vector<1x16x16x128xf32> to vector<16x16x128xf32>
    %113 = vector.shape_cast %110 : vector<16x16x128xf32> to vector<1x16x16x128xf32>
    tpu.vector_store %arg6[%c0_41, %c0_42, %c0_43, %c0_44], %113 {strides = array<i32>} : memref<1x16x16x128xf32, #tpu.memory_space<vmem>>, vector<1x16x16x128xf32>,
    return
  }
  func.func @transform_0(%arg0: i32) -> (i32, i32, i32, i32) {
    %c0_i32 = arith.constant 0 : i32
    %c0_i32_0 = arith.constant 0 : i32
    %c0_i32_1 = arith.constant 0 : i32
    %c0_i32_2 = arith.constant 0 : i32
    return %arg0, %c0_i32, %c0_i32_0, %c0_i32_1 : i32, i32, i32, i32
  }
  func.func @transform_1(%arg0: i32) -> (i32, i32, i32) {
    %c0_i32 = arith.constant 0 : i32
    %c0_i32_0 = arith.constant 0 : i32
    %c0_i32_1 = arith.constant 0 : i32
    %c0_i32_2 = arith.constant 0 : i32
    return %c0_i32, %c0_i32_0, %c0_i32_1 : i32, i32, i32
  }
  func.func @transform_2(%arg0: i32) -> (i32, i32) {
    %c0_i32 = arith.constant 0 : i32
    %c0_i32_0 = arith.constant 0 : i32
    %c0_i32_1 = arith.constant 0 : i32
    return %c0_i32, %c0_i32_0 : i32, i32
  }
  func.func @transform_3(%arg0: i32) -> (i32, i32, i32) {
    %c0_i32 = arith.constant 0 : i32
    %c0_i32_0 = arith.constant 0 : i32
    %c0_i32_1 = arith.constant 0 : i32
    %c0_i32_2 = arith.constant 0 : i32
    return %c0_i32, %c0_i32_0, %c0_i32_1 : i32, i32, i32
  }
  func.func @transform_4(%arg0: i32) -> (i32, i32) {
    %c0_i32 = arith.constant 0 : i32
    %c0_i32_0 = arith.constant 0 : i32
    %c0_i32_1 = arith.constant 0 : i32
    return %c0_i32, %c0_i32_0 : i32, i32
  }
  func.func @transform_5(%arg0: i32) -> (i32, i32, i32, i32) {
    %c0_i32 = arith.constant 0 : i32
    %c0_i32_0 = arith.constant 0 : i32
    %c0_i32_1 = arith.constant 0 : i32
    %c0_i32_2 = arith.constant 0 : i32
    return %arg0, %c0_i32, %c0_i32_0, %c0_i32_1 : i32, i32, i32, i32
  }
}

</mosaic_0001>

<bundles_post_ra>
// kernel: residual_block.1
= control target key start
LH: loop header
LB: loop body
LE: loop exit
PB: predicated region body
PF: predicated region fallthrough
CT: control target
= control target key end

     0   :  { %10 = vsyncpa [#allocation3], 0  ;;  %s9354_s0 = inlined_call_operand.hbm [shape: f32[2,16,16,128], index: 0, kind: input, shape index: {}]   ;;  %s9355_s1 = inlined_call_operand.hbm [shape: bf16[3,384,128], index: 1, kind: input, shape index: {}]   ;;  %s9356_s2 = inlined_call_operand.hbm [shape: f32[1,128], index: 2, kind: input, shape index: {}]   ;;  %s9357_s3 = inlined_call_operand.hbm [shape: bf16[3,384,128], index: 3, kind: input, shape index: {}]   ;;  %s9358_s4 = inlined_call_operand.hbm [shape: f32[1,128], index: 4, kind: input, shape index: {}]   ;;  %s9359_s5 = inlined_call_operand.hbm [shape: f32[2,16,16,128], index: 5, kind: output, shape index: {}]  }
   0x1   :  { %12 = vsyncpa [#allocation3 + $0x1], 0 }
   0x2   :  { %13 = vsyncpa [#allocation6], 0 }
   0x3   :  { %14 = vsyncpa [#allocation9], 0 }
   0x4   :  { %15 = vsyncpa [#allocation4], 0 }
   0x5   :  { %17 = vsyncpa [#allocation4 + $0x1], 0  ;;  %s6908_s18 = smov 0   ;;  %s6910_s19 = smov 0  }
   0x6   :  { %s6912_s20 = smov 0   ;;  %s6914_s21 = smov 0  }
   0x7 LB: > { %s6929_s22 = sadd.s32 4294967295, %s6864_s21   ;;  %s4717_s23 = sadd.s32 4294967294, %s6864_s21   ;;  %s6864_s21 = sphi %s6914_s21, %s9448_s21   ;;  %s6860_s20 = sphi %s6912_s20, %s9447_s20   ;;  %s6856_s19 = sphi %s6910_s19, %s9446_s19   ;;  %s6852_s18 = sphi %s6908_s18, %s9445_s18  }
   0x8   : > { %p43_p0 = scmp.ne.s32.totalorder %s6856_s19, %s6852_s18  ;;  %p9360_p1 = scmp.eq.s32.totalorder %s6929_s22, 0 }
   0x9   : > { %p157_p3 = scmp.eq.s32.totalorder %s4717_s23, 1  ;;  %p4718_p5 = scmp.ge.s32.totalorder %s6864_s21, 1 }
   0xa   : > { %p6938_p4 = por %p9360_p1, %p43_p0  ;;  %p164_p7 = scmp.lt.s32.totalorder %s6864_s21, 3 }
   0xb   : > { %p6943_p6 = por %p157_p3, %p43_p0  ;;  %s6866_s27 = smov [#allocation5]  }
   0xc   : > { %s9377_s24 = scalar_select %p6938_p4, 1, 0 }
   0xd   : > { %s9378_s25 = scalar_select %p6943_p6, 1, 0 }
   0xe   : > { %p6948_p8 = pnand %p4718_p5, %p164_p7  ;;  %s176_s28 = sshll.u32 %s6866_s27, 4  ;;  %s6952_s28 = int_to_ptr.vmem [resolvable:$true] %s176_s28 }
   0xf   : > { %s6867_s30 = smov [#allocation8]   ;;  %s6868_s7 = smov [#allocation7]  }
  0x10   : > { %s9379_s26 = scalar_select %p6948_p8, 1, 0 }
  0x11   : > { %p6395_p9 = pneg %p6948_p8  ;;  %s200_s6 = sshll.u32 %s6867_s30, 4  ;;  %s6963_s6 = int_to_ptr.vmem [resolvable:$true] %s200_s6 }
  0x12   : > { %s6965_s8 = sshll.u32 %s6868_s7, 4  ;;  %s6648_s11 = scalar_lea.hbm %s9355_s1, 9216  ;;  %s191_s8 = int_to_ptr.vmem [resolvable:$true] %s6965_s8 }
  0x13   : > { %p6959_p11 = pnand %p6395_p9, %p9360_p1  ;;  %p6649_p12 = scmp.ne.s32.totalorder %s9355_s1, %s6648_s11 }
  0x14   : > { %p6655_p5 = scmp.lt.u32.totalorder %s6648_s11, %s9355_s1 }
  0x15   : > { %p6975_p13 = pneg %p6959_p11 }
  0x17   : > { %p6651_p0 = pnand %p6975_p13, %p6649_p12 }
  0x19   : > { %p6652_p3 = pneg %p6651_p0 }
  0x1b   : > { %p6657_p7 = pnand %p6655_p5, %p6652_p3 }
  0x1d   : > { %6660 = shalt.err (!%p6657_p7)
}
  0x1e   : > { %s6661_s17 = scalar_lea.vmem %s6952_s28, 9216  ;;  %p6669_p2 = scmp.lt.s32.totalorder %s6952_s28, %s6952_s28 }
  0x1f   : > { %p6662_p9 = scmp.ne.s32.totalorder %s6952_s28, %s6661_s17  ;;  %p6670_p6 = scmp.lt.s32.totalorder %s6661_s17, %s6661_s17 }
  0x21   : > { %p6664_p10 = pnand %p6662_p9, %p6975_p13  ;;  %p6671_p12 = por %p6670_p6, %p6669_p2 }
  0x23   : > { %p6665_p1 = pneg %p6664_p10 }
  0x25   : > { %p6672_p0 = pnand %p6671_p12, %p6665_p1 }
  0x27   : > { %6675 = shalt.err (!%p6672_p0)
}
  0x28   : > { %s6869_s23 = smov 64   ;;  %s6870_s27 = smov 4  }
  0x29   : > { %6398 = dma.hbm_to_vmem [thread:$0]  (!%p6959_p11), %s9355_s1, 9216, %s6952_s28, [#allocation6], %s6869_s23, %s6869_s23, %s6870_s27  }
  0x2a   : > { %s6676_s11 = scalar_lea.hbm %s9357_s3, 9216 }
  0x2b   : > { %p6677_p2 = scmp.ne.s32.totalorder %s9357_s3, %s6676_s11  ;;  %p6683_p10 = scmp.lt.u32.totalorder %s6676_s11, %s9357_s3 }
  0x2d   : > { %p6679_p1 = pnand %p6677_p2, %p6975_p13 }
  0x2f   : > { %p6680_p6 = pneg %p6679_p1 }
  0x31   : > { %p6685_p3 = pnand %p6683_p10, %p6680_p6 }
  0x33   : > { %6688 = shalt.err (!%p6685_p3)
}
  0x34   : > { %s6689_s28 = scalar_lea.vmem %s6963_s6, 9216  ;;  %p6697_p12 = scmp.lt.s32.totalorder %s6963_s6, %s6963_s6 }
  0x35   : > { %p6690_p5 = scmp.ne.s32.totalorder %s6963_s6, %s6689_s28  ;;  %p6698_p0 = scmp.lt.s32.totalorder %s6689_s28, %s6689_s28 }
  0x37   : > { %p6692_p7 = pnand %p6690_p5, %p6975_p13  ;;  %p6699_p2 = por %p6698_p0, %p6697_p12 }
  0x39   : > { %p6693_p9 = pneg %p6692_p7 }
  0x3b   : > { %p6700_p1 = pnand %p6699_p2, %p6693_p9 }
  0x3d   : > { %6703 = shalt.err (!%p6700_p1)
}
  0x3e   : > { %6404 = dma.hbm_to_vmem [thread:$0]  (!%p6959_p11), %s9357_s3, 9216, %s6963_s6, [#allocation9], %s6869_s23, %s6869_s23, %s6870_s27  }
  0x3f   : > { %s6704_s10 = scalar_lea.hbm %s9356_s2, 16 }
  0x40   : > { %p6705_p6 = scmp.ne.s32.totalorder %s9356_s2, %s6704_s10  ;;  %p6711_p5 = scmp.lt.u32.totalorder %s6704_s10, %s9356_s2 }
  0x42   : > { %p6707_p10 = pnand %p6705_p6, %p6975_p13 }
  0x44   : > { %p6708_p3 = pneg %p6707_p10 }
  0x46   : > { %p6713_p7 = pnand %p6711_p5, %p6708_p3 }
  0x48   : > { %6716 = shalt.err (!%p6713_p7)
}
  0x49   : > { %s6717_s16 = scalar_lea.vmem %s191_s8, 16  ;;  %s6724_s6 = scalar_lea.vmem %s191_s8, 32 }
  0x4a   : > { %p6718_p9 = scmp.ne.s32.totalorder %s191_s8, %s6717_s16  ;;  %p6725_p2 = scmp.lt.s32.totalorder %s191_s8, %s191_s8 }
  0x4b   : > { %p6726_p1 = scmp.lt.s32.totalorder %s6724_s6, %s6717_s16 }
  0x4c   : > { %p6720_p12 = pnand %p6718_p9, %p6975_p13 }
  0x4d   : > { %p6727_p4 = por %p6726_p1, %p6725_p2 }
  0x4e   : > { %p6721_p0 = pneg %p6720_p12 }
  0x50   : > { %p6728_p8 = pnand %p6727_p4, %p6721_p0 }
  0x52   : > { %6731 = shalt.err (!%p6728_p8)
}
  0x53   : > { %6401 = dma.hbm_to_vmem [thread:$0]  (!%p6959_p11), %s9356_s2, 16, %s191_s8, [#allocation6]  }
  0x54   : > { %s6871_s28 = smov [#allocation10]   ;;  %s6732_s9 = scalar_lea.hbm %s9358_s4, 16 }
  0x55   : > { %s214_s17 = sshll.u32 %s6871_s28, 4  ;;  %p6733_p6 = scmp.ne.s32.totalorder %s9358_s4, %s6732_s9  ;;  %s215_s17 = int_to_ptr.vmem [resolvable:$true] %s214_s17 }
  0x56   : > { %p6739_p10 = scmp.lt.u32.totalorder %s6732_s9, %s9358_s4 }
  0x57   : > { %p6735_p4 = pnand %p6733_p6, %p6975_p13 }
  0x59   : > { %p6736_p8 = pneg %p6735_p4 }
  0x5b   : > { %p6741_p3 = pnand %p6739_p10, %p6736_p8 }
  0x5d   : > { %6744 = shalt.err (!%p6741_p3)
}
  0x5e   : > { %s6745_s8 = scalar_lea.vmem %s215_s17, 16  ;;  %s6752_s15 = scalar_lea.vmem %s215_s17, 32 }
  0x5f   : > { %p6746_p5 = scmp.ne.s32.totalorder %s215_s17, %s6745_s8  ;;  %p6753_p12 = scmp.lt.s32.totalorder %s215_s17, %s215_s17 }
  0x60   : > { %p6754_p0 = scmp.lt.s32.totalorder %s6752_s15, %s6745_s8 }
  0x61   : > { %p6748_p7 = pnand %p6746_p5, %p6975_p13 }
  0x62   : > { %p6755_p2 = por %p6754_p0, %p6753_p12 }
  0x63   : > { %p6749_p9 = pneg %p6748_p7 }
  0x65   : > { %p6756_p1 = pnand %p6755_p2, %p6749_p9 }
  0x67   : > { %6759 = shalt.err (!%p6756_p1)
}
  0x68   : > { %6407 = dma.hbm_to_vmem [thread:$0]  (!%p6959_p11), %s9358_s4, 16, %s215_s17, [#allocation9]  }
  0x69   : > { %s7057_s14 = sadd.s32 1, %s6864_s21   ;;  %s30_s23 = sadd.s32 1, %s6860_s20 }
  0x6a   : > { %s27_s29 = ssub.s32 %s6864_s21, %s7057_s14  ;;  %p37_p13 = scmp.ne.s32.totalorder %s6860_s20, %s6856_s19 }
  0x6b   : > { %p28_p6 = scmp.eq.s32.totalorder %s27_s29, 0  ;;  %p38_p4 = scmp.eq.s32.totalorder %s6864_s21, 0 }
  0x6c   : > { %p9382_p8 = scmp.eq.s32.totalorder %s6929_s22, 1  ;;  %p6420_p3 = scmp.lt.s32.totalorder %s6864_s21, 2 }
  0x6d   : > { %s7073_s28 = scalar_select %p28_p6, %s6860_s20, %s30_s23  }
  0x6e   : > { %p7067_p10 = por %p9382_p8, %p37_p13  ;;  %p39_p5 = por %p38_p4, %p37_p13 }
  0x6f   : > { %s225_s30 = sand.u32 1, %s6860_s20   ;;  %s4885_s17 = sshll.u32 %s6864_s21, 12 }
  0x70   : > { %s4724_s7 = sshll.u32 %s225_s30, 8  ;;  %s7080_s11 = scalar_lea.hbm %s9354_s0, %s4885_s17 }
  0x71   : > { %s229_s12 = scalar_lea.vmem [#allocation2], %s4724_s7  ;;  %p7084_p11 = pnand %p6420_p3, %p39_p5 }
  0x72   : > { %s236_s13 = sshll.u32 %s229_s12, 4  ;;  %s7088_s15 = scalar_lea.sflag [#allocation3], %s225_s30  ;;  %s7082_s13 = int_to_ptr.vmem [resolvable:$true] %s236_s13 }
  0x73   : > { %s6760_s16 = scalar_lea.hbm %s7080_s11, 4096  ;;  %p6762_p9 = pneg %p7084_p11 }
  0x74   : > { %p6761_p7 = scmp.ne.s32.totalorder %s7080_s11, %s6760_s16  ;;  %s6765_s29 = scalar_lea.hbm %s9354_s0, 8192 }
  0x75   : > { %p6766_p2 = scmp.lt.u32.totalorder %s7080_s11, %s9354_s0  ;;  %p6767_p1 = scmp.lt.u32.totalorder %s6765_s29, %s6760_s16 }
  0x76   : > { %p6763_p12 = pnand %p6762_p9, %p6761_p7  ;;  %p6769_p6 = scmp.lt.u32.totalorder %s6760_s16, %s7080_s11 }
  0x77   : > { %p6768_p13 = por %p6767_p1, %p6766_p2 }
  0x78   : > { %p6764_p0 = pneg %p6763_p12 }
  0x79   : > { %p6770_p4 = por %p6769_p6, %p6768_p13 }
  0x7b   : > { %p6771_p8 = pnand %p6770_p4, %p6764_p0 }
  0x7d   : > { %6774 = shalt.err (!%p6771_p8)
}
  0x7e   : > { %s6775_s30 = scalar_lea.vmem %s7082_s13, 4096  ;;  %s6872_s9 = smov [#allocation2]  }
  0x7f   : > { %p6776_p3 = scmp.ne.s32.totalorder %s7082_s13, %s6775_s30  ;;  %s6780_s10 = sshll.u32 %s6872_s9, 4  ;;  %s6781_s10 = int_to_ptr.vmem [resolvable:$false] %s6780_s10 }
  0x80   : > { %s6782_s12 = scalar_lea.vmem %s6781_s10, 8192  ;;  %p6783_p12 = scmp.lt.s32.totalorder %s7082_s13, %s6781_s10 }
  0x81   : > { %p6778_p5 = pnand %p6776_p3, %p6762_p9  ;;  %p6784_p2 = scmp.lt.s32.totalorder %s6782_s12, %s6775_s30 }
  0x83   : > { %p6779_p7 = pneg %p6778_p5  ;;  %p6785_p1 = por %p6784_p2, %p6783_p12 }
  0x85   : > { %p6786_p13 = pnand %p6785_p1, %p6779_p7 }
  0x87   : > { %6789 = shalt.err (!%p6786_p13)
}
  0x88   : > { %s6873_s16 = smov 128   ;;  %s6874_s6 = smov 8  }
  0x89   : > { %6411 = dma.hbm_to_vmem [thread:$0]  (!%p7084_p11), %s7080_s11, 4096, %s7082_s13, %s7088_s15, %s6873_s16, %s6873_s16, %s6874_s6  }
  0x8a   : > { %p9385_p9 = scmp.ne.s32.totalorder %s9379_s26, 0 }
  0x8c   : > { %248 = sbr.rel (%p9385_p9) target bundleno = 1397 (0x575), region = 40 }
  0x93   : > { %s7119_s23 = sand.u32 1, %s6856_s19   ;;  %p9386_p0 = scmp.ne.s32.totalorder %s9377_s24, 0 }
  0x94   : > { %s4728_s29 = sshll.u32 %s7119_s23, 8  ;;  %s251_s7 = scalar_lea.sflag [#allocation3], %s7119_s23 }
  0x95   : > { %s7125_s17 = scalar_lea.vmem [#allocation2], %s4728_s29 }
  0x96   : > { %6835 = dma.done.wait (%p9386_p0), %s251_s7, 4096  }
  0x97   : > { %6837 = vsyncadd (%p9386_p0), %s251_s7, 4294963200  ;;  %p9387_p11 = scmp.eq.s32.totalorder %s6929_s22, 0 }
  0x99   : > { %6839 = dma.done.wait (%p9387_p11), [#allocation6], 9232   ;;  %p9388_p6 = pmov %p9387_p11 }
  0x9b   : > { %6841 = vsyncadd (%p9388_p6), [#allocation6], 4294958064  ;;  %p9389_p4 = pmov %p9388_p6 }
  0x9d   : > { %6843 = dma.done.wait (%p9389_p4), [#allocation9], 9232   ;;  %p9390_p8 = pmov %p9389_p4 }
  0x9e   : > { %v6468_v0 = vld [vmem:[#allocation5 + $0x40] sm:$0xff]   ;;  %v6472_v4 = vld [vmem:[#allocation5 + $0x48] sm:$0xff]   ;;  %v6476_v8 = vld [vmem:[#allocation5 + $0x50] sm:$0xff]   ;;  %vm490_vm0 = vcmask 1040384   ;;  %vm491_vm1 = vsmask.f32 256 }
  0x9f   : > { %6845 = vsyncadd (%p9390_p8), [#allocation9], 4294958064  ;;  %v6469_v1 = vld [vmem:[#allocation5 + $0x100] sm:$0xff]   ;;  %4887 = vmatprep.subr.bf16.mxu0 %v6468_v0  ;;  %v6473_v5 = vld [vmem:[#allocation5 + $0x108] sm:$0xff]   ;;  %v9391_v46 = vmov 0  ;;  %vm573_vm3 = vcmask 1047552  }
  0xa0   : > { %v6470_v2 = vld [vmem:[#allocation5] sm:$0xff]   ;;  %5023 = vmatprep.subr.bf16.mxu1 %v6469_v1  ;;  %v6474_v6 = vld [vmem:[#allocation5 + $0x8] sm:$0xff]   ;;  %v6477_v9 = vld [vmem:[#allocation5 + $0x110] sm:$0xff]   ;;  %vm574_vm4 = vsmask.f32 7424  ;;  %s9198_s24 = scalar_lea.vmem [#allocation11], %s4728_s29 }
  0xa1   : > { %v6471_v3 = vld [vmem:[#allocation5 + $0xc0] sm:$0xff]   ;;  %4888 = vmatpush3.bf16.msra.mxu0 %v6470_v2  ;;  %v6475_v7 = vld [vmem:[#allocation5 + $0xc8] sm:$0xff]   ;;  %v6478_v10 = vld [vmem:[#allocation5 + $0x10] sm:$0xff]   ;;  %s4886_s26 = sshll.u32 %s6929_s22, 12  ;;  %s4606_s11 = sshll.u32 %s9198_s24, 4  ;;  %s9290_s11 = int_to_ptr.vmem [resolvable:$true] %s4606_s11 }
  0xa2   : > { %5024 = vmatpush3.bf16.msra.mxu1 %v6471_v3  ;;  %4889 = vmatprep.subr.bf16.mxu0 %v6472_v4  ;;  %v6479_v11 = vld [vmem:[#allocation5 + $0xd0] sm:$0xff]   ;;  %v6480_v12 = vld [vmem:[#allocation5 + $0x58] sm:$0xff]   ;;  %v6484_v16 = vld [vmem:[#allocation5 + $0x60] sm:$0xff]   ;;  %s9286_s15 = scalar_lea.hbm %s9359_s5, %s4886_s26  ;;  %s4593_s22 = scalar_lea.sflag [#allocation4], %s7119_s23 }
  0xa3   : > { %5025 = vmatprep.subr.bf16.mxu1 %v6473_v5  ;;  %v6481_v13 = vld [vmem:[#allocation5 + $0x118] sm:$0xff]   ;;  %v6485_v17 = vld [vmem:[#allocation5 + $0x120] sm:$0xff]   ;;  %v6488_v20 = vld [vmem:[#allocation5 + $0x68] sm:$0xff]   ;;  %s6790_s30 = scalar_lea.vmem %s9290_s11, 4096  ;;  %s6875_s9 = smov [#allocation11]  }
  0xa4   : > { %v6482_v14 = vld [vmem:[#allocation5 + $0x18] sm:$0xff]   ;;  %v6486_v18 = vld [vmem:[#allocation5 + $0x20] sm:$0xff]   ;;  %v6489_v21 = vld [vmem:[#allocation5 + $0x128] sm:$0xff]   ;;  %p6791_p3 = scmp.ne.s32.totalorder %s9290_s11, %s6790_s30  ;;  %s6794_s10 = sshll.u32 %s6875_s9, 4  ;;  %s6795_s10 = int_to_ptr.vmem [resolvable:$false] %s6794_s10 }
  0xa5   : > { %4890 = vmatpush3.bf16.msra.mxu0 %v6474_v6  ;;  %v6483_v15 = vld [vmem:[#allocation5 + $0xd8] sm:$0xff]   ;;  %v6487_v19 = vld [vmem:[#allocation5 + $0xe0] sm:$0xff]   ;;  %v6490_v22 = vld [vmem:[#allocation5 + $0x28] sm:$0xff]   ;;  %s6796_s12 = scalar_lea.vmem %s6795_s10, 8192  ;;  %p6797_p12 = scmp.lt.s32.totalorder %s9290_s11, %s6795_s10 }
  0xa6   : > { %5026 = vmatpush3.bf16.msra.mxu1 %v6475_v7  ;;  %4891 = vmatprep.subr.bf16.mxu0 %v6476_v8  ;;  %v6491_v23 = vld [vmem:[#allocation5 + $0xe8] sm:$0xff]   ;;  %v6492_v24 = vld [vmem:[#allocation5 + $0x70] sm:$0xff]   ;;  %v6496_v28 = vld [vmem:[#allocation5 + $0x78] sm:$0xff]   ;;  %p6792_p5 = pnand %p6791_p3, %p7067_p10  ;;  %p6798_p2 = scmp.lt.s32.totalorder %s6796_s12, %s6790_s30 }
  0xa7   : > { %5027 = vmatprep.subr.bf16.mxu1 %v6477_v9  ;;  %v6493_v25 = vld [vmem:[#allocation5 + $0x130] sm:$0xff]   ;;  %v6497_v29 = vld [vmem:[#allocation5 + $0x138] sm:$0xff]   ;;  %v298_v34 = vld [vmem:[%s7125_s17] sm:$0xff] }
  0xa8   : > { %v6494_v26 = vld [vmem:[#allocation5 + $0x30] sm:$0xff]   ;;  %v6498_v30 = vld [vmem:[#allocation5 + $0x38] sm:$0xff]   ;;  %v299_v36 = vld [vmem:[%s7125_s17 + $0x8] sm:$0xff]  ;;  %p6793_p7 = pneg %p6792_p5  ;;  %p6799_p1 = por %p6798_p2, %p6797_p12 }
  0xa9   : > { %4892 = vmatpush3.bf16.msra.mxu0 %v6478_v10  ;;  %v6495_v27 = vld [vmem:[#allocation5 + $0xf0] sm:$0xff]   ;;  %v6499_v31 = vld [vmem:[#allocation5 + $0xf8] sm:$0xff]   ;;  %v330_v37 = vpack.c.bf16 %v299_v36, %v298_v34  ;;  %v6500_v38 = vld [vmem:[#allocation5 + $0x80] sm:$0xff]  }
  0xaa   : > { %5028 = vmatpush3.bf16.msra.mxu1 %v6479_v11  ;;  %4893 = vmatprep.subr.bf16.mxu0 %v6480_v12  ;;  %v300_v32 = vld [vmem:[%s7125_s17 + $0x10] sm:$0xff]  ;;  %v301_v33 = vld [vmem:[%s7125_s17 + $0x18] sm:$0xff]  ;;  %v302_v44 = vld [vmem:[%s7125_s17 + $0x20] sm:$0xff]  ;;  %p6800_p13 = pnand %p6799_p1, %p6793_p7 }
  0xab   : > { %5029 = vmatprep.subr.bf16.mxu1 %v6481_v13  ;;  %v7142_v35 = vpack.c.bf16 %v301_v33, %v300_v32  ;;  %1370 = vmatprep.mubr.bf16.mxu1 %v330_v37  ;;  %v350_v41 = vshrl.u32 %v330_v37, 16  ;;  %v7150_v42 = vshll.u32 %v330_v37, 16  ;;  %v303_v45 = vld [vmem:[%s7125_s17 + $0x28] sm:$0xff]  ;;  %vm7154_vm2 = vmand %vm490_vm0, %vm491_vm1  ;;  %v304_v54 = vld [vmem:[%s7125_s17 + $0x30] sm:$0xff] }
  0xac   : > { %v9392_v46 = vsel %vm7154_vm2, 4294967295, %v9391_v46  ;;  %v7160_v50 = vpack.c.bf16 %v303_v45, %v302_v44  ;;  %v6501_v52 = vld [vmem:[#allocation5 + $0x88] sm:$0xff]   ;;  %v305_v55 = vld [vmem:[%s7125_s17 + $0x38] sm:$0xff]  ;;  %v6502_v56 = vld [vmem:[#allocation5 + $0x90] sm:$0xff]  }
  0xad   : > { %4894 = vmatpush3.bf16.msra.mxu0 %v6482_v14  ;;  %823 = vmatprep.mubr.bf16.mxu0 %v7142_v35  ;;  %v347_v39 = vshrl.u32 %v7142_v35, 16  ;;  %v7148_v40 = vshll.u32 %v7142_v35, 16  ;;  %9393 = vst [vmem:[#allocation16_spill] sm:$0xff] %v9392_v46  ;;  %v414_v47 = vrot.slane %v350_v41, 7  ;;  %v6505_v58 = vld [vmem:[#allocation5 + $0x140] sm:$0xff]   ;;  %v7176_v60 = vpack.c.bf16 %v305_v55, %v304_v54  ;;  %v307_v62 = vld [vmem:[%s7125_s17 + $0x48] sm:$0xff]  ;;  %vm7221_vm5 = vmand %vm573_vm3, %vm574_vm4 }
  0xae   : > { %5030 = vmatpush3.bf16.msra.mxu1 %v6483_v15  ;;  %4895 = vmatprep.subr.bf16.mxu0 %v6484_v16  ;;  %v7173_v57 = vshrl.u32 %v7160_v50, 16  ;;  %v306_v61 = vld [vmem:[%s7125_s17 + $0x40] sm:$0xff]  ;;  %v308_v63 = vld [vmem:[%s7125_s17 + $0x50] sm:$0xff]  ;;  %v511_v0 = vrot.slane %v7150_v42, 1  ;;  %v7184_v2 = vshll.u32 %v7160_v50, 16  ;;  %v309_v3 = vld [vmem:[%s7125_s17 + $0x58] sm:$0xff] }
  0xaf   : > { %5031 = vmatprep.subr.bf16.mxu1 %v6485_v17  ;;  %v410_v43 = vrot.slane %v347_v39, 7  ;;  %v417_v49 = vor.u32 %v7150_v42, %v414_v47  ;;  %v509_v59 = vrot.slane %v7148_v40, 1  ;;  %v6507_v4 = vld [vmem:[#allocation5 + $0x148] sm:$0xff]   ;;  %v7187_v6 = vpack.c.bf16 %v307_v62, %v306_v61  ;;  %v310_v7 = vld [vmem:[%s7125_s17 + $0x60] sm:$0xff]  ;;  %v6503_v8 = vld [vmem:[#allocation5 + $0x98] sm:$0xff]  }
  0xb0   : > { %v418_v1 = vrot.slane %v7173_v57, 7  ;;  %v7191_v9 = vshrl.u32 %v7176_v60, 16  ;;  %v311_v10 = vld [vmem:[%s7125_s17 + $0x68] sm:$0xff]  ;;  %v7196_v11 = vpack.c.bf16 %v309_v3, %v308_v63  ;;  %v512_v12 = vor.u32 %v511_v0, %v350_v41  ;;  %v6509_v14 = vld [vmem:[#allocation5 + $0x150] sm:$0xff]   ;;  %v6504_v17 = vld [vmem:[#allocation5 + $0xa0] sm:$0xff]  }
  0xb1   : > { %4896 = vmatpush3.bf16.msra.mxu0 %v6486_v18  ;;  %v413_v48 = vor.u32 %v7148_v40, %v410_v43  ;;  %v494_v53 = vsel %vm7154_vm2, %v350_v41, %v417_v49  ;;  %v510_v5 = vor.u32 %v509_v59, %v347_v39  ;;  %v7201_v15 = vshrl.u32 %v7187_v6, 16  ;;  %v315_v33 = vld [vmem:[%s7125_s17 + $0x88] sm:$0xff]  ;;  %v6512_v34 = vld [vmem:[#allocation5 + $0x160] sm:$0xff]   ;;  %v316_v43 = vld [vmem:[%s7125_s17 + $0x90] sm:$0xff] }
  0xb2   : > { %5032 = vmatpush3.bf16.msra.mxu1 %v6487_v19  ;;  %4897 = vmatprep.subr.bf16.mxu0 %v6488_v20  ;;  %v421_v13 = vor.u32 %v7184_v2, %v418_v1  ;;  %v7203_v16 = vpack.c.bf16 %v311_v10, %v310_v7  ;;  %v422_v18 = vrot.slane %v7191_v9, 7  ;;  %v423_v19 = vshll.u32 %v7176_v60, 16  ;;  %v312_v20 = vld [vmem:[%s7125_s17 + $0x70] sm:$0xff]  ;;  %v6511_v1 = vld [vmem:[#allocation5 + $0xb8] sm:$0xff]   ;;  %v318_v3 = vld [vmem:[%s7125_s17 + $0xa0] sm:$0xff] }
  0xb3   : > { %5033 = vmatprep.subr.bf16.mxu1 %v6489_v21  ;;  %v7164_v51 = vsel %vm7154_vm2, %v347_v39, %v413_v48  ;;  %v6510_v21 = vld [vmem:[#allocation5 + $0x158] sm:$0xff]   ;;  %v7237_v32 = vshll.u32 %v7196_v11, 16  ;;  %v7243_v36 = vsel %vm7221_vm5, %v512_v12, %v7150_v42  ;;  %v6508_v48 = vld [vmem:[#allocation5 + $0xb0] sm:$0xff]  }
  0xb4   : > { %9394 = vst [vmem:[#allocation17_spill] sm:$0xff] %v7203_v16  ;;  %v317_v42 = vld [vmem:[%s7125_s17 + $0x98] sm:$0xff]  ;;  %v515_v45 = vrot.slane %v423_v19, 1 }
  0xb5   : > { %4898 = vmatpush3.bf16.msra.mxu0 %v6490_v22  ;;  %v7209_v22 = vshrl.u32 %v7196_v11, 16  ;;  %v519_v63 = vrot.slane %v7237_v32, 1  ;;  %v7288_v0 = vpack.c.bf16 %v317_v42, %v316_v43 }
  0xb6   : > { %5034 = vmatpush3.bf16.msra.mxu1 %v6491_v23  ;;  %4899 = vmatprep.subr.bf16.mxu0 %v6492_v24  ;;  %v313_v23 = vld [vmem:[%s7125_s17 + $0x78] sm:$0xff]  ;;  %v7215_v24 = vsel %vm7154_vm2, %v7173_v57, %v421_v13  ;;  %v516_v54 = vor.u32 %v515_v45, %v7191_v9 }
  0xb7   : > { %5035 = vmatprep.subr.bf16.mxu1 %v6493_v25  ;;  %v7218_v25 = vshll.u32 %v7187_v6, 16  ;;  %v430_v39 = vrot.slane %v7209_v22, 7  ;;  %v7252_v41 = vpack.c.bf16 %v313_v23, %v312_v20  ;;  %v7324_v23 = vshrl.u32 %v7288_v0, 16 }
  0xb8   : > { %v7284_v61 = vsel %vm7221_vm5, %v516_v54, %v423_v19 }
  0xb9   : > { %4900 = vmatpush3.bf16.msra.mxu0 %v6494_v26  ;;  %v9395_v26 = vmov 0  ;;  %v517_v55 = vrot.slane %v7218_v25, 1 }
  0xba   : > { %5036 = vmatpush3.bf16.msra.mxu1 %v6495_v27  ;;  %4901 = vmatprep.subr.bf16.mxu0 %v6496_v28  ;;  %v9396_v26 = vsel %vm7221_vm5, 4294967295, %v9395_v26  ;;  %v426_v27 = vrot.slane %v7201_v15, 7  ;;  %v7227_v28 = vshrl.u32 %v7203_v16, 16 }
  0xbb   : > { %5037 = vmatprep.subr.bf16.mxu1 %v6497_v29  ;;  %9397 = vst [vmem:[#allocation18_spill] sm:$0xff] %v9396_v26  ;;  %v314_v29 = vld [vmem:[%s7125_s17 + $0x80] sm:$0xff]  ;;  %v518_v62 = vor.u32 %v517_v55, %v7201_v15 }
  0xbc   : > { %v434_v47 = vrot.slane %v7227_v28, 7  ;;  %v7259_v49 = vpack.c.bf16 %v315_v33, %v314_v29  ;;  %v6516_v29 = vld [vmem:[#allocation5 + $0x1c0] sm:$0xff]  }
  0xbd   : > { %4902 = vmatpush3.bf16.msra.mxu0 %v6498_v30  ;;  %v6506_v30 = vld [vmem:[#allocation5 + $0xa8] sm:$0xff]   ;;  %v7297_v7 = vsel %vm7221_vm5, %v518_v62, %v7218_v25 }
  0xbe   : > { %5038 = vmatpush3.bf16.msra.mxu1 %v6499_v31  ;;  %5703 = vmatprep.subr.bf16.mxu0 %v6500_v38  ;;  %v7233_v31 = vsel %vm7221_vm5, %v510_v5, %v7148_v40  ;;  %v7250_v40 = vshll.u32 %v7203_v16, 16  ;;  %v7280_v59 = vshll.u32 %v7259_v49, 16  ;;  %v6514_v5 = vld [vmem:[#allocation5 + $0x170] sm:$0xff]   ;;  %v7304_v10 = vshrl.u32 %v7259_v49, 16  ;;  %v323_v62 = vld [vmem:[%s7125_s17 + $0xc8] sm:$0xff] }
  0xbf   : > { %5751 = vmatprep.subr.bf16.mxu1 %v6505_v58 }
  0xc0   : > { %824 = vmatmul.mubr.bf16.vlgmr.msra.gmra.mrb[0].mxu0 %v7164_v51  ;;  %v525_v13 = vrot.slane %v7280_v59, 1 }
  0xc1   : > { %1371 = vmatmul.mubr.bf16.vlgmr.msra.gmra.mrb[0].mxu1 %v494_v53  ;;  %5704 = vmatpush3.bf16.msra.mxu0 %v6500_v38  ;;  %v425_v38 = vor.u32 %v423_v19, %v422_v18  ;;  %v320_v18 = vld [vmem:[%s7125_s17 + $0xb0] sm:$0xff]  ;;  %v321_v19 = vld [vmem:[%s7125_s17 + $0xb8] sm:$0xff] }
  0xc2   : > { %831 = vmatprep.mubr.bf16.mxu0 %v330_v37  ;;  %1378 = vmatprep.mubr.bf16.mxu1 %v7142_v35  ;;  %v513_v37 = vrot.slane %v7184_v2, 1  ;;  %v7354_v45 = vpack.c.bf16 %v321_v19, %v320_v18 }
  0xc3   : > { %5705 = vmatprep.subr.bf16.mxu0 %v6501_v52  ;;  %5752 = vmatpush3.bf16.msra.mxu1 %v6505_v58  ;;  %v7277_v58 = vshll.u32 %v7252_v41, 16 }
  0xc4   : > { %5753 = vmatprep.subr.bf16.mxu1 %v6507_v4  ;;  %v514_v44 = vor.u32 %v513_v37, %v7173_v57  ;;  %v7274_v57 = vshrl.u32 %v7252_v41, 16  ;;  %v7371_v55 = vshll.u32 %v7354_v45, 16 }
  0xc5   : > { %5706 = vmatpush3.bf16.msra.mxu0 %v6501_v52  ;;  %v6513_v52 = vld [vmem:[#allocation5 + $0x168] sm:$0xff]  }
  0xc6   : > { %5707 = vmatprep.subr.bf16.mxu0 %v6502_v56 }
  0xc7   : > { %5754 = vmatpush3.bf16.msra.mxu1 %v6507_v4  ;;  %v319_v4 = vld [vmem:[%s7125_s17 + $0xa8] sm:$0xff] }
  0xc8   : > { %832 = vmatmul.mubr.bf16.gmra.mrb[4].mxu0 %v494_v53  ;;  %5755 = vmatprep.subr.bf16.mxu1 %v6509_v14  ;;  %v7264_v53 = vsel %vm7221_vm5, %v514_v44, %v7184_v2  ;;  %v521_v2 = vrot.slane %v7250_v40, 1  ;;  %v7338_v37 = vpack.c.bf16 %v319_v4, %v318_v3  ;;  %v433_v3 = vor.u32 %v7237_v32, %v430_v39 }
  0xc9   : > { %1379 = vmatmul.mubr.bf16.gmra.mrb[4].mxu1 %v7164_v51  ;;  %839 = vmatprep.mubr.bf16.mxu0 %v7142_v35 }
  0xca   : > { %1386 = vmatprep.mubr.bf16.mxu1 %v7160_v50  ;;  %5708 = vmatpush3.bf16.msra.mxu0 %v6502_v56  ;;  %v7271_v56 = vsel %vm7154_vm2, %v7191_v9, %v425_v38  ;;  %v523_v9 = vrot.slane %v7277_v58, 1  ;;  %v522_v12 = vor.u32 %v521_v2, %v7227_v28  ;;  %v7352_v44 = vshll.u32 %v7338_v37, 16 }
  0xcb   : > { %5709 = vmatprep.subr.bf16.mxu0 %v6503_v8  ;;  %5756 = vmatpush3.bf16.msra.mxu1 %v6509_v14  ;;  %v429_v14 = vor.u32 %v7218_v25, %v426_v27  ;;  %v526_v27 = vor.u32 %v525_v13, %v7304_v10  ;;  %v7368_v54 = vshrl.u32 %v7338_v37, 16  ;;  %v7399_v39 = vsel %vm7154_vm2, %v7209_v22, %v433_v3 }
  0xcc   : > { %5757 = vmatprep.subr.bf16.mxu1 %v6510_v21  ;;  %v7329_v25 = vsel %vm7221_vm5, %v522_v12, %v7250_v40  ;;  %v529_v2 = vrot.slane %v7352_v44, 1 }
  0xcd   : > { %v7343_v38 = vsel %vm7221_vm5, %v526_v27, %v7280_v59  ;;  %v7348_v43 = vsel %vm7154_vm2, %v7201_v15, %v429_v14  ;;  %v438_v14 = vrot.slane %v7274_v57, 7  ;;  %v326_v27 = vld [vmem:[%s7125_s17 + $0xe0] sm:$0xff] }
  0xce   : > { %5710 = vmatpush3.bf16.msra.mxu0 %v6503_v8  ;;  %v520_v8 = vor.u32 %v519_v63, %v7209_v22  ;;  %v324_v63 = vld [vmem:[%s7125_s17 + $0xd0] sm:$0xff]  ;;  %v530_v4 = vor.u32 %v529_v2, %v7368_v54 }
  0xcf   : > { %5711 = vmatprep.subr.bf16.mxu0 %v6504_v17  ;;  %5758 = vmatpush3.bf16.msra.mxu1 %v6510_v21  ;;  %v524_v21 = vor.u32 %v523_v9, %v7274_v57 }
  0xd0   : > { %840 = vmatmul.mubr.bf16.gmra.mrb[8].mxu0 %v7164_v51  ;;  %5759 = vmatprep.subr.bf16.mxu1 %v6512_v34  ;;  %v7320_v20 = vsel %vm7221_vm5, %v520_v8, %v7237_v32  ;;  %v531_v8 = vrot.slane %v7371_v55, 1  ;;  %v7394_v32 = vsel %vm7221_vm5, %v530_v4, %v7352_v44 }
  0xd1   : > { %1387 = vmatmul.mubr.bf16.gmra.mrb[8].mxu1 %v7215_v24  ;;  %847 = vmatprep.mubr.bf16.mxu0 %v7160_v50  ;;  %v7335_v33 = vsel %vm7221_vm5, %v524_v21, %v7277_v58 }
  0xd2   : > { %1394 = vmatprep.mubr.bf16.mxu1 %v7176_v60  ;;  %5712 = vmatpush3.bf16.msra.mxu0 %v6504_v17  ;;  %v7313_v17 = vshll.u32 %v7288_v0, 16 }
  0xd3   : > { %5713 = vmatprep.subr.bf16.mxu0 %v6506_v30  ;;  %5760 = vmatpush3.bf16.msra.mxu1 %v6512_v34 }
  0xd4   : > { %5761 = vmatprep.subr.bf16.mxu1 %v6513_v52  ;;  %v527_v34 = vrot.slane %v7313_v17, 1 }
  0xd6   : > { %5714 = vmatpush3.bf16.msra.mxu0 %v6506_v30  ;;  %v6515_v30 = vld [vmem:[#allocation5 + $0x178] sm:$0xff]   ;;  %v528_v42 = vor.u32 %v527_v34, %v7324_v23 }
  0xd7   : > { %5715 = vmatprep.subr.bf16.mxu0 %v6508_v48  ;;  %5762 = vmatpush3.bf16.msra.mxu1 %v6513_v52  ;;  %v322_v52 = vld [vmem:[%s7125_s17 + $0xc0] sm:$0xff] }
  0xd8   : > { %848 = vmatmul.mubr.bf16.gmra.mrb[12].mxu0 %v7215_v24  ;;  %5763 = vmatprep.subr.bf16.mxu1 %v6514_v5  ;;  %v7363_v15 = vsel %vm7221_vm5, %v528_v42, %v7313_v17  ;;  %v7387_v9 = vpack.c.bf16 %v323_v62, %v322_v52  ;;  %v437_v42 = vor.u32 %v7250_v40, %v434_v47  ;;  %v328_v52 = vld [vmem:[%s7125_s17 + $0xf0] sm:$0xff] }
  0xd9   : > { %1395 = vmatmul.mubr.bf16.gmra.mrb[12].mxu1 %v7271_v56  ;;  %855 = vmatprep.mubr.bf16.mxu0 %v7176_v60 }
  0xda   : > { %1402 = vmatprep.mubr.bf16.mxu1 %v7187_v6  ;;  %5716 = vmatpush3.bf16.msra.mxu0 %v6508_v48  ;;  %v7356_v48 = vld [vmem:[#allocation5 + $0x200] sm:$0xff]   ;;  %v7404_v18 = vshll.u32 %v7387_v9, 16  ;;  %v7415_v22 = vshrl.u32 %v7387_v9, 16  ;;  %v7444_v4 = vsel %vm7154_vm2, %v7227_v28, %v437_v42  ;;  %v442_v28 = vrot.slane %v7304_v10, 7 }
  0xdb   : > { %5717 = vmatprep.subr.bf16.mxu0 %v6511_v1  ;;  %5764 = vmatpush3.bf16.msra.mxu1 %v6514_v5  ;;  %v7383_v5 = vshrl.u32 %v7354_v45, 16  ;;  %v441_v42 = vor.u32 %v7277_v58, %v438_v14  ;;  %v446_v14 = vrot.slane %v7324_v23, 7 }
  0xdc   : > { %5765 = vmatprep.subr.bf16.mxu1 %v6515_v30  ;;  %v533_v34 = vrot.slane %v7404_v18, 1 }
  0xdd   : > { %v532_v13 = vor.u32 %v531_v8, %v7383_v5 }
  0xde   : > { %5718 = vmatpush3.bf16.msra.mxu0 %v6511_v1  ;;  %v325_v1 = vld [vmem:[%s7125_s17 + $0xd8] sm:$0xff]  ;;  %v534_v62 = vor.u32 %v533_v34, %v7415_v22 }
  0xdf   : > { %5159 = vmatprep.subr.bf16.mxu0 %v6516_v29  ;;  %5766 = vmatpush3.bf16.msra.mxu1 %v6515_v30  ;;  %v7389_v12 = vpack.c.bf16 %v325_v1, %v324_v63  ;;  %v7410_v19 = vsel %vm7221_vm5, %v532_v13, %v7371_v55  ;;  %v327_v30 = vld [vmem:[%s7125_s17 + $0xe8] sm:$0xff]  ;;  %v329_v63 = vld [vmem:[%s7125_s17 + $0xf8] sm:$0xff] }
  0xe0   : > { %856 = vmatmul.mubr.bf16.gmra.mrb[16].mxu0 %v7271_v56  ;;  %5799 = vmatprep.subr.bf16.mxu1 %v7356_v48  ;;  %v7434_v2 = vpack.c.bf16 %v327_v30, %v326_v27  ;;  %v7439_v3 = vsel %vm7221_vm5, %v534_v62, %v7404_v18  ;;  %v7450_v8 = vpack.c.bf16 %v329_v63, %v328_v52 }
  0xe1   : > { %1403 = vmatmul.mubr.bf16.gmra.mrb[16].mxu1 %v7348_v43  ;;  %863 = vmatprep.mubr.bf16.mxu0 %v7187_v6  ;;  %v7418_v21 = vshrl.u32 %v7389_v12, 16  ;;  %v7421_v29 = vshll.u32 %v7389_v12, 16 }
  0xe2   : > { %1410 = vmatprep.mubr.bf16.mxu1 %v7196_v11  ;;  %v7448_v47 = vshll.u32 %v7434_v2, 16  ;;  %v389_v27 = vshrl.u32 %v7434_v2, 16  ;;  %v7463_v30 = vshll.u32 %v7450_v8, 16  ;;  %v392_v62 = vshrl.u32 %v7450_v8, 16 }
  0xe3   : > { %v535_v1 = vrot.slane %v7421_v29, 1 }
  0xe4   : > { %v537_v34 = vrot.slane %v7448_v47, 1  ;;  %v539_v63 = vrot.slane %v7463_v30, 1 }
  0xe5   : > { %v536_v40 = vor.u32 %v535_v1, %v7418_v21 }
  0xe6   : > { %v538_v52 = vor.u32 %v537_v34, %v389_v27  ;;  %v450_v34 = vrot.slane %v7368_v54, 7 }
  0xe7   : > { %v7456_v13 = vsel %vm7221_vm5, %v536_v40, %v7421_v29  ;;  %v7478_v40 = vsel %vm7154_vm2, %v7274_v57, %v441_v42  ;;  %v458_v57 = vrot.slane %v7415_v22, 7  ;;  %v445_v42 = vor.u32 %v7280_v59, %v442_v28 }
  0xe8   : > { %864 = vmatmul.mubr.bf16.gmra.mrb[20].mxu0 %v7348_v43  ;;  %v7473_v1 = vsel %vm7221_vm5, %v538_v52, %v7448_v47  ;;  %v454_v52 = vrot.slane %v7383_v5, 7  ;;  %v453_v59 = vor.u32 %v7352_v44, %v450_v34  ;;  %v466_v28 = vrot.slane %v389_v27, 7 }
  0xe9   : > { %1411 = vmatmul.mubr.bf16.gmra.mrb[20].mxu1 %v7399_v39  ;;  %871 = vmatprep.mubr.bf16.mxu0 %v7196_v11  ;;  %v461_v44 = vor.u32 %v7404_v18, %v458_v57  ;;  %v6529_v57 = vld [vmem:[#allocation5 + $0x210] sm:$0xff]  }
  0xea   : > { %1418 = vmatprep.mubr.bf16.mxu1 %v7203_v16 }
  0xf0   : > { %872 = vmatmul.mubr.bf16.gmra.mrb[24].mxu0 %v7399_v39 }
  0xf1   : > { %1419 = vmatmul.mubr.bf16.gmra.mrb[24].mxu1 %v7444_v4  ;;  %879 = vmatprep.mubr.bf16.mxu0 %v7203_v16  ;;  %v540_v16 = vor.u32 %v539_v63, %v392_v62  ;;  %v449_v63 = vor.u32 %v7313_v17, %v446_v14  ;;  %v457_v17 = vor.u32 %v7371_v55, %v454_v52  ;;  %v462_v55 = vrot.slane %v7418_v21, 7  ;;  %v6527_v52 = vld [vmem:[#allocation5 + $0x208] sm:$0xff]  }
  0xf2   : > { %1426 = vmatprep.mubr.bf16.mxu1 %v7252_v41 }
  0xf3   : > { %v7484_v58 = vsel %vm7221_vm5, %v540_v16, %v7463_v30  ;;  %v7497_v16 = vsel %vm7154_vm2, %v7304_v10, %v445_v42  ;;  %v7507_v26 = vsel %vm7154_vm2, %v7324_v23, %v449_v63  ;;  %v7517_v10 = vsel %vm7154_vm2, %v7368_v54, %v453_v59  ;;  %v6521_v42 = vld [vmem:[#allocation5 + $0x190] sm:$0xff]   ;;  %v6522_v63 = vld [vmem:[#allocation5 + $0x1d8] sm:$0xff]  }
  0xf4   : > { %v7527_v23 = vsel %vm7154_vm2, %v7383_v5, %v457_v17  ;;  %v7537_v54 = vsel %vm7154_vm2, %v7415_v22, %v461_v44  ;;  %v465_v5 = vor.u32 %v7421_v29, %v462_v55  ;;  %v469_v22 = vor.u32 %v7448_v47, %v466_v28  ;;  %v6517_v47 = vld [vmem:[#allocation5 + $0x180] sm:$0xff]   ;;  %v6523_v59 = vld [vmem:[#allocation5 + $0x198] sm:$0xff]   ;;  %v6528_v55 = vld [vmem:[#allocation5 + $0x1e8] sm:$0xff]  }
  0xf5   : > { %v470_v29 = vrot.slane %v392_v62, 7  ;;  %v6533_v17 = vld [vmem:[#allocation5 + $0x220] sm:$0xff]   ;;  %v6530_v28 = vld [vmem:[#allocation5 + $0x1a8] sm:$0xff]  }
  0xf6   : > { %v7548_v18 = vsel %vm7154_vm2, %v7418_v21, %v465_v5  ;;  %v7557_v14 = vsel %vm7154_vm2, %v389_v27, %v469_v22  ;;  %v6518_v27 = vld [vmem:[#allocation5 + $0x1c8] sm:$0xff]   ;;  %v6526_v44 = vld [vmem:[#allocation5 + $0x1a0] sm:$0xff]   ;;  %v6532_v22 = vld [vmem:[#allocation5 + $0x1f0] sm:$0xff]  }
  0xf7   : > { %v473_v21 = vor.u32 %v7463_v30, %v470_v29  ;;  %v6519_v30 = vld [vmem:[#allocation5 + $0x188] sm:$0xff]   ;;  %v6537_v29 = vld [vmem:[#allocation5 + $0x230] sm:$0xff]  }
  0xf8   : > { %880 = vmatmul.mubr.bf16.gmra.mrb[28].mxu0 %v7444_v4  ;;  %v6535_v5 = vld [vmem:[#allocation5 + $0x228] sm:$0xff]  }
  0xf9   : > { %1427 = vmatmul.mubr.bf16.gmra.mrb[28].mxu1 %v7478_v40  ;;  %887 = vmatprep.mubr.bf16.mxu0 %v7252_v41  ;;  %v7566_v34 = vsel %vm7154_vm2, %v392_v62, %v473_v21  ;;  %v6520_v62 = vld [vmem:[#allocation5 + $0x1d0] sm:$0xff]  }
  0xfa   : > { %1434 = vmatprep.mubr.bf16.mxu1 %v7259_v49  ;;  %v6534_v21 = vld [vmem:[#allocation5 + $0x1b0] sm:$0xff]  }
 0x100   : > { %888 = vmatmul.mubr.bf16.gmra.mrb[32].mxu0 %v7478_v40 }
 0x101   : > { %1435 = vmatmul.mubr.bf16.gmra.mrb[32].mxu1 %v7497_v16  ;;  %895 = vmatprep.mubr.bf16.mxu0 %v7259_v49 }
 0x102   : > { %1442 = vmatprep.mubr.bf16.mxu1 %v7288_v0 }
 0x108   : > { %896 = vmatmul.mubr.bf16.gmra.mrb[36].mxu0 %v7497_v16 }
 0x109   : > { %1443 = vmatmul.mubr.bf16.gmra.mrb[36].mxu1 %v7507_v26  ;;  %903 = vmatprep.mubr.bf16.mxu0 %v7288_v0 }
 0x10a   : > { %1450 = vmatprep.mubr.bf16.mxu1 %v7338_v37 }
 0x110   : > { %904 = vmatmul.mubr.bf16.gmra.mrb[40].mxu0 %v7507_v26 }
 0x111   : > { %1451 = vmatmul.mubr.bf16.gmra.mrb[40].mxu1 %v7517_v10  ;;  %911 = vmatprep.mubr.bf16.mxu0 %v7338_v37 }
 0x112   : > { %1458 = vmatprep.mubr.bf16.mxu1 %v7354_v45 }
 0x118   : > { %912 = vmatmul.mubr.bf16.gmra.mrb[44].mxu0 %v7517_v10 }
 0x119   : > { %1459 = vmatmul.mubr.bf16.gmra.mrb[44].mxu1 %v7527_v23  ;;  %919 = vmatprep.mubr.bf16.mxu0 %v7354_v45 }
 0x11a   : > { %1466 = vmatprep.mubr.bf16.mxu1 %v7387_v9 }
 0x120   : > { %920 = vmatmul.mubr.bf16.gmra.mrb[48].mxu0 %v7527_v23 }
 0x121   : > { %1467 = vmatmul.mubr.bf16.gmra.mrb[48].mxu1 %v7537_v54  ;;  %927 = vmatprep.mubr.bf16.mxu0 %v7387_v9 }
 0x122   : > { %1474 = vmatprep.mubr.bf16.mxu1 %v7389_v12 }
 0x128   : > { %928 = vmatmul.mubr.bf16.gmra.mrb[52].mxu0 %v7537_v54 }
 0x129   : > { %1475 = vmatmul.mubr.bf16.gmra.mrb[52].mxu1 %v7548_v18  ;;  %935 = vmatprep.mubr.bf16.mxu0 %v7389_v12 }
 0x12a   : > { %1482 = vmatprep.mubr.bf16.mxu1 %v7434_v2 }
 0x130   : > { %936 = vmatmul.mubr.bf16.gmra.mrb[56].mxu0 %v7548_v18 }
 0x131   : > { %1483 = vmatmul.mubr.bf16.gmra.mrb[56].mxu1 %v7557_v14  ;;  %943 = vmatprep.mubr.bf16.mxu0 %v7434_v2 }
 0x132   : > { %1490 = vmatprep.mubr.bf16.mxu1 %v7450_v8 }
 0x138   : > { %944 = vmatmul.mubr.bf16.gmra.mrb[60].mxu0 %v7557_v14 }
 0x139   : > { %1491 = vmatmul.mubr.bf16.gmra.mrb[60].mxu1 %v7566_v34  ;;  %5719 = vmatprep.mubr.bf16.mxu0 %v7233_v31 }
 0x13a   : > { %5767 = vmatprep.mubr.bf16.mxu1 %v7243_v36 }
 0x140   : > { %5720 = vmatmul.mubr.bf16.vlgmr.msra.gmra.mrb[64].mxu0 %v7243_v36  ;;  %v6531_v36 = vld [vmem:[#allocation5 + $0x218] sm:$0xff]  }
 0x141   : > { %5768 = vmatmul.mubr.bf16.vlgmr.msra.gmra.mrb[64].mxu1 %v7233_v31  ;;  %5160 = vmatpush3.bf16.msra.mxu0 %v6517_v47  ;;  %v6536_v47 = vld [vmem:[#allocation5 + $0x1f8] sm:$0xff]  }
 0x142   : > { %5723 = vmatprep.mubr.bf16.mxu0 %v7233_v31  ;;  %5771 = vmatprep.mubr.bf16.mxu1 %v7264_v53 }
 0x143   : > { %5161 = vmatprep.subr.bf16.mxu0 %v6518_v27  ;;  %5800 = vmatpush3.bf16.msra.mxu1 %v7356_v48  ;;  %v6524_v48 = vld [vmem:[#allocation5 + $0x1e0] sm:$0xff]   ;;  %v6539_v27 = vld [vmem:[#allocation5 + $0x238] sm:$0xff]  }
 0x144   : > { %5801 = vmatprep.subr.bf16.mxu1 %v6527_v52 }
 0x145   : > { %5162 = vmatpush3.bf16.msra.mxu0 %v6519_v30 }
 0x146   : > { %5163 = vmatprep.subr.bf16.mxu0 %v6520_v62 }
 0x147   : > { %5802 = vmatpush3.bf16.msra.mxu1 %v6527_v52  ;;  %v6538_v52 = vld [vmem:[#allocation5 + $0x1b8] sm:$0xff]  }
 0x148   : > { %5724 = vmatmul.mubr.bf16.gmra.mrb[68].mxu0 %v7264_v53  ;;  %5803 = vmatprep.subr.bf16.mxu1 %v6529_v57 }
 0x149   : > { %5772 = vmatmul.mubr.bf16.gmra.mrb[68].mxu1 %v7284_v61  ;;  %5727 = vmatprep.mubr.bf16.mxu0 %v7284_v61 }
 0x14a   : > { %5775 = vmatprep.mubr.bf16.mxu1 %v7297_v7  ;;  %5164 = vmatpush3.bf16.msra.mxu0 %v6521_v42 }
 0x14b   : > { %5165 = vmatprep.subr.bf16.mxu0 %v6522_v63  ;;  %5804 = vmatpush3.bf16.msra.mxu1 %v6529_v57 }
 0x14c   : > { %5805 = vmatprep.subr.bf16.mxu1 %v6531_v36 }
 0x14e   : > { %5166 = vmatpush3.bf16.msra.mxu0 %v6523_v59 }
 0x14f   : > { %5167 = vmatprep.subr.bf16.mxu0 %v6524_v48  ;;  %5806 = vmatpush3.bf16.msra.mxu1 %v6531_v36 }
 0x150   : > { %5728 = vmatmul.mubr.bf16.gmra.mrb[72].mxu0 %v7297_v7  ;;  %5807 = vmatprep.subr.bf16.mxu1 %v6533_v17 }
 0x151   : > { %5776 = vmatmul.mubr.bf16.gmra.mrb[72].mxu1 %v7320_v20  ;;  %5731 = vmatprep.mubr.bf16.mxu0 %v7320_v20 }
 0x152   : > { %5779 = vmatprep.mubr.bf16.mxu1 %v7329_v25  ;;  %5168 = vmatpush3.bf16.msra.mxu0 %v6526_v44 }
 0x153   : > { %5169 = vmatprep.subr.bf16.mxu0 %v6528_v55  ;;  %5808 = vmatpush3.bf16.msra.mxu1 %v6533_v17 }
 0x154   : > { %5809 = vmatprep.subr.bf16.mxu1 %v6535_v5 }
 0x156   : > { %5170 = vmatpush3.bf16.msra.mxu0 %v6530_v28 }
 0x157   : > { %5171 = vmatprep.subr.bf16.mxu0 %v6532_v22  ;;  %5810 = vmatpush3.bf16.msra.mxu1 %v6535_v5 }
 0x158   : > { %5732 = vmatmul.mubr.bf16.gmra.mrb[76].mxu0 %v7329_v25  ;;  %5811 = vmatprep.subr.bf16.mxu1 %v6537_v29 }
 0x159   : > { %5780 = vmatmul.mubr.bf16.gmra.mrb[76].mxu1 %v7335_v33  ;;  %5735 = vmatprep.mubr.bf16.mxu0 %v7335_v33 }
 0x15a   : > { %5783 = vmatprep.mubr.bf16.mxu1 %v7343_v38  ;;  %5172 = vmatpush3.bf16.msra.mxu0 %v6534_v21 }
 0x15b   : > { %5173 = vmatprep.subr.bf16.mxu0 %v6536_v47  ;;  %5812 = vmatpush3.bf16.msra.mxu1 %v6537_v29 }
 0x15c   : > { %5813 = vmatprep.subr.bf16.mxu1 %v6539_v27 }
 0x15e   : > { %5174 = vmatpush3.bf16.msra.mxu0 %v6538_v52 }
 0x15f   : > { %5814 = vmatpush3.bf16.msra.mxu1 %v6539_v27 }
 0x160   : > { %5736 = vmatmul.mubr.bf16.gmra.mrb[80].mxu0 %v7343_v38 }
 0x161   : > { %5784 = vmatmul.mubr.bf16.gmra.mrb[80].mxu1 %v7363_v15  ;;  %5739 = vmatprep.mubr.bf16.mxu0 %v7363_v15 }
 0x162   : > { %5787 = vmatprep.mubr.bf16.mxu1 %v7394_v32 }
 0x168   : > { %5740 = vmatmul.mubr.bf16.gmra.mrb[84].mxu0 %v7394_v32 }
 0x169   : > { %5788 = vmatmul.mubr.bf16.gmra.mrb[84].mxu1 %v7410_v19  ;;  %5743 = vmatprep.mubr.bf16.mxu0 %v7410_v19 }
 0x16a   : > { %5791 = vmatprep.mubr.bf16.mxu1 %v7439_v3 }
 0x170   : > { %5744 = vmatmul.mubr.bf16.gmra.mrb[88].mxu0 %v7439_v3 }
 0x171   : > { %5792 = vmatmul.mubr.bf16.gmra.mrb[88].mxu1 %v7456_v13  ;;  %5747 = vmatprep.mubr.bf16.mxu0 %v7456_v13 }
 0x172   : > { %5795 = vmatprep.mubr.bf16.mxu1 %v7473_v1 }
 0x178   : > { %5748 = vmatmul.mubr.bf16.gmra.mrb[92].mxu0 %v7473_v1 }
 0x179   : > { %5796 = vmatmul.mubr.bf16.gmra.mrb[92].mxu1 %v7484_v58  ;;  %1917 = vmatprep.mubr.bf16.mxu0 %v7142_v35 }
 0x17a   : > { %5815 = vmatprep.mubr.bf16.mxu1 %v7233_v31 }
 0x180   : > { %1918 = vmatmul.mubr.bf16.vlgmr.msra.gmra.mrb[96].mxu0 %v7164_v51 }
 0x181   : > { %5816 = vmatmul.mubr.bf16.vlgmr.msra.gmra.mrb[64].mxu1 %v7264_v53  ;;  %1925 = vmatprep.mubr.bf16.mxu0 %v7160_v50 }
 0x182   : > { %5819 = vmatprep.mubr.bf16.mxu1 %v7284_v61 }
 0x188   : > { %1926 = vmatmul.mubr.bf16.gmra.mrb[100].mxu0 %v7215_v24 }
 0x189   : > { %5820 = vmatmul.mubr.bf16.gmra.mrb[68].mxu1 %v7297_v7  ;;  %1933 = vmatprep.mubr.bf16.mxu0 %v7176_v60 }
 0x18a   : > { %5823 = vmatprep.mubr.bf16.mxu1 %v7320_v20 }
 0x190   : > { %1934 = vmatmul.mubr.bf16.gmra.mrb[104].mxu0 %v7271_v56 }
 0x191   : > { %5824 = vmatmul.mubr.bf16.gmra.mrb[72].mxu1 %v7329_v25  ;;  %1941 = vmatprep.mubr.bf16.mxu0 %v7187_v6 }
 0x192   : > { %5827 = vmatprep.mubr.bf16.mxu1 %v7335_v33 }
 0x193   : > { %v4903_v35 = vpop.f32.mrb[0].mxu0 }
 0x194   : > { %v4904_v50 = vpop.f32.mrb[1].mxu0  ;;  %v5039_v51 = vpop.f32.mrb[0].mxu1 }
 0x195   : > { %v7617_v31 = vadd.f32 %v4904_v50, %v4903_v35  ;;  %v4906_v24 = vpop.f32.mrb[2].mxu0  ;;  %v5040_v53 = vpop.f32.mrb[1].mxu1 }
 0x196   : > { %v4907_v61 = vpop.f32.mrb[3].mxu0  ;;  %v7619_v7 = vadd.f32 %v5040_v53, %v5039_v51  ;;  %v5042_v60 = vpop.f32.mrb[2].mxu1 }
 0x197   : > { %v7621_v20 = vadd.f32 %v4907_v61, %v4906_v24  ;;  %v5043_v56 = vpop.f32.mrb[3].mxu1 }
 0x198   : > { %1942 = vmatmul.mubr.bf16.gmra.mrb[108].mxu0 %v7348_v43  ;;  %v7624_v25 = vadd.f32 %v5043_v56, %v5042_v60 }
 0x199   : > { %5828 = vmatmul.mubr.bf16.gmra.mrb[76].mxu1 %v7343_v38  ;;  %1949 = vmatprep.mubr.bf16.mxu0 %v7196_v11  ;;  %v9398_v11 = vld [vmem:[#allocation17_spill] sm:$0xff] }
 0x19a   : > { %5831 = vmatprep.mubr.bf16.mxu1 %v7363_v15 }
 0x19b   : > { %v4909_v6 = vpop.f32.mrb[4].mxu0 }
 0x19c   : > { %v4910_v33 = vpop.f32.mrb[5].mxu0  ;;  %v5045_v30 = vpop.f32.mrb[4].mxu1 }
 0x19d   : > { %v7629_v62 = vadd.f32 %v4910_v33, %v4909_v6  ;;  %v4912_v57 = vpop.f32.mrb[6].mxu0  ;;  %v5046_v42 = vpop.f32.mrb[5].mxu1 }
 0x19e   : > { %v4913_v63 = vpop.f32.mrb[7].mxu0  ;;  %v7631_v36 = vadd.f32 %v5046_v42, %v5045_v30  ;;  %v5048_v59 = vpop.f32.mrb[6].mxu1 }
 0x19f   : > { %v7633_v43 = vadd.f32 %v4913_v63, %v4912_v57  ;;  %v5049_v48 = vpop.f32.mrb[7].mxu1 }
 0x1a0   : > { %1950 = vmatmul.mubr.bf16.gmra.mrb[112].mxu0 %v7399_v39  ;;  %v7636_v38 = vadd.f32 %v5049_v48, %v5048_v59 }
 0x1a1   : > { %5832 = vmatmul.mubr.bf16.gmra.mrb[80].mxu1 %v7394_v32  ;;  %1957 = vmatprep.mubr.bf16.mxu0 %v9398_v11 }
 0x1a2   : > { %5835 = vmatprep.mubr.bf16.mxu1 %v7410_v19 }
 0x1a3   : > { %v4915_v15 = vpop.f32.mrb[8].mxu0 }
 0x1a4   : > { %v4916_v17 = vpop.f32.mrb[9].mxu0  ;;  %v5051_v44 = vpop.f32.mrb[8].mxu1 }
 0x1a5   : > { %v7641_v55 = vadd.f32 %v4916_v17, %v4915_v15  ;;  %v4918_v5 = vpop.f32.mrb[10].mxu0  ;;  %v5052_v28 = vpop.f32.mrb[9].mxu1 }
 0x1a6   : > { %v4919_v22 = vpop.f32.mrb[11].mxu0  ;;  %v7643_v29 = vadd.f32 %v5052_v28, %v5051_v44  ;;  %v5054_v21 = vpop.f32.mrb[10].mxu1 }
 0x1a7   : > { %v7645_v39 = vadd.f32 %v4919_v22, %v4918_v5  ;;  %v5055_v47 = vpop.f32.mrb[11].mxu1 }
 0x1a8   : > { %1958 = vmatmul.mubr.bf16.gmra.mrb[116].mxu0 %v7444_v4  ;;  %v7648_v32 = vadd.f32 %v5055_v47, %v5054_v21 }
 0x1a9   : > { %5836 = vmatmul.mubr.bf16.gmra.mrb[84].mxu1 %v7439_v3  ;;  %1965 = vmatprep.mubr.bf16.mxu0 %v7252_v41 }
 0x1aa   : > { %5839 = vmatprep.mubr.bf16.mxu1 %v7456_v13 }
 0x1ab   : > { %v4921_v19 = vpop.f32.mrb[12].mxu0 }
 0x1ac   : > { %v4922_v27 = vpop.f32.mrb[13].mxu0  ;;  %v5057_v52 = vpop.f32.mrb[12].mxu1 }
 0x1ad   : > { %v7653_v35 = vadd.f32 %v4922_v27, %v4921_v19  ;;  %v4924_v50 = vpop.f32.mrb[14].mxu0  ;;  %v5058_v51 = vpop.f32.mrb[13].mxu1 }
 0x1ae   : > { %v4925_v24 = vpop.f32.mrb[15].mxu0  ;;  %v7655_v53 = vadd.f32 %v5058_v51, %v5057_v52  ;;  %v5060_v61 = vpop.f32.mrb[14].mxu1 }
 0x1af   : > { %v7657_v4 = vadd.f32 %v4925_v24, %v4924_v50  ;;  %v5061_v60 = vpop.f32.mrb[15].mxu1 }
 0x1b0   : > { %1966 = vmatmul.mubr.bf16.gmra.mrb[120].mxu0 %v7478_v40  ;;  %v7660_v3 = vadd.f32 %v5061_v60, %v5060_v61 }
 0x1b1   : > { %5840 = vmatmul.mubr.bf16.gmra.mrb[88].mxu1 %v7473_v1  ;;  %1973 = vmatprep.mubr.bf16.mxu0 %v7259_v49 }
 0x1b2   : > { %5843 = vmatprep.mubr.bf16.mxu1 %v7484_v58 }
 0x1b3   : > { %v4927_v41 = vpop.f32.mrb[16].mxu0 }
 0x1b4   : > { %v4928_v13 = vpop.f32.mrb[17].mxu0  ;;  %v5063_v56 = vpop.f32.mrb[16].mxu1 }
 0x1b5   : > { %v7665_v6 = vadd.f32 %v4928_v13, %v4927_v41  ;;  %v4930_v33 = vpop.f32.mrb[18].mxu0  ;;  %v5064_v30 = vpop.f32.mrb[17].mxu1 }
 0x1b6   : > { %v4931_v57 = vpop.f32.mrb[19].mxu0  ;;  %v7667_v42 = vadd.f32 %v5064_v30, %v5063_v56  ;;  %v5066_v63 = vpop.f32.mrb[18].mxu1 }
 0x1b7   : > { %v7669_v40 = vadd.f32 %v4931_v57, %v4930_v33  ;;  %v5067_v59 = vpop.f32.mrb[19].mxu1 }
 0x1b8   : > { %1974 = vmatmul.mubr.bf16.gmra.mrb[124].mxu0 %v7497_v16  ;;  %v7672_v48 = vadd.f32 %v5067_v59, %v5066_v63 }
 0x1b9   : > { %5844 = vmatmul.mubr.bf16.gmra.mrb[92].mxu1 %v7473_v1  ;;  %1981 = vmatprep.mubr.bf16.mxu0 %v7288_v0 }
 0x1bb   : > { %v4933_v49 = vpop.f32.mrb[20].mxu0 }
 0x1bc   : > { %v4934_v58 = vpop.f32.mrb[21].mxu0  ;;  %v5069_v11 = vpop.f32.mrb[20].mxu1 }
 0x1bd   : > { %v7676_v15 = vadd.f32 %v4934_v58, %v4933_v49  ;;  %v4936_v17 = vpop.f32.mrb[22].mxu0  ;;  %v5070_v44 = vpop.f32.mrb[21].mxu1 }
 0x1be   : > { %v4937_v5 = vpop.f32.mrb[23].mxu0  ;;  %v7678_v28 = vadd.f32 %v5070_v44, %v5069_v11  ;;  %v5072_v22 = vpop.f32.mrb[22].mxu1 }
 0x1bf   : > { %v7680_v21 = vadd.f32 %v4937_v5, %v4936_v17  ;;  %v5073_v16 = vpop.f32.mrb[23].mxu1 }
 0x1c0   : > { %1982 = vmatmul.mubr.bf16.gmra.mrb[128].mxu0 %v7507_v26  ;;  %v7683_v47 = vadd.f32 %v5073_v16, %v5072_v22 }
 0x1c1   : > { %1989 = vmatprep.mubr.bf16.mxu0 %v7338_v37 }
 0x1c3   : > { %v4939_v0 = vpop.f32.mrb[24].mxu0 }
 0x1c4   : > { %v4940_v1 = vpop.f32.mrb[25].mxu0  ;;  %v5075_v19 = vpop.f32.mrb[24].mxu1 }
 0x1c5   : > { %v7686_v27 = vadd.f32 %v4940_v1, %v4939_v0  ;;  %v4942_v52 = vpop.f32.mrb[26].mxu0  ;;  %v5076_v50 = vpop.f32.mrb[25].mxu1 }
 0x1c6   : > { %v4943_v51 = vpop.f32.mrb[27].mxu0  ;;  %v7688_v24 = vadd.f32 %v5076_v50, %v5075_v19  ;;  %v5078_v61 = vpop.f32.mrb[26].mxu1 }
 0x1c7   : > { %v7690_v60 = vadd.f32 %v4943_v51, %v4942_v52  ;;  %v5079_v41 = vpop.f32.mrb[27].mxu1 }
 0x1c8   : > { %1990 = vmatmul.mubr.bf16.gmra.mrb[132].mxu0 %v7517_v10  ;;  %v7693_v26 = vadd.f32 %v5079_v41, %v5078_v61 }
 0x1c9   : > { %1997 = vmatprep.mubr.bf16.mxu0 %v7354_v45 }
 0x1cb   : > { %v4945_v37 = vpop.f32.mrb[28].mxu0 }
 0x1cc   : > { %v4946_v13 = vpop.f32.mrb[29].mxu0  ;;  %v5081_v56 = vpop.f32.mrb[28].mxu1 }
 0x1cd   : > { %v7696_v33 = vadd.f32 %v4946_v13, %v4945_v37  ;;  %v4948_v30 = vpop.f32.mrb[30].mxu0  ;;  %v5082_v57 = vpop.f32.mrb[29].mxu1 }
 0x1ce   : > { %v4949_v63 = vpop.f32.mrb[31].mxu0  ;;  %v7698_v59 = vadd.f32 %v5082_v57, %v5081_v56  ;;  %v5084_v49 = vpop.f32.mrb[30].mxu1 }
 0x1cf   : > { %v7700_v58 = vadd.f32 %v4949_v63, %v4948_v30  ;;  %v5085_v11 = vpop.f32.mrb[31].mxu1 }
 0x1d0   : > { %1998 = vmatmul.mubr.bf16.gmra.mrb[136].mxu0 %v7527_v23  ;;  %v7703_v10 = vadd.f32 %v5085_v11, %v5084_v49 }
 0x1d1   : > { %2005 = vmatprep.mubr.bf16.mxu0 %v7387_v9 }
 0x1d3   : > { %v4951_v45 = vpop.f32.mrb[32].mxu0 }
 0x1d4   : > { %v4952_v17 = vpop.f32.mrb[33].mxu0  ;;  %v5087_v44 = vpop.f32.mrb[32].mxu1 }
 0x1d5   : > { %v7706_v5 = vadd.f32 %v4952_v17, %v4951_v45  ;;  %v4954_v22 = vpop.f32.mrb[34].mxu0  ;;  %v5088_v16 = vpop.f32.mrb[33].mxu1 }
 0x1d6   : > { %v4955_v0 = vpop.f32.mrb[35].mxu0  ;;  %v7708_v1 = vadd.f32 %v5088_v16, %v5087_v44  ;;  %v5090_v19 = vpop.f32.mrb[34].mxu1 }
 0x1d7   : > { %v7710_v52 = vadd.f32 %v4955_v0, %v4954_v22  ;;  %v5091_v50 = vpop.f32.mrb[35].mxu1 }
 0x1d8   : > { %2006 = vmatmul.mubr.bf16.gmra.mrb[140].mxu0 %v7537_v54  ;;  %v7713_v23 = vadd.f32 %v5091_v50, %v5090_v19 }
 0x1d9   : > { %2013 = vmatprep.mubr.bf16.mxu0 %v7389_v12 }
 0x1db   : > { %v4957_v9 = vpop.f32.mrb[36].mxu0 }
 0x1dc   : > { %v4958_v51 = vpop.f32.mrb[37].mxu0  ;;  %v5093_v61 = vpop.f32.mrb[36].mxu1 }
 0x1dd   : > { %v7716_v41 = vadd.f32 %v4958_v51, %v4957_v9  ;;  %v4960_v37 = vpop.f32.mrb[38].mxu0  ;;  %v5094_v13 = vpop.f32.mrb[37].mxu1 }
 0x1de   : > { %v4961_v56 = vpop.f32.mrb[39].mxu0  ;;  %v7718_v30 = vadd.f32 %v5094_v13, %v5093_v61  ;;  %v5096_v57 = vpop.f32.mrb[38].mxu1 }
 0x1df   : > { %v7720_v63 = vadd.f32 %v4961_v56, %v4960_v37  ;;  %v5097_v49 = vpop.f32.mrb[39].mxu1 }
 0x1e0   : > { %2014 = vmatmul.mubr.bf16.gmra.mrb[144].mxu0 %v7548_v18  ;;  %v7723_v54 = vadd.f32 %v5097_v49, %v5096_v57 }
 0x1e1   : > { %2021 = vmatprep.mubr.bf16.mxu0 %v7434_v2 }
 0x1e3   : > { %v4963_v12 = vpop.f32.mrb[40].mxu0 }
 0x1e4   : > { %v4964_v11 = vpop.f32.mrb[41].mxu0  ;;  %v5099_v45 = vpop.f32.mrb[40].mxu1 }
 0x1e5   : > { %v7726_v17 = vadd.f32 %v4964_v11, %v4963_v12  ;;  %v4966_v44 = vpop.f32.mrb[42].mxu0  ;;  %v5100_v22 = vpop.f32.mrb[41].mxu1 }
 0x1e6   : > { %v4967_v16 = vpop.f32.mrb[43].mxu0  ;;  %v7728_v0 = vadd.f32 %v5100_v22, %v5099_v45  ;;  %v5102_v19 = vpop.f32.mrb[42].mxu1 }
 0x1e7   : > { %v7730_v50 = vadd.f32 %v4967_v16, %v4966_v44  ;;  %v5103_v9 = vpop.f32.mrb[43].mxu1 }
 0x1e8   : > { %9399 = vst [vmem:[#allocation17_spill] sm:$0xff] %v7728_v0  ;;  %2022 = vmatmul.mubr.bf16.gmra.mrb[148].mxu0 %v7557_v14  ;;  %v7733_v18 = vadd.f32 %v5103_v9, %v5102_v19 }
 0x1e9   : > { %2029 = vmatprep.mubr.bf16.mxu0 %v7450_v8 }
 0x1ea   : > { %9400 = vst [vmem:[#allocation19_spill] sm:$0xff] %v7733_v18 }
 0x1eb   : > { %v4969_v51 = vpop.f32.mrb[44].mxu0 }
 0x1ec   : > { %v4970_v61 = vpop.f32.mrb[45].mxu0  ;;  %v5105_v37 = vpop.f32.mrb[44].mxu1 }
 0x1ed   : > { %v7736_v13 = vadd.f32 %v4970_v61, %v4969_v51  ;;  %v4972_v56 = vpop.f32.mrb[46].mxu0  ;;  %v5106_v57 = vpop.f32.mrb[45].mxu1 }
 0x1ee   : > { %v4973_v49 = vpop.f32.mrb[47].mxu0  ;;  %v7738_v12 = vadd.f32 %v5106_v57, %v5105_v37  ;;  %v5108_v11 = vpop.f32.mrb[46].mxu1 }
 0x1ef   : > { %v7740_v45 = vadd.f32 %v4973_v49, %v4972_v56  ;;  %v5109_v44 = vpop.f32.mrb[47].mxu1 }
 0x1f0   : > { %2030 = vmatmul.mubr.bf16.gmra.mrb[152].mxu0 %v7566_v34  ;;  %v7743_v22 = vadd.f32 %v5109_v44, %v5108_v11 }
 0x1f1   : > { %2037 = vmatprep.mubr.bf16.mxu0 %v7434_v2 }
 0x1f2   : > { %9401 = vst [vmem:[#allocation20_spill] sm:$0xff] %v7743_v22 }
 0x1f3   : > { %v4975_v8 = vpop.f32.mrb[48].mxu0 }
 0x1f4   : > { %v4976_v16 = vpop.f32.mrb[49].mxu0  ;;  %v5111_v19 = vpop.f32.mrb[48].mxu1 }
 0x1f5   : > { %v7746_v9 = vadd.f32 %v4976_v16, %v4975_v8  ;;  %v4978_v51 = vpop.f32.mrb[50].mxu0  ;;  %v5112_v61 = vpop.f32.mrb[49].mxu1 }
 0x1f6   : > { %v4979_v46 = vpop.f32.mrb[51].mxu0  ;;  %v7748_v37 = vadd.f32 %v5112_v61, %v5111_v19  ;;  %v5114_v57 = vpop.f32.mrb[50].mxu1 }
 0x1f7   : > { %9402 = vst [vmem:[#allocation21_spill] sm:$0xff] %v7746_v9  ;;  %v7750_v56 = vadd.f32 %v4979_v46, %v4978_v51  ;;  %v5115_v49 = vpop.f32.mrb[51].mxu1 }
 0x1f8   : > { %9403 = vst [vmem:[#allocation22_spill] sm:$0xff] %v7748_v37  ;;  %2038 = vmatmul.mubr.bf16.gmra.mrb[156].mxu0 %v7557_v14  ;;  %v7753_v34 = vadd.f32 %v5115_v49, %v5114_v57 }
 0x1f9   : > { %9404 = vst [vmem:[#allocation23_spill] sm:$0xff] %v7750_v56 }
 0x1fa   : > { %9405 = vst [vmem:[#allocation24_spill] sm:$0xff] %v7753_v34 }
 0x1fb   : > { %v4981_v11 = vpop.f32.mrb[52].mxu0 }
 0x1fc   : > { %v4982_v2 = vpop.f32.mrb[53].mxu0  ;;  %v5117_v44 = vpop.f32.mrb[52].mxu1 }
 0x1fd   : > { %v7755_v18 = vadd.f32 %v4982_v2, %v4981_v11  ;;  %v4984_v8 = vpop.f32.mrb[54].mxu0  ;;  %v5118_v16 = vpop.f32.mrb[53].mxu1 }
 0x1fe   : > { %v4985_v9 = vpop.f32.mrb[55].mxu0  ;;  %v7757_v22 = vadd.f32 %v5118_v16, %v5117_v44  ;;  %v5120_v19 = vpop.f32.mrb[54].mxu1 }
 0x1ff   : > { %9406 = vst [vmem:[#allocation25_spill] sm:$0xff] %v7755_v18  ;;  %v7759_v61 = vadd.f32 %v4985_v9, %v4984_v8  ;;  %v5121_v46 = vpop.f32.mrb[55].mxu1 }
 0x200   : > { %9407 = vst [vmem:[#allocation26_spill] sm:$0xff] %v7757_v22  ;;  %v7761_v51 = vadd.f32 %v5121_v46, %v5120_v19 }
 0x201   : > { %9408 = vst [vmem:[#allocation27_spill] sm:$0xff] %v7759_v61 }
 0x202   : > { %9409 = vst [vmem:[#allocation28_spill] sm:$0xff] %v7761_v51 }
 0x203   : > { %v4987_v37 = vpop.f32.mrb[56].mxu0 }
 0x204   : > { %v4988_v14 = vpop.f32.mrb[57].mxu0  ;;  %v5123_v57 = vpop.f32.mrb[56].mxu1 }
 0x205   : > { %v7763_v49 = vadd.f32 %v4988_v14, %v4987_v37  ;;  %v4990_v34 = vpop.f32.mrb[58].mxu0  ;;  %v5124_v56 = vpop.f32.mrb[57].mxu1 }
 0x206   : > { %v4991_v11 = vpop.f32.mrb[59].mxu0  ;;  %v7765_v2 = vadd.f32 %v5124_v56, %v5123_v57  ;;  %v5126_v18 = vpop.f32.mrb[58].mxu1  ;;  %v7777_v57 = vld [vmem:[#allocation7] ss:$0 sm:$0xff] }
 0x207   : > { %9410 = vst [vmem:[#allocation29_spill] sm:$0xff] %v7763_v49  ;;  %v7767_v0 = vadd.f32 %v4991_v11, %v4990_v34  ;;  %v5127_v44 = vpop.f32.mrb[59].mxu1 }
 0x208   : > { %v7769_v16 = vadd.f32 %v5127_v44, %v5126_v18  ;;  %v5991_v18 = vadd.f32 %v7629_v62, %v7777_v57  ;;  %v5996_v44 = vadd.f32 %v7617_v31, %v7777_v57 }
 0x20a   : > { %9411 = vst [vmem:[#allocation30_spill] sm:$0xff] %v7769_v16 }
 0x20b   : > { %v4993_v9 = vpop.f32.mrb[60].mxu0 }
 0x20c   : > { %v4994_v8 = vpop.f32.mrb[61].mxu0  ;;  %v5129_v19 = vpop.f32.mrb[60].mxu1 }
 0x20d   : > { %v7771_v46 = vadd.f32 %v4994_v8, %v4993_v9  ;;  %v4996_v51 = vpop.f32.mrb[62].mxu0  ;;  %v5130_v22 = vpop.f32.mrb[61].mxu1 }
 0x20e   : > { %v4997_v37 = vpop.f32.mrb[63].mxu0  ;;  %v7773_v14 = vadd.f32 %v5130_v22, %v5129_v19  ;;  %v5132_v49 = vpop.f32.mrb[62].mxu1  ;;  %v6001_v22 = vadd.f32 %v7633_v43, %v7777_v57  ;;  %v6011_v43 = vadd.f32 %v7653_v35, %v7777_v57 }
 0x20f   : > { %v7775_v61 = vadd.f32 %v4997_v37, %v4996_v51  ;;  %v5133_v56 = vpop.f32.mrb[63].mxu1  ;;  %v6006_v37 = vadd.f32 %v7621_v20, %v7777_v57  ;;  %v6016_v20 = vadd.f32 %v7641_v55, %v7777_v57 }
 0x210   : > { %v7779_v34 = vadd.f32 %v5133_v56, %v5132_v49 }
 0x212   : > { %9412 = vst [vmem:[#allocation31_spill] sm:$0xff] %v7779_v34 }
 0x213   : > { %v5721_v11 = vpop.f32.mrb[64].mxu0 }
 0x214   : > { %v5992_v9 = vadd.f32 %v5991_v18, %v5721_v11  ;;  %v986_v8 = vpop.f32.mrb[65].mxu0 }
 0x215   : > { %v5997_v19 = vadd.f32 %v5996_v44, %v986_v8  ;;  %v5722_v51 = vpop.f32.mrb[66].mxu0 }
 0x216   : > { %v7790_v49 = vadd.f32 %v5992_v9, %v7631_v36  ;;  %v6002_v56 = vadd.f32 %v6001_v22, %v5722_v51  ;;  %v989_v16 = vpop.f32.mrb[67].mxu0 }
 0x217   : > { %v7793_v62 = vadd.f32 %v5997_v19, %v7619_v7  ;;  %v6007_v34 = vadd.f32 %v6006_v37, %v989_v16  ;;  %v6021_v7 = vadd.f32 %v7657_v4, %v7777_v57  ;;  %v6031_v4 = vadd.f32 %v7676_v15, %v7777_v57 }
 0x218   : > { %v7796_v31 = vadd.f32 %v6002_v56, %v7636_v38  ;;  %v6026_v38 = vadd.f32 %v7645_v39, %v7777_v57  ;;  %v6036_v39 = vadd.f32 %v7665_v6, %v7777_v57 }
 0x219   : > { %v7799_v18 = vadd.f32 %v6007_v34, %v7624_v25 }
 0x21b   : > { %v5725_v11 = vpop.f32.mrb[68].mxu0 }
 0x21c   : > { %v6012_v36 = vadd.f32 %v6011_v43, %v5725_v11  ;;  %v1002_v44 = vpop.f32.mrb[69].mxu0 }
 0x21d   : > { %v6017_v9 = vadd.f32 %v6016_v20, %v1002_v44  ;;  %v5726_v16 = vpop.f32.mrb[70].mxu0 }
 0x21e   : > { %v7810_v25 = vadd.f32 %v6012_v36, %v7655_v53  ;;  %v6022_v34 = vadd.f32 %v6021_v7, %v5726_v16  ;;  %v1005_v8 = vpop.f32.mrb[71].mxu0 }
 0x21f   : > { %v7813_v35 = vadd.f32 %v6017_v9, %v7643_v29  ;;  %v6027_v22 = vadd.f32 %v6026_v38, %v1005_v8  ;;  %v6041_v29 = vadd.f32 %v7680_v21, %v7777_v57  ;;  %v6051_v21 = vadd.f32 %v7696_v33, %v7777_v57 }
 0x220   : > { %v7816_v55 = vadd.f32 %v6022_v34, %v7660_v3  ;;  %v6046_v3 = vadd.f32 %v7669_v40, %v7777_v57  ;;  %v6056_v40 = vadd.f32 %v7686_v27, %v7777_v57 }
 0x221   : > { %v7819_v19 = vadd.f32 %v6027_v22, %v7648_v32 }
 0x223   : > { %v5729_v51 = vpop.f32.mrb[72].mxu0 }
 0x224   : > { %v6032_v53 = vadd.f32 %v6031_v4, %v5729_v51  ;;  %v1018_v37 = vpop.f32.mrb[73].mxu0 }
 0x225   : > { %v6037_v56 = vadd.f32 %v6036_v39, %v1018_v37  ;;  %v5730_v43 = vpop.f32.mrb[74].mxu0 }
 0x226   : > { %v7830_v32 = vadd.f32 %v6032_v53, %v7678_v28  ;;  %v6042_v11 = vadd.f32 %v6041_v29, %v5730_v43  ;;  %v1021_v20 = vpop.f32.mrb[75].mxu0 }
 0x227   : > { %v7833_v15 = vadd.f32 %v6037_v56, %v7667_v42  ;;  %v6047_v36 = vadd.f32 %v6046_v3, %v1021_v20  ;;  %v6061_v42 = vadd.f32 %v7700_v58, %v7777_v57  ;;  %v6071_v58 = vadd.f32 %v7716_v41, %v7777_v57 }
 0x228   : > { %v7836_v6 = vadd.f32 %v6042_v11, %v7683_v47  ;;  %v6066_v47 = vadd.f32 %v7690_v60, %v7777_v57  ;;  %v6076_v60 = vadd.f32 %v7706_v5, %v7777_v57 }
 0x229   : > { %v7839_v44 = vadd.f32 %v6047_v36, %v7672_v48 }
 0x22b   : > { %v5733_v7 = vpop.f32.mrb[76].mxu0 }
 0x22c   : > { %v6052_v28 = vadd.f32 %v6051_v21, %v5733_v7  ;;  %v1034_v9 = vpop.f32.mrb[77].mxu0 }
 0x22d   : > { %v6057_v16 = vadd.f32 %v6056_v40, %v1034_v9  ;;  %v5734_v38 = vpop.f32.mrb[78].mxu0 }
 0x22e   : > { %v7850_v48 = vadd.f32 %v6052_v28, %v7698_v59  ;;  %v6062_v34 = vadd.f32 %v6061_v42, %v5734_v38  ;;  %v1037_v8 = vpop.f32.mrb[79].mxu0 }
 0x22f   : > { %v7853_v33 = vadd.f32 %v6057_v16, %v7688_v24  ;;  %v6067_v22 = vadd.f32 %v6066_v47, %v1037_v8  ;;  %v6081_v24 = vadd.f32 %v7720_v63, %v7777_v57  ;;  %v6091_v63 = vadd.f32 %v7736_v13, %v7777_v57  ;;  %v9413_v13 = vld [vmem:[#allocation17_spill] sm:$0xff]  ;;  %v9415_v16 = vld [vmem:[#allocation19_spill] sm:$0xff] }
 0x230   : > { %v7856_v27 = vadd.f32 %v6062_v34, %v7703_v10  ;;  %v6086_v10 = vadd.f32 %v7710_v52, %v7777_v57  ;;  %v6096_v52 = vadd.f32 %v7726_v17, %v7777_v57  ;;  %v9414_v17 = vld [vmem:[#allocation20_spill] sm:$0xff] }
 0x231   : > { %v7859_v4 = vadd.f32 %v6067_v22, %v7693_v26 }
 0x233   : > { %v5737_v51 = vpop.f32.mrb[80].mxu0 }
 0x234   : > { %v6072_v59 = vadd.f32 %v6071_v58, %v5737_v51  ;;  %v1050_v39 = vpop.f32.mrb[81].mxu0  ;;  %v9418_v58 = vld [vmem:[#allocation27_spill] sm:$0xff] }
 0x235   : > { %v6077_v53 = vadd.f32 %v6076_v60, %v1050_v39  ;;  %v5738_v37 = vpop.f32.mrb[82].mxu0  ;;  %v6121_v51 = vadd.f32 %v9418_v58, %v7777_v57  ;;  %v9419_v39 = vld [vmem:[#allocation23_spill] sm:$0xff] }
 0x236   : > { %v7870_v26 = vadd.f32 %v6072_v59, %v7718_v30  ;;  %v6082_v29 = vadd.f32 %v6081_v24, %v5738_v37  ;;  %v1053_v56 = vpop.f32.mrb[83].mxu0  ;;  %v6126_v24 = vadd.f32 %v9419_v39, %v7777_v57  ;;  %v9425_v58 = vld [vmem:[#allocation31_spill] sm:$0xff] }
 0x237   : > { %v7873_v41 = vadd.f32 %v6077_v53, %v7708_v1  ;;  %v6087_v43 = vadd.f32 %v6086_v10, %v1053_v56  ;;  %v6101_v1 = vadd.f32 %v7740_v45, %v7777_v57  ;;  %v9416_v45 = vld [vmem:[#allocation25_spill] sm:$0xff]  ;;  %v9420_v53 = vld [vmem:[#allocation26_spill] sm:$0xff] }
 0x238   : > { %v7876_v5 = vadd.f32 %v6082_v29, %v7723_v54  ;;  %v6106_v54 = vadd.f32 %v7730_v50, %v7777_v57  ;;  %v6111_v47 = vadd.f32 %v9416_v45, %v7777_v57  ;;  %v9417_v50 = vld [vmem:[#allocation21_spill] sm:$0xff]  ;;  %v9421_v56 = vld [vmem:[#allocation22_spill] sm:$0xff]  ;;  %v6540_v45 = vld [vmem:[#allocation8 + $0x40] sm:$0xff]  }
 0x239   : > { %v7879_v3 = vadd.f32 %v6087_v43, %v7713_v23  ;;  %5295 = vmatprep.subr.bf16.mxu0 %v6540_v45 }
 0x23b   : > { %v5741_v11 = vpop.f32.mrb[84].mxu0 }
 0x23c   : > { %v6092_v30 = vadd.f32 %v6091_v63, %v5741_v11  ;;  %v1066_v20 = vpop.f32.mrb[85].mxu0  ;;  %v9422_v11 = vld [vmem:[#allocation28_spill] sm:$0xff] }
 0x23d   : > { %v6097_v36 = vadd.f32 %v6096_v52, %v1066_v20  ;;  %v5742_v21 = vpop.f32.mrb[86].mxu0 }
 0x23e   : > { %v7890_v23 = vadd.f32 %v6092_v30, %v7738_v12  ;;  %v6102_v7 = vadd.f32 %v6101_v1, %v5742_v21  ;;  %v1069_v40 = vpop.f32.mrb[87].mxu0  ;;  %v6116_v12 = vadd.f32 %v9417_v50, %v7777_v57  ;;  %v9423_v30 = vld [vmem:[#allocation24_spill] sm:$0xff]  ;;  %v6131_v1 = vadd.f32 %v7771_v46, %v7777_v57  ;;  %v9424_v21 = vld [vmem:[#allocation29_spill] sm:$0xff] }
 0x23f   : > { %v7893_v28 = vadd.f32 %v6097_v36, %v9413_v13  ;;  %v6107_v9 = vadd.f32 %v6106_v54, %v1069_v40  ;;  %v6136_v54 = vadd.f32 %v9424_v21, %v7777_v57  ;;  %v6141_v13 = vadd.f32 %v7775_v61, %v7777_v57 }
 0x240   : > { %v7896_v42 = vadd.f32 %v6102_v7, %v9414_v17 }
 0x241   : > { %v7899_v38 = vadd.f32 %v6107_v9, %v9415_v16  ;;  %v6146_v16 = vadd.f32 %v7767_v0, %v7777_v57 }
 0x243   : > { %v5745_v34 = vpop.f32.mrb[88].mxu0 }
 0x244   : > { %v6112_v8 = vadd.f32 %v6111_v47, %v5745_v34  ;;  %v1082_v22 = vpop.f32.mrb[89].mxu0  ;;  %v6541_v47 = vld [vmem:[#allocation8] sm:$0xff]  }
 0x245   : > { %v6117_v60 = vadd.f32 %v6116_v12, %v1082_v22  ;;  %v5746_v59 = vpop.f32.mrb[90].mxu0  ;;  %v6542_v22 = vld [vmem:[#allocation8 + $0x80] sm:$0xff]   ;;  %5296 = vmatpush3.bf16.msra.mxu0 %v6541_v47 }
 0x246   : > { %v7910_v37 = vadd.f32 %v6112_v8, %v9420_v53  ;;  %v6122_v10 = vadd.f32 %v6121_v51, %v5746_v59  ;;  %v1085_v29 = vpop.f32.mrb[91].mxu0  ;;  %v9426_v51 = vld [vmem:[#allocation30_spill] sm:$0xff]  ;;  %5847 = vmatprep.subr.bf16.mxu1 %v6542_v22 }
 0x247   : > { %v7913_v43 = vadd.f32 %v6117_v60, %v9421_v56  ;;  %v6127_v63 = vadd.f32 %v6126_v24, %v1085_v29  ;;  %5848 = vmatpush3.bf16.msra.mxu1 %v6542_v22 }
 0x248   : > { %v7916_v52 = vadd.f32 %v6122_v10, %v9422_v11 }
 0x249   : > { %v7919_v20 = vadd.f32 %v6127_v63, %v9423_v30 }
 0x24b   : > { %v5749_v36 = vpop.f32.mrb[92].mxu0 }
 0x24c   : > { %v6132_v7 = vadd.f32 %v6131_v1, %v5749_v36  ;;  %v1098_v40 = vpop.f32.mrb[93].mxu0 }
 0x24d   : > { %v6137_v9 = vadd.f32 %v6136_v54, %v1098_v40  ;;  %v5750_v17 = vpop.f32.mrb[94].mxu0 }
 0x24e   : > { %v7930_v34 = vadd.f32 %v6132_v7, %v7773_v14  ;;  %v6142_v46 = vadd.f32 %v6141_v13, %v5750_v17  ;;  %v1101_v50 = vpop.f32.mrb[95].mxu0 }
 0x24f   : > { %v7933_v12 = vadd.f32 %v6137_v9, %v7765_v2  ;;  %v6147_v8 = vadd.f32 %v6146_v16, %v1101_v50 }
 0x250   : > { %v7936_v61 = vadd.f32 %v6142_v46, %v9425_v58 }
 0x251   : > { %v7939_v60 = vadd.f32 %v6147_v8, %v9426_v51 }
 0x253   : > { %v5175_v0 = vpop.f32.mrb[96].mxu0 }
 0x254   : > { %v5817_v14 = vpop.f32.mrb[64].mxu1  ;;  %v5176_v57 = vpop.f32.mrb[97].mxu0 }
 0x255   : > { %v5177_v59 = vadd.f32 %v5176_v57, %v5175_v0  ;;  %v2080_v39 = vpop.f32.mrb[65].mxu1  ;;  %v5178_v24 = vpop.f32.mrb[98].mxu0 }
 0x256   : > { %v5818_v2 = vpop.f32.mrb[66].mxu1  ;;  %v5179_v53 = vpop.f32.mrb[99].mxu0 }
 0x257   : > { %v5999_v10 = vadd.f32 %v7793_v62, %v5177_v59  ;;  %v5180_v29 = vadd.f32 %v5179_v53, %v5178_v24  ;;  %v2083_v56 = vpop.f32.mrb[67].mxu1 }
 0x259   : > { %v7942_v63 = vadd.f32 %v5999_v10, %v2080_v39  ;;  %v6009_v11 = vadd.f32 %v7799_v18, %v5180_v29 }
 0x25b   : > { %v7945_v30 = vadd.f32 %v6009_v11, %v2083_v56  ;;  %v5181_v1 = vpop.f32.mrb[100].mxu0 }
 0x25c   : > { %v5821_v36 = vpop.f32.mrb[68].mxu1  ;;  %v5182_v21 = vpop.f32.mrb[101].mxu0 }
 0x25d   : > { %v5183_v54 = vadd.f32 %v5182_v21, %v5181_v1  ;;  %v2096_v7 = vpop.f32.mrb[69].mxu1  ;;  %v5184_v40 = vpop.f32.mrb[102].mxu0 }
 0x25e   : > { %v5822_v13 = vpop.f32.mrb[70].mxu1  ;;  %v5185_v9 = vpop.f32.mrb[103].mxu0 }
 0x25f   : > { %v5994_v17 = vadd.f32 %v7790_v49, %v5183_v54  ;;  %v5186_v16 = vadd.f32 %v5185_v9, %v5184_v40  ;;  %v2099_v62 = vpop.f32.mrb[71].mxu1 }
 0x261   : > { %v7948_v45 = vadd.f32 %v5994_v17, %v5817_v14  ;;  %v6004_v47 = vadd.f32 %v7796_v31, %v5186_v16  ;;  %v6543_v17 = vld [vmem:[#allocation8 + $0x88] sm:$0xff]   ;;  %v2276_v16 = vmul.f32 %v7942_v63, %v7942_v63 }
 0x262   : > { %5849 = vmatprep.subr.bf16.mxu1 %v6543_v17 }
 0x263   : > { %v7951_v46 = vadd.f32 %v6004_v47, %v5818_v2  ;;  %v5187_v18 = vpop.f32.mrb[104].mxu0  ;;  %5850 = vmatpush3.bf16.msra.mxu1 %v6543_v17 }
 0x264   : > { %v7953_v50 = vpop.f32.mrb[72].mxu1  ;;  %v5188_v8 = vpop.f32.mrb[105].mxu0 }
 0x265   : > { %v5189_v22 = vadd.f32 %v5188_v8, %v5187_v18  ;;  %v2112_v58 = vpop.f32.mrb[73].mxu1  ;;  %v5190_v51 = vpop.f32.mrb[106].mxu0 }
 0x266   : > { %v7955_v0 = vpop.f32.mrb[74].mxu1  ;;  %v5191_v57 = vpop.f32.mrb[107].mxu0 }
 0x267   : > { %v6019_v49 = vadd.f32 %v7813_v35, %v5189_v22  ;;  %v5192_v59 = vadd.f32 %v5191_v57, %v5190_v51  ;;  %v2115_v39 = vpop.f32.mrb[75].mxu1 }
 0x269   : > { %v7958_v14 = vadd.f32 %v6019_v49, %v2096_v7  ;;  %v6029_v31 = vadd.f32 %v7819_v19, %v5192_v59  ;;  %v2277_v19 = vmul.f32 %v7945_v30, %v7945_v30 }
 0x26b   : > { %v7961_v24 = vadd.f32 %v6029_v31, %v2099_v62  ;;  %v5193_v2 = vpop.f32.mrb[108].mxu0  ;;  %v2278_v62 = vmul.f32 %v7948_v45, %v7948_v45  ;;  %v2308_v8 = vadd.f32 %v2277_v19, %v2276_v16  ;;  %v2279_v31 = vmul.f32 %v7951_v46, %v7951_v46 }
 0x26c   : > { %v7963_v53 = vpop.f32.mrb[76].mxu1  ;;  %v5194_v10 = vpop.f32.mrb[109].mxu0 }
 0x26d   : > { %v5195_v29 = vadd.f32 %v5194_v10, %v5193_v2  ;;  %v7965_v56 = vpop.f32.mrb[77].mxu1  ;;  %v5196_v11 = vpop.f32.mrb[110].mxu0  ;;  %v2309_v59 = vadd.f32 %v2308_v8, %v2278_v62  ;;  %v6544_v10 = vld [vmem:[#allocation8 + $0x48] sm:$0xff]   ;;  %v6548_v62 = vld [vmem:[#allocation8 + $0x50] sm:$0xff]  }
 0x26e   : > { %v7967_v1 = vpop.f32.mrb[78].mxu1  ;;  %v5197_v21 = vpop.f32.mrb[111].mxu0  ;;  %5297 = vmatprep.subr.bf16.mxu0 %v6544_v10  ;;  %v6546_v8 = vld [vmem:[#allocation8 + $0x90] sm:$0xff]  }
 0x26f   : > { %v6014_v35 = vadd.f32 %v7810_v25, %v5195_v29  ;;  %v5198_v54 = vadd.f32 %v5197_v21, %v5196_v11  ;;  %v7970_v7 = vpop.f32.mrb[79].mxu1  ;;  %v2239_v25 = vadd.f32 %v7945_v30, %v7942_v63  ;;  %v2310_v16 = vadd.f32 %v2309_v59, %v2279_v31  ;;  %5851 = vmatprep.subr.bf16.mxu1 %v6546_v8 }
 0x270   : > { %5852 = vmatpush3.bf16.msra.mxu1 %v6546_v8 }
 0x271   : > { %v7974_v40 = vadd.f32 %v6014_v35, %v5821_v36  ;;  %v6024_v9 = vadd.f32 %v7816_v55, %v5198_v54  ;;  %v2240_v55 = vadd.f32 %v7948_v45, %v2239_v25  ;;  %v6545_v35 = vld [vmem:[#allocation8 + $0x8] sm:$0xff]   ;;  %v2280_v54 = vmul.f32 %v7958_v14, %v7958_v14 }
 0x272   : > { %5298 = vmatpush3.bf16.msra.mxu0 %v6545_v35 }
 0x273   : > { %9427 = vst [vmem:[#allocation17_spill] sm:$0xff] %v7974_v40  ;;  %v7983_v47 = vadd.f32 %v6024_v9, %v5822_v13  ;;  %v5199_v18 = vpop.f32.mrb[112].mxu0  ;;  %v2241_v19 = vadd.f32 %v7951_v46, %v2240_v55  ;;  %5299 = vmatprep.subr.bf16.mxu0 %v6548_v62 }
 0x274   : > { %v7985_v22 = vpop.f32.mrb[80].mxu1  ;;  %v5200_v36 = vpop.f32.mrb[113].mxu0 }
 0x275   : > { %9428 = vst [vmem:[#allocation20_spill] sm:$0xff] %v7983_v47  ;;  %v5201_v51 = vadd.f32 %v5200_v36, %v5199_v18  ;;  %v7988_v57 = vpop.f32.mrb[81].mxu1  ;;  %v5202_v49 = vpop.f32.mrb[114].mxu0  ;;  %v2242_v25 = vadd.f32 %v7958_v14, %v2241_v19  ;;  %v6549_v36 = vld [vmem:[#allocation8 + $0x10] sm:$0xff]  }
 0x276   : > { %v7992_v2 = vpop.f32.mrb[82].mxu1  ;;  %v5203_v13 = vpop.f32.mrb[115].mxu0  ;;  %5300 = vmatpush3.bf16.msra.mxu0 %v6549_v36 }
 0x277   : > { %v6039_v29 = vadd.f32 %v7833_v15, %v5201_v51  ;;  %v5204_v11 = vadd.f32 %v5203_v13, %v5202_v49  ;;  %v7995_v21 = vpop.f32.mrb[83].mxu1  ;;  %v2311_v51 = vadd.f32 %v2310_v16, %v2280_v54  ;;  %v2281_v49 = vmul.f32 %v7961_v24, %v7961_v24  ;;  %v6553_v16 = vld [vmem:[#allocation8 + $0x18] sm:$0xff]  }
 0x279   : > { %v8000_v9 = vadd.f32 %v6039_v29, %v2112_v58  ;;  %v6049_v17 = vadd.f32 %v7839_v44, %v5204_v11  ;;  %v6552_v29 = vld [vmem:[#allocation8 + $0x58] sm:$0xff]   ;;  %v2243_v11 = vadd.f32 %v7961_v24, %v2242_v25  ;;  %v2312_v62 = vadd.f32 %v2311_v51, %v2281_v49  ;;  %v6550_v49 = vld [vmem:[#allocation8 + $0xa0] sm:$0xff]  }
 0x27a   : > { %5301 = vmatprep.subr.bf16.mxu0 %v6552_v29  ;;  %v2283_v25 = vmul.f32 %v7983_v47, %v7983_v47 }
 0x27b   : > { %9429 = vst [vmem:[#allocation19_spill] sm:$0xff] %v8000_v9  ;;  %v8004_v15 = vadd.f32 %v6049_v17, %v2115_v39  ;;  %v5205_v18 = vpop.f32.mrb[116].mxu0  ;;  %v2282_v39 = vmul.f32 %v7974_v40, %v7974_v40  ;;  %v6547_v17 = vld [vmem:[#allocation8 + $0x98] sm:$0xff]   ;;  %5302 = vmatpush3.bf16.msra.mxu0 %v6553_v16  ;;  %v6557_v16 = vld [vmem:[#allocation8 + $0x68] sm:$0xff]  }
 0x27c   : > { %v8008_v13 = vpop.f32.mrb[84].mxu1  ;;  %v5206_v58 = vpop.f32.mrb[117].mxu0  ;;  %5853 = vmatprep.subr.bf16.mxu1 %v6547_v17 }
 0x27d   : > { %9430 = vst [vmem:[#allocation25_spill] sm:$0xff] %v8004_v15  ;;  %v5207_v55 = vadd.f32 %v5206_v58, %v5205_v18  ;;  %v8010_v44 = vpop.f32.mrb[85].mxu1  ;;  %v5208_v59 = vpop.f32.mrb[118].mxu0  ;;  %v2244_v18 = vadd.f32 %v7974_v40, %v2243_v11  ;;  %v2313_v36 = vadd.f32 %v2312_v62, %v2282_v39  ;;  %5854 = vmatpush3.bf16.msra.mxu1 %v6547_v17 }
 0x27e   : > { %v8014_v31 = vpop.f32.mrb[86].mxu1  ;;  %v5209_v10 = vpop.f32.mrb[119].mxu0  ;;  %5855 = vmatprep.subr.bf16.mxu1 %v6550_v49 }
 0x27f   : > { %v6034_v35 = vadd.f32 %v7830_v32, %v5207_v55  ;;  %v5210_v54 = vadd.f32 %v5209_v10, %v5208_v59  ;;  %v8018_v19 = vpop.f32.mrb[87].mxu1  ;;  %v6554_v32 = vld [vmem:[#allocation8 + $0x60] sm:$0xff]   ;;  %v2245_v39 = vadd.f32 %v7983_v47, %v2244_v18  ;;  %v6551_v18 = vld [vmem:[#allocation8 + $0xa8] sm:$0xff]   ;;  %v2285_v47 = vmul.f32 %v8004_v15, %v8004_v15 }
 0x280   : > { %v6555_v59 = vld [vmem:[#allocation8 + $0x20] sm:$0xff]   ;;  %5303 = vmatprep.subr.bf16.mxu0 %v6554_v32 }
 0x281   : > { %v8022_v58 = vadd.f32 %v6034_v35, %v7953_v50  ;;  %v6044_v8 = vadd.f32 %v7836_v6, %v5210_v54  ;;  %v2284_v50 = vmul.f32 %v8000_v9, %v8000_v9  ;;  %v2314_v54 = vadd.f32 %v2313_v36, %v2283_v25  ;;  %5856 = vmatpush3.bf16.msra.mxu1 %v6550_v49 }
 0x282   : > { %5304 = vmatpush3.bf16.msra.mxu0 %v6555_v59  ;;  %v2246_v62 = vadd.f32 %v8000_v9, %v2245_v39  ;;  %5857 = vmatprep.subr.bf16.mxu1 %v6551_v18 }
 0x283   : > { %v8028_v55 = vadd.f32 %v6044_v8, %v7955_v0  ;;  %v5211_v51 = vpop.f32.mrb[120].mxu0  ;;  %5305 = vmatprep.subr.bf16.mxu0 %v6557_v16  ;;  %v2286_v49 = vmul.f32 %v8022_v58, %v8022_v58 }
 0x284   : > { %v8032_v10 = vpop.f32.mrb[88].mxu1  ;;  %v5212_v6 = vpop.f32.mrb[121].mxu0  ;;  %v2247_v59 = vadd.f32 %v8004_v15, %v2246_v62  ;;  %v6563_v15 = vld [vmem:[#allocation8 + $0x38] sm:$0xff]  }
 0x285   : > { %v5213_v29 = vadd.f32 %v5212_v6, %v5211_v51  ;;  %v8035_v11 = vpop.f32.mrb[89].mxu1  ;;  %v5214_v35 = vpop.f32.mrb[122].mxu0  ;;  %v6558_v51 = vld [vmem:[#allocation8 + $0x28] sm:$0xff]   ;;  %v2315_v6 = vadd.f32 %v2314_v54, %v2284_v50  ;;  %5858 = vmatpush3.bf16.msra.mxu1 %v6551_v18  ;;  %v6561_v54 = vld [vmem:[#allocation8 + $0xb8] sm:$0xff]  }
 0x286   : > { %v8037_v0 = vpop.f32.mrb[90].mxu1  ;;  %v5215_v17 = vpop.f32.mrb[123].mxu0  ;;  %5306 = vmatpush3.bf16.msra.mxu0 %v6558_v51  ;;  %v2248_v16 = vadd.f32 %v8022_v58, %v2247_v59 }
 0x287   : > { %v6059_v8 = vadd.f32 %v7853_v33, %v5213_v29  ;;  %v5216_v40 = vadd.f32 %v5215_v17, %v5214_v35  ;;  %v8041_v32 = vpop.f32.mrb[91].mxu1  ;;  %v6559_v33 = vld [vmem:[#allocation8 + $0x70] sm:$0xff]  }
 0x288   : > { %v6556_v29 = vld [vmem:[#allocation8 + $0xb0] sm:$0xff]   ;;  %5307 = vmatprep.subr.bf16.mxu0 %v6559_v33  ;;  %v2249_v59 = vadd.f32 %v8028_v55, %v2248_v16 }
 0x289   : > { %v8046_v36 = vadd.f32 %v6059_v8, %v7965_v56  ;;  %v6069_v25 = vadd.f32 %v7859_v4, %v5216_v40  ;;  %v6560_v35 = vld [vmem:[#allocation8 + $0x30] sm:$0xff]   ;;  %v2316_v56 = vadd.f32 %v2315_v6, %v2285_v47  ;;  %v6562_v40 = vld [vmem:[#allocation8 + $0x78] sm:$0xff]   ;;  %5859 = vmatprep.subr.bf16.mxu1 %v6556_v29  ;;  %v2287_v47 = vmul.f32 %v8028_v55, %v8028_v55 }
 0x28a   : > { %5860 = vmatpush3.bf16.msra.mxu1 %v6556_v29  ;;  %5308 = vmatpush3.bf16.msra.mxu0 %v6560_v35 }
 0x28b   : > { %v8053_v50 = vadd.f32 %v6069_v25, %v7970_v7  ;;  %v5217_v39 = vpop.f32.mrb[124].mxu0  ;;  %v2317_v62 = vadd.f32 %v2316_v56, %v2286_v49  ;;  %5861 = vmatprep.subr.bf16.mxu1 %v6561_v54  ;;  %5309 = vmatprep.subr.bf16.mxu0 %v6562_v40  ;;  %v2288_v49 = vmul.f32 %v8046_v36, %v8046_v36 }
 0x28c   : > { %v8055_v17 = vpop.f32.mrb[92].mxu1  ;;  %v5218_v4 = vpop.f32.mrb[125].mxu0 }
 0x28d   : > { %v5219_v8 = vadd.f32 %v5218_v4, %v5217_v39  ;;  %v8058_v18 = vpop.f32.mrb[93].mxu1  ;;  %v5220_v51 = vpop.f32.mrb[126].mxu0  ;;  %v2318_v35 = vadd.f32 %v2317_v62, %v2287_v47  ;;  %v2289_v16 = vmul.f32 %v8053_v50, %v8053_v50 }
 0x28e   : > { %v8060_v7 = vpop.f32.mrb[94].mxu1  ;;  %v5221_v25 = vpop.f32.mrb[127].mxu0  ;;  %5862 = vmatpush3.bf16.msra.mxu1 %v6561_v54  ;;  %5310 = vmatpush3.bf16.msra.mxu0 %v6563_v15 }
 0x28f   : > { %v6054_v6 = vadd.f32 %v7850_v48, %v5219_v8  ;;  %v5222_v33 = vadd.f32 %v5221_v25, %v5220_v51  ;;  %v8065_v9 = vpop.f32.mrb[95].mxu1  ;;  %v2250_v48 = vadd.f32 %v8046_v36, %v2249_v59  ;;  %v2319_v8 = vadd.f32 %v2318_v35, %v2288_v49 }
 0x291   : > { %v8071_v39 = vadd.f32 %v6054_v6, %v7963_v53  ;;  %v6064_v29 = vadd.f32 %v7856_v27, %v5222_v33  ;;  %v8080_v53 = vld [vmem:[#allocation8 + $0x140] sm:$0xff]   ;;  %v2251_v27 = vadd.f32 %v8053_v50, %v2250_v48  ;;  %v2320_v62 = vadd.f32 %v2319_v8, %v2289_v16 }
 0x292   : > { %5895 = vmatprep.subr.bf16.mxu1 %v8080_v53 }
 0x293   : > { %v8076_v56 = vadd.f32 %v6064_v29, %v7967_v1  ;;  %v5223_v4 = vpop.f32.mrb[128].mxu0  ;;  %v2290_v15 = vmul.f32 %v8071_v39, %v8071_v39  ;;  %v2252_v47 = vadd.f32 %v8071_v39, %v2251_v27 }
 0x294   : > { %v5224_v40 = vpop.f32.mrb[129].mxu0 }
 0x295   : > { %v5225_v51 = vadd.f32 %v5224_v40, %v5223_v4  ;;  %v5226_v25 = vpop.f32.mrb[130].mxu0  ;;  %v2321_v49 = vadd.f32 %v2320_v62, %v2290_v15  ;;  %v2291_v29 = vmul.f32 %v8076_v56, %v8076_v56  ;;  %v2253_v4 = vadd.f32 %v8076_v56, %v2252_v47 }
 0x296   : > { %v5227_v6 = vpop.f32.mrb[131].mxu0 }
 0x297   : > { %v6079_v54 = vadd.f32 %v7873_v41, %v5225_v51  ;;  %v5228_v1 = vadd.f32 %v5227_v6, %v5226_v25  ;;  %v2322_v51 = vadd.f32 %v2321_v49, %v2291_v29 }
 0x299   : > { %v8089_v33 = vadd.f32 %v6079_v54, %v7988_v57  ;;  %v6089_v59 = vadd.f32 %v7879_v3, %v5228_v1 }
 0x29b   : > { %v8095_v35 = vadd.f32 %v6089_v59, %v7995_v21  ;;  %v5229_v48 = vpop.f32.mrb[132].mxu0  ;;  %v2292_v40 = vmul.f32 %v8089_v33, %v8089_v33  ;;  %v2254_v3 = vadd.f32 %v8089_v33, %v2253_v4 }
 0x29c   : > { %v5230_v41 = vpop.f32.mrb[133].mxu0 }
 0x29d   : > { %v5231_v8 = vadd.f32 %v5230_v41, %v5229_v48  ;;  %v5232_v16 = vpop.f32.mrb[134].mxu0  ;;  %v2323_v27 = vadd.f32 %v2322_v51, %v2292_v40  ;;  %v2293_v21 = vmul.f32 %v8095_v35, %v8095_v35  ;;  %v2255_v1 = vadd.f32 %v8095_v35, %v2254_v3 }
 0x29e   : > { %v5233_v57 = vpop.f32.mrb[135].mxu0 }
 0x29f   : > { %v6074_v25 = vadd.f32 %v7870_v26, %v5231_v8  ;;  %v5234_v6 = vadd.f32 %v5233_v57, %v5232_v16  ;;  %v2324_v49 = vadd.f32 %v2323_v27, %v2293_v21 }
 0x2a1   : > { %v8105_v15 = vadd.f32 %v6074_v25, %v7985_v22  ;;  %v6084_v54 = vadd.f32 %v7876_v5, %v5234_v6 }
 0x2a3   : > { %v2294_v62 = vmul.f32 %v8105_v15, %v8105_v15  ;;  %v8112_v47 = vadd.f32 %v6084_v54, %v7992_v2  ;;  %v5235_v59 = vpop.f32.mrb[136].mxu0  ;;  %v2256_v29 = vadd.f32 %v8105_v15, %v2255_v1 }
 0x2a4   : > { %v5236_v26 = vpop.f32.mrb[137].mxu0 }
 0x2a5   : > { %v5237_v48 = vadd.f32 %v5236_v26, %v5235_v59  ;;  %v5238_v41 = vpop.f32.mrb[138].mxu0  ;;  %v2325_v22 = vadd.f32 %v2324_v49, %v2294_v62  ;;  %v2295_v5 = vmul.f32 %v8112_v47, %v8112_v47  ;;  %v2257_v16 = vadd.f32 %v8112_v47, %v2256_v29 }
 0x2a6   : > { %v5239_v4 = vpop.f32.mrb[139].mxu0 }
 0x2a7   : > { %v6099_v40 = vadd.f32 %v7893_v28, %v5237_v48  ;;  %v5240_v8 = vadd.f32 %v5239_v4, %v5238_v41  ;;  %v2326_v51 = vadd.f32 %v2325_v22, %v2295_v5 }
 0x2a9   : > { %v8120_v2 = vadd.f32 %v6099_v40, %v8010_v44  ;;  %v6109_v57 = vadd.f32 %v7899_v38, %v5240_v8 }
 0x2ab   : > { %v2258_v3 = vadd.f32 %v8120_v2, %v2257_v16  ;;  %v2296_v25 = vmul.f32 %v8120_v2, %v8120_v2  ;;  %v8127_v6 = vadd.f32 %v6109_v57, %v8018_v19  ;;  %v5241_v27 = vpop.f32.mrb[140].mxu0 }
 0x2ac   : > { %v5242_v21 = vpop.f32.mrb[141].mxu0 }
 0x2ad   : > { %v2327_v28 = vadd.f32 %v2326_v51, %v2296_v25  ;;  %v2259_v54 = vadd.f32 %v8127_v6, %v2258_v3  ;;  %v2297_v44 = vmul.f32 %v8127_v6, %v8127_v6  ;;  %v5243_v1 = vadd.f32 %v5242_v21, %v5241_v27  ;;  %v5244_v62 = vpop.f32.mrb[142].mxu0 }
 0x2ae   : > { %v5245_v38 = vpop.f32.mrb[143].mxu0 }
 0x2af   : > { %v2328_v59 = vadd.f32 %v2327_v28, %v2297_v44  ;;  %v6094_v26 = vadd.f32 %v7890_v23, %v5243_v1  ;;  %v5246_v49 = vadd.f32 %v5245_v38, %v5244_v62 }
 0x2b1   : > { %v8134_v29 = vadd.f32 %v6094_v26, %v8008_v13  ;;  %v6104_v19 = vadd.f32 %v7896_v42, %v5246_v49 }
 0x2b3   : > { %v2260_v48 = vadd.f32 %v8134_v29, %v2259_v54  ;;  %v2298_v41 = vmul.f32 %v8134_v29, %v8134_v29  ;;  %v8141_v4 = vadd.f32 %v6104_v19, %v8014_v31  ;;  %v5247_v22 = vpop.f32.mrb[144].mxu0 }
 0x2b4   : > { %v5248_v5 = vpop.f32.mrb[145].mxu0 }
 0x2b5   : > { %v2329_v40 = vadd.f32 %v2328_v59, %v2298_v41  ;;  %v2261_v8 = vadd.f32 %v8141_v4, %v2260_v48  ;;  %v2299_v23 = vmul.f32 %v8141_v4, %v8141_v4  ;;  %v5249_v13 = vadd.f32 %v5248_v5, %v5247_v22  ;;  %v5250_v16 = vpop.f32.mrb[146].mxu0 }
 0x2b6   : > { %v5251_v57 = vpop.f32.mrb[147].mxu0 }
 0x2b7   : > { %v2330_v42 = vadd.f32 %v2329_v40, %v2299_v23  ;;  %v6119_v51 = vadd.f32 %v7913_v43, %v5249_v13  ;;  %v5252_v3 = vadd.f32 %v5251_v57, %v5250_v16 }
 0x2b9   : > { %v8148_v25 = vadd.f32 %v6119_v51, %v8035_v11  ;;  %v6129_v31 = vadd.f32 %v7919_v20, %v5252_v3 }
 0x2bb   : > { %v2262_v27 = vadd.f32 %v8148_v25, %v2261_v8  ;;  %v2300_v21 = vmul.f32 %v8148_v25, %v8148_v25  ;;  %v8155_v28 = vadd.f32 %v6129_v31, %v8041_v32  ;;  %v5253_v54 = vpop.f32.mrb[148].mxu0 }
 0x2bc   : > { %v5254_v44 = vpop.f32.mrb[149].mxu0 }
 0x2bd   : > { %v2331_v1 = vadd.f32 %v2330_v42, %v2300_v21  ;;  %v2263_v62 = vadd.f32 %v8155_v28, %v2262_v27  ;;  %v2301_v43 = vmul.f32 %v8155_v28, %v8155_v28  ;;  %v5255_v11 = vadd.f32 %v5254_v44, %v5253_v54  ;;  %v5256_v38 = vpop.f32.mrb[150].mxu0 }
 0x2be   : > { %v5257_v59 = vpop.f32.mrb[151].mxu0 }
 0x2bf   : > { %v2332_v20 = vadd.f32 %v2331_v1, %v2301_v43  ;;  %v6114_v26 = vadd.f32 %v7910_v37, %v5255_v11  ;;  %v5258_v49 = vadd.f32 %v5257_v59, %v5256_v38 }
 0x2c1   : > { %v8162_v19 = vadd.f32 %v6114_v26, %v8032_v10  ;;  %v6124_v32 = vadd.f32 %v7916_v52, %v5258_v49 }
 0x2c3   : > { %v2264_v48 = vadd.f32 %v8162_v19, %v2263_v62  ;;  %v2302_v41 = vmul.f32 %v8162_v19, %v8162_v19  ;;  %v8169_v22 = vadd.f32 %v6124_v32, %v8037_v0  ;;  %v5259_v5 = vpop.f32.mrb[152].mxu0 }
 0x2c4   : > { %v5260_v40 = vpop.f32.mrb[153].mxu0 }
 0x2c5   : > { %v2333_v8 = vadd.f32 %v2332_v20, %v2302_v41  ;;  %v2265_v23 = vadd.f32 %v8169_v22, %v2264_v48  ;;  %v2303_v37 = vmul.f32 %v8169_v22, %v8169_v22  ;;  %v5261_v10 = vadd.f32 %v5260_v40, %v5259_v5  ;;  %v5262_v13 = vpop.f32.mrb[154].mxu0 }
 0x2c6   : > { %v5263_v16 = vpop.f32.mrb[155].mxu0 }
 0x2c7   : > { %v2334_v52 = vadd.f32 %v2333_v8, %v2303_v37  ;;  %v6139_v57 = vadd.f32 %v7933_v12, %v5261_v10  ;;  %v5264_v42 = vadd.f32 %v5263_v16, %v5262_v13 }
 0x2c9   : > { %v8176_v51 = vadd.f32 %v6139_v57, %v8058_v18  ;;  %v6149_v0 = vadd.f32 %v7939_v60, %v5264_v42  ;;  %v6572_v60 = vld [vmem:[#allocation8 + $0x100] sm:$0xff]  }
 0x2ca   : > { %5431 = vmatprep.subr.bf16.mxu0 %v6572_v60 }
 0x2cb   : > { %v2266_v3 = vadd.f32 %v8176_v51, %v2265_v23  ;;  %v2304_v31 = vmul.f32 %v8176_v51, %v8176_v51  ;;  %v8183_v27 = vadd.f32 %v6149_v0, %v8065_v9  ;;  %v5265_v21 = vpop.f32.mrb[156].mxu0 }
 0x2cc   : > { %v5266_v54 = vpop.f32.mrb[157].mxu0 }
 0x2cd   : > { %v2335_v44 = vadd.f32 %v2334_v52, %v2304_v31  ;;  %v2267_v1 = vadd.f32 %v8183_v27, %v2266_v3  ;;  %v2305_v12 = vmul.f32 %v8183_v27, %v8183_v27  ;;  %v5267_v18 = vadd.f32 %v5266_v54, %v5265_v21  ;;  %v5268_v62 = vpop.f32.mrb[158].mxu0 }
 0x2ce   : > { %v5269_v43 = vpop.f32.mrb[159].mxu0 }
 0x2cf   : > { %v2336_v11 = vadd.f32 %v2335_v44, %v2305_v12  ;;  %v6134_v38 = vadd.f32 %v7930_v34, %v5267_v18  ;;  %v5270_v59 = vadd.f32 %v5269_v43, %v5268_v62 }
 0x2d1   : > { %v6135_v9 = vadd.f32 %v6134_v38, %v8055_v17  ;;  %v6144_v20 = vadd.f32 %v7936_v61, %v5270_v59 }
 0x2d3   : > { %v2268_v26 = vadd.f32 %v6135_v9, %v2267_v1  ;;  %v2306_v49 = vmul.f32 %v6135_v9, %v6135_v9  ;;  %v6145_v32 = vadd.f32 %v6144_v20, %v8060_v7 }
 0x2d5   : > { %v2337_v48 = vadd.f32 %v2336_v11, %v2306_v49  ;;  %v2269_v41 = vadd.f32 %v6145_v32, %v2268_v26  ;;  %v2307_v5 = vmul.f32 %v6145_v32, %v6145_v32 }
 0x2d7   : > { %v2270_v40 = vrot.slane %v2269_v41, 4  ;;  %v2338_v8 = vadd.f32 %v2337_v48, %v2307_v5 }
 0x2d9   : > { %v2271_v23 = vadd.f32 %v2270_v40, %v2269_v41  ;;  %v2339_v37 = vrot.slane %v2338_v8, 4 }
 0x2db   : > { %v2272_v10 = vrot.slane %v2271_v23, 2  ;;  %v2340_v13 = vadd.f32 %v2339_v37, %v2338_v8 }
 0x2dd   : > { %v2273_v34 = vadd.f32 %v2272_v10, %v2271_v23  ;;  %v2341_v16 = vrot.slane %v2340_v13, 2 }
 0x2df   : > { %v2274_v52 = vrot.slane %v2273_v34, 1  ;;  %v2342_v57 = vadd.f32 %v2341_v16, %v2340_v13 }
 0x2e1   : > { %v2275_v17 = vadd.f32 %v2274_v52, %v2273_v34  ;;  %v2343_v42 = vrot.slane %v2342_v57, 1 }
 0x2e3   : > { %v2344_v61 = vadd.f32 %v2343_v42, %v2342_v57  ;;  %v8192_v0 = vmul.f32 0.00390625, %v2275_v17 }
 0x2e5   : > { %v2346_v3 = vmul.f32 0.00390625, %v2344_v61  ;;  %v2347_v7 = vmul.f32 %v8192_v0, %v8192_v0  ;;  %v2380_v31 = vsub.f32 %v6135_v9, %v8192_v0  ;;  %v2381_v21 = vsub.f32 %v6145_v32, %v8192_v0 }
 0x2e6   : > { %v2370_v12 = vsub.f32 %v8120_v2, %v8192_v0  ;;  %v2371_v18 = vsub.f32 %v8127_v6, %v8192_v0  ;;  %v2372_v62 = vsub.f32 %v8134_v29, %v8192_v0  ;;  %v2373_v43 = vsub.f32 %v8141_v4, %v8192_v0 }
 0x2e7   : > { %v2348_v54 = vsub.f32 %v2346_v3, %v2347_v7  ;;  %v2374_v60 = vsub.f32 %v8148_v25, %v8192_v0  ;;  %v2375_v11 = vsub.f32 %v8155_v28, %v8192_v0  ;;  %v2376_v38 = vsub.f32 %v8162_v19, %v8192_v0 }
 0x2e8   : > { %v2377_v2 = vsub.f32 %v8169_v22, %v8192_v0  ;;  %v2378_v6 = vsub.f32 %v8176_v51, %v8192_v0  ;;  %v2379_v29 = vsub.f32 %v8183_v27, %v8192_v0  ;;  %v2350_v4 = vsub.f32 %v7942_v63, %v8192_v0  ;;  %v9431_v27 = vld [vmem:[#allocation17_spill] sm:$0xff]  ;;  %v9432_v63 = vld [vmem:[#allocation20_spill] sm:$0xff] }
 0x2e9   : > { %v2349_v44 = vmax.f32 %v2348_v54, 0.0  ;;  %v2351_v25 = vsub.f32 %v7945_v30, %v8192_v0  ;;  %v2352_v28 = vsub.f32 %v7948_v45, %v8192_v0  ;;  %v2353_v19 = vsub.f32 %v7951_v46, %v8192_v0  ;;  %v9433_v30 = vld [vmem:[#allocation19_spill] sm:$0xff]  ;;  %v9434_v45 = vld [vmem:[#allocation25_spill] sm:$0xff] }
 0x2ea   : > { %v2354_v22 = vsub.f32 %v7958_v14, %v8192_v0  ;;  %v2355_v51 = vsub.f32 %v7961_v24, %v8192_v0  ;;  %v2356_v59 = vsub.f32 %v9431_v27, %v8192_v0  ;;  %v2357_v9 = vsub.f32 %v9432_v63, %v8192_v0 }
 0x2eb   : > { %v2382_v1 = vadd.f32 1e-05, %v2349_v44  ;;  %v2358_v20 = vsub.f32 %v9433_v30, %v8192_v0  ;;  %v2359_v26 = vsub.f32 %v9434_v45, %v8192_v0  ;;  %v2360_v46 = vsub.f32 %v8022_v58, %v8192_v0 }
 0x2ec   : > { %v2361_v14 = vsub.f32 %v8028_v55, %v8192_v0  ;;  %v2362_v24 = vsub.f32 %v8046_v36, %v8192_v0  ;;  %v2363_v49 = vsub.f32 %v8053_v50, %v8192_v0  ;;  %v2364_v32 = vsub.f32 %v8071_v39, %v8192_v0 }
 0x2ed   : > { %6612 = vrsqrt.f32 %v2382_v1  ;;  %v2365_v48 = vsub.f32 %v8076_v56, %v8192_v0  ;;  %v2366_v5 = vsub.f32 %v8089_v33, %v8192_v0  ;;  %v2367_v58 = vsub.f32 %v8095_v35, %v8192_v0 }
 0x2ee   : > { %v2368_v55 = vsub.f32 %v8105_v15, %v8192_v0  ;;  %v2369_v36 = vsub.f32 %v8112_v47, %v8192_v0 }
 0x2f7   : > { %v6613_v41 = vpop.eup %6612 }
 0x2f8   : > { %v2414_v50 = vmul.f32 %v6613_v41, %v2380_v31  ;;  %v2415_v40 = vmul.f32 %v6613_v41, %v2381_v21  ;;  %v8258_v8 = vmul.f32 %v6613_v41, %v2350_v4  ;;  %v8260_v39 = vmul.f32 %v6613_v41, %v2351_v25 }
 0x2f9   : > { %v2386_v56 = vmul.f32 %v6613_v41, %v2352_v28  ;;  %v2387_v23 = vmul.f32 %v6613_v41, %v2353_v19  ;;  %v2388_v37 = vmul.f32 %v6613_v41, %v2354_v22  ;;  %v2389_v10 = vmul.f32 %v6613_v41, %v2355_v51 }
 0x2fa   : > { %v2446_v33 = vmax.f32 %v2414_v50, 0.0  ;;  %v2447_v13 = vmax.f32 %v2415_v40, 0.0  ;;  %v2390_v34 = vmul.f32 %v6613_v41, %v2356_v59  ;;  %v2391_v35 = vmul.f32 %v6613_v41, %v2357_v9 }
 0x2fb   : > { %v2392_v16 = vmul.f32 %v6613_v41, %v2358_v20  ;;  %v2393_v52 = vmul.f32 %v6613_v41, %v2359_v26  ;;  %v2394_v15 = vmul.f32 %v6613_v41, %v2360_v46  ;;  %v2395_v57 = vmul.f32 %v6613_v41, %v2361_v14 }
 0x2fc   : > { %v8262_v17 = vpack.c.bf16 %v2447_v13, %v2446_v33  ;;  %v2396_v47 = vmul.f32 %v6613_v41, %v2362_v24  ;;  %v2397_v42 = vmul.f32 %v6613_v41, %v2363_v49  ;;  %v2398_v61 = vmul.f32 %v6613_v41, %v2364_v32 }
 0x2fd   : > { %v2399_v0 = vmul.f32 %v6613_v41, %v2365_v48  ;;  %v2400_v3 = vmul.f32 %v6613_v41, %v2366_v5  ;;  %v2401_v7 = vmul.f32 %v6613_v41, %v2367_v58  ;;  %v2402_v31 = vmul.f32 %v6613_v41, %v2368_v55 }
 0x2fe   : > { %9435 = vst [vmem:[#allocation21_spill] sm:$0xff] %v8262_v17  ;;  %v2403_v21 = vmul.f32 %v6613_v41, %v2369_v36  ;;  %v2404_v54 = vmul.f32 %v6613_v41, %v2370_v12  ;;  %v2405_v44 = vmul.f32 %v6613_v41, %v2371_v18  ;;  %v2406_v1 = vmul.f32 %v6613_v41, %v2372_v62 }
 0x2ff   : > { %v2407_v4 = vmul.f32 %v6613_v41, %v2373_v43  ;;  %v2408_v25 = vmul.f32 %v6613_v41, %v2374_v60  ;;  %v2409_v28 = vmul.f32 %v6613_v41, %v2375_v11  ;;  %v2410_v19 = vmul.f32 %v6613_v41, %v2376_v38 }
 0x300   : > { %v2411_v22 = vmul.f32 %v6613_v41, %v2377_v2  ;;  %v2412_v51 = vmul.f32 %v6613_v41, %v2378_v6  ;;  %v2413_v27 = vmul.f32 %v6613_v41, %v2379_v29  ;;  %v2416_v59 = vmax.f32 %v8258_v8, 0.0 }
 0x301   : > { %v2417_v63 = vmax.f32 %v8260_v39, 0.0  ;;  %v2418_v9 = vmax.f32 %v2386_v56, 0.0  ;;  %v2419_v30 = vmax.f32 %v2387_v23, 0.0  ;;  %v2420_v20 = vmax.f32 %v2388_v37, 0.0 }
 0x302   : > { %v2421_v45 = vmax.f32 %v2389_v10, 0.0  ;;  %v2422_v26 = vmax.f32 %v2390_v34, 0.0  ;;  %v2423_v46 = vmax.f32 %v2391_v35, 0.0  ;;  %v2424_v12 = vmax.f32 %v2392_v16, 0.0 }
 0x303   : > { %v2425_v18 = vmax.f32 %v2393_v52, 0.0  ;;  %v2426_v62 = vmax.f32 %v2394_v15, 0.0  ;;  %v2427_v43 = vmax.f32 %v2395_v57, 0.0  ;;  %v2428_v60 = vmax.f32 %v2396_v47, 0.0 }
 0x304   : > { %v2429_v11 = vmax.f32 %v2397_v42, 0.0  ;;  %v2430_v38 = vmax.f32 %v2398_v61, 0.0  ;;  %v2431_v2 = vmax.f32 %v2399_v0, 0.0  ;;  %v2432_v6 = vmax.f32 %v2400_v3, 0.0 }
 0x305   : > { %v2433_v29 = vmax.f32 %v2401_v7, 0.0  ;;  %v2434_v14 = vmax.f32 %v2402_v31, 0.0  ;;  %v2435_v24 = vmax.f32 %v2403_v21, 0.0  ;;  %v2436_v49 = vmax.f32 %v2404_v54, 0.0 }
 0x306   : > { %v2437_v32 = vmax.f32 %v2405_v44, 0.0  ;;  %v2438_v48 = vmax.f32 %v2406_v1, 0.0  ;;  %v2439_v41 = vmax.f32 %v2407_v4, 0.0  ;;  %v2440_v5 = vmax.f32 %v2408_v25, 0.0  ;;  %v6573_v4 = vld [vmem:[#allocation8 + $0xc0] sm:$0xff]  }
 0x307   : > { %v2441_v58 = vmax.f32 %v2409_v28, 0.0  ;;  %v2442_v55 = vmax.f32 %v2410_v19, 0.0  ;;  %v2443_v36 = vmax.f32 %v2411_v22, 0.0  ;;  %v2444_v50 = vmax.f32 %v2412_v51, 0.0  ;;  %v6578_v51 = vld [vmem:[#allocation8 + $0x108] sm:$0xff]  }
 0x308   : > { %v2445_v40 = vmax.f32 %v2413_v27, 0.0  ;;  %v8266_v8 = vpack.c.bf16 %v2419_v30, %v2418_v9  ;;  %v8268_v39 = vpack.c.bf16 %v2421_v45, %v2420_v20  ;;  %v8270_v56 = vpack.c.bf16 %v2423_v46, %v2422_v26  ;;  %v6565_v9 = vld [vmem:[#allocation8 + $0x148] sm:$0xff]   ;;  %v6607_v27 = vld [vmem:[#allocation8 + $0x218] sm:$0xff]  }
 0x309   : > { %v8272_v23 = vpack.c.bf16 %v2425_v18, %v2424_v12  ;;  %v8274_v37 = vpack.c.bf16 %v2427_v43, %v2426_v62  ;;  %v8276_v10 = vpack.c.bf16 %v2429_v11, %v2428_v60  ;;  %v8278_v33 = vpack.c.bf16 %v2431_v2, %v2430_v38  ;;  %v6579_v45 = vld [vmem:[#allocation8 + $0xc8] sm:$0xff]   ;;  %v6584_v12 = vld [vmem:[#allocation8 + $0x110] sm:$0xff]  }
 0x30a   : > { %v8280_v13 = vpack.c.bf16 %v2433_v29, %v2432_v6  ;;  %v8282_v34 = vpack.c.bf16 %v2435_v24, %v2434_v14  ;;  %v8284_v35 = vpack.c.bf16 %v2437_v32, %v2436_v49  ;;  %v8286_v16 = vpack.c.bf16 %v2439_v41, %v2438_v48  ;;  %2935 = vmatprep.mubr.bf16.mxu0 %v8266_v8  ;;  %v6566_v43 = vld [vmem:[#allocation8 + $0x150] sm:$0xff]   ;;  %v6590_v29 = vld [vmem:[#allocation8 + $0x118] sm:$0xff]  }
 0x30b   : > { %9436 = vst [vmem:[#allocation27_spill] sm:$0xff] %v8276_v10  ;;  %v8289_v52 = vpack.c.bf16 %v2441_v58, %v2440_v5  ;;  %v8291_v15 = vpack.c.bf16 %v2443_v36, %v2442_v55  ;;  %v8293_v57 = vpack.c.bf16 %v2445_v40, %v2444_v50  ;;  %v2465_v47 = vshrl.u32 %v8266_v8, 16  ;;  %v6585_v38 = vld [vmem:[#allocation8 + $0xd0] sm:$0xff]   ;;  %v6567_v14 = vld [vmem:[#allocation8 + $0x158] sm:$0xff]   ;;  %v6592_v5 = vld [vmem:[#allocation8 + $0x120] sm:$0xff]  }
 0x30c   : > { %v2529_v42 = vshll.u32 %v8266_v8, 16  ;;  %v8297_v61 = vpack.c.bf16 %v2417_v63, %v2416_v59  ;;  %v8302_v1 = vshll.u32 %v8268_v39, 16  ;;  %v8309_v22 = vshll.u32 %v8270_v56, 16  ;;  %v6591_v32 = vld [vmem:[#allocation8 + $0xd8] sm:$0xff]   ;;  %v6568_v36 = vld [vmem:[#allocation8 + $0x160] sm:$0xff]  }
 0x30d   : > { %v2528_v0 = vrot.slane %v2465_v47, 7  ;;  %v8328_v18 = vshrl.u32 %v8268_v39, 16  ;;  %v8331_v62 = vshrl.u32 %v8270_v56, 16  ;;  %v8335_v11 = vshll.u32 %v8272_v23, 16 }
 0x30e   : > { %v2624_v3 = vrot.slane %v2529_v42, 1  ;;  %v2468_v7 = vshrl.u32 %v8297_v61, 16  ;;  %v2533_v31 = vshll.u32 %v8297_v61, 16  ;;  %v2628_v20 = vrot.slane %v8302_v1, 1 }
 0x30f   : > { %v2531_v21 = vor.u32 %v2529_v42, %v2528_v0  ;;  %v2630_v46 = vrot.slane %v8309_v22, 1  ;;  %v8343_v6 = vshll.u32 %v8274_v37, 16  ;;  %v2632_v49 = vrot.slane %v8335_v11, 1 }
 0x310   : > { %v2625_v54 = vor.u32 %v2624_v3, %v2465_v47  ;;  %v2626_v44 = vrot.slane %v2533_v31, 1  ;;  %v2532_v19 = vrot.slane %v2468_v7, 7  ;;  %v2629_v60 = vor.u32 %v2628_v20, %v8328_v18 }
 0x311   : > { %v8306_v28 = vsel %vm7154_vm2, %v2465_v47, %v2531_v21  ;;  %v2634_v41 = vrot.slane %v8343_v6, 1  ;;  %v8362_v58 = vshrl.u32 %v8272_v23, 16  ;;  %v8365_v55 = vshrl.u32 %v8274_v37, 16  ;;  %v6593_v47 = vld [vmem:[#allocation8 + $0xe0] sm:$0xff]  }
 0x312   : > { %2936 = vmatmul.mubr.bf16.vlgmr.msra.gmra.mrb[160].mxu0 %v8306_v28  ;;  %v8314_v59 = vsel %vm7221_vm5, %v2625_v54, %v2529_v42  ;;  %v2627_v63 = vor.u32 %v2626_v44, %v2468_v7  ;;  %v2535_v26 = vor.u32 %v2533_v31, %v2532_v19  ;;  %v8350_v24 = vsel %vm7221_vm5, %v2629_v60, %v8302_v1 }
 0x313   : > { %5863 = vmatprep.mubr.bf16.mxu1 %v8314_v59  ;;  %2943 = vmatprep.mubr.bf16.mxu0 %v8297_v61  ;;  %v2633_v50 = vor.u32 %v2632_v49, %v8362_v58  ;;  %v8369_v40 = vshll.u32 %v8276_v10, 16  ;;  %v2635_v42 = vor.u32 %v2634_v41, %v8365_v55  ;;  %v2536_v0 = vrot.slane %v8328_v18, 7  ;;  %v6602_v41 = vld [vmem:[#allocation8 + $0x138] sm:$0xff]  }
 0x314   : > { %v8320_v30 = vsel %vm7221_vm5, %v2627_v63, %v2533_v31  ;;  %5432 = vmatpush3.bf16.msra.mxu0 %v6573_v4  ;;  %v8339_v2 = vsel %vm7154_vm2, %v2468_v7, %v2535_v26  ;;  %v8374_v3 = vshll.u32 %v8278_v33, 16  ;;  %v6596_v7 = vld [vmem:[#allocation8 + $0x128] sm:$0xff]   ;;  %v8379_v21 = vshrl.u32 %v8293_v57, 16  ;;  %v6570_v26 = vld [vmem:[#allocation8 + $0x170] sm:$0xff]  }
 0x315   : > { %5864 = vmatmul.mubr.bf16.vlgmr.msra.gmra.mrb[96].mxu1 %v8320_v30  ;;  %5433 = vmatprep.subr.bf16.mxu0 %v6578_v51  ;;  %v6569_v31 = vld [vmem:[#allocation8 + $0x168] sm:$0xff]   ;;  %v8384_v54 = vsel %vm7221_vm5, %v2633_v50, %v8335_v11  ;;  %v2636_v44 = vrot.slane %v8369_v40, 1  ;;  %v8391_v19 = vsel %vm7221_vm5, %v2635_v42, %v8343_v6  ;;  %v2539_v51 = vor.u32 %v8302_v1, %v2536_v0  ;;  %v6603_v0 = vld [vmem:[#allocation8 + $0xf8] sm:$0xff]  }
 0x316   : > { %5867 = vmatprep.mubr.bf16.mxu1 %v8314_v59  ;;  %5896 = vmatpush3.bf16.msra.mxu1 %v8080_v53  ;;  %v2631_v53 = vor.u32 %v2630_v46, %v8331_v62  ;;  %v6597_v4 = vld [vmem:[#allocation8 + $0xe8] sm:$0xff]   ;;  %v2638_v63 = vrot.slane %v8374_v3, 1  ;;  %v8397_v20 = vshrl.u32 %v8276_v10, 16  ;;  %v8403_v46 = vshll.u32 %v8293_v57, 16 }
 0x317   : > { %5897 = vmatprep.subr.bf16.mxu1 %v6565_v9  ;;  %v2584_v1 = vrot.slane %v8379_v21, 7  ;;  %v8409_v60 = vshll.u32 %v8280_v13, 16  ;;  %v8421_v49 = vshll.u32 %v8282_v34, 16 }
 0x318   : > { %5434 = vmatpush3.bf16.msra.mxu0 %v6579_v45  ;;  %v8357_v48 = vsel %vm7221_vm5, %v2631_v53, %v8309_v22  ;;  %v8400_v45 = vshrl.u32 %v8278_v33, 16  ;;  %v8412_v53 = vshrl.u32 %v8262_v17, 16 }
 0x319   : > { %5435 = vmatprep.subr.bf16.mxu0 %v6584_v12  ;;  %v2637_v12 = vor.u32 %v2636_v44, %v8397_v20  ;;  %v2640_v42 = vrot.slane %v8409_v60, 1 }
 0x31a   : > { %2944 = vmatmul.mubr.bf16.gmra.mrb[164].mxu0 %v8339_v2  ;;  %5898 = vmatpush3.bf16.msra.mxu1 %v6565_v9  ;;  %v6598_v9 = vld [vmem:[#allocation8 + $0x130] sm:$0xff]  }
 0x31b   : > { %2951 = vmatprep.mubr.bf16.mxu0 %v8266_v8  ;;  %5899 = vmatprep.subr.bf16.mxu1 %v6566_v43 }
 0x31c   : > { %5436 = vmatpush3.bf16.msra.mxu0 %v6585_v38  ;;  %v6599_v38 = vld [vmem:[#allocation8 + $0xf0] sm:$0xff]  }
 0x31d   : > { %5868 = vmatmul.mubr.bf16.gmra.mrb[100].mxu1 %v8350_v24  ;;  %5437 = vmatprep.subr.bf16.mxu0 %v6590_v29  ;;  %v8417_v29 = vsel %vm7154_vm2, %v8328_v18, %v2539_v51  ;;  %v6571_v18 = vld [vmem:[#allocation8 + $0x178] sm:$0xff]   ;;  %v8452_v51 = vshrl.u32 %v8280_v13, 16 }
 0x31e   : > { %5871 = vmatprep.mubr.bf16.mxu1 %v8357_v48  ;;  %5900 = vmatpush3.bf16.msra.mxu1 %v6566_v43  ;;  %v2540_v43 = vrot.slane %v8331_v62, 7 }
 0x31f   : > { %5901 = vmatprep.subr.bf16.mxu1 %v6567_v14 }
 0x320   : > { %5438 = vmatpush3.bf16.msra.mxu0 %v6591_v32  ;;  %v2587_v32 = vor.u32 %v8403_v46, %v2584_v1  ;;  %v2543_v44 = vor.u32 %v8309_v22, %v2540_v43  ;;  %v6574_v1 = vld [vmem:[#allocation8 + $0x1c0] sm:$0xff]   ;;  %v2641_v22 = vor.u32 %v2640_v42, %v8452_v51  ;;  %v8494_v42 = vshrl.u32 %v8284_v35, 16 }
 0x321   : > { %5439 = vmatprep.subr.bf16.mxu0 %v6592_v5  ;;  %v8426_v5 = vshll.u32 %v8262_v17, 16 }
 0x322   : > { %2952 = vmatmul.mubr.bf16.gmra.mrb[168].mxu0 %v8306_v28  ;;  %5902 = vmatpush3.bf16.msra.mxu1 %v6567_v14  ;;  %v2639_v14 = vor.u32 %v2638_v63, %v8400_v45  ;;  %v8433_v50 = vsel %vm7154_vm2, %v8379_v21, %v2587_v32  ;;  %v8481_v32 = vsel %vm7221_vm5, %v2641_v22, %v8409_v60  ;;  %v8511_v22 = vshll.u32 %v8291_v15, 16 }
 0x323   : > { %2959 = vmatprep.mubr.bf16.mxu0 %v8268_v39  ;;  %5903 = vmatprep.subr.bf16.mxu1 %v6568_v36 }
 0x324   : > { %5440 = vmatpush3.bf16.msra.mxu0 %v6593_v47  ;;  %v8438_v47 = vsel %vm7221_vm5, %v2637_v12, %v8369_v40  ;;  %v8464_v12 = vshll.u32 %v8284_v35, 16 }
 0x325   : > { %5872 = vmatmul.mubr.bf16.gmra.mrb[104].mxu1 %v8384_v54  ;;  %5441 = vmatprep.subr.bf16.mxu0 %v6596_v7 }
 0x326   : > { %5875 = vmatprep.mubr.bf16.mxu1 %v8391_v19  ;;  %5904 = vmatpush3.bf16.msra.mxu1 %v6568_v36  ;;  %v2588_v36 = vrot.slane %v8412_v53, 7 }
 0x327   : > { %5905 = vmatprep.subr.bf16.mxu1 %v6569_v31 }
 0x328   : > { %5442 = vmatpush3.bf16.msra.mxu0 %v6597_v4  ;;  %v2591_v7 = vor.u32 %v8426_v5, %v2588_v36  ;;  %v2642_v4 = vrot.slane %v8421_v49, 1 }
 0x329   : > { %5443 = vmatprep.subr.bf16.mxu0 %v6598_v9  ;;  %v8460_v9 = vshrl.u32 %v8282_v34, 16 }
 0x32a   : > { %2960 = vmatmul.mubr.bf16.gmra.mrb[172].mxu0 %v8417_v29  ;;  %5906 = vmatpush3.bf16.msra.mxu1 %v6569_v31  ;;  %v8446_v31 = vsel %vm7221_vm5, %v2639_v14, %v8374_v3  ;;  %v8457_v63 = vsel %vm7154_vm2, %v8412_v53, %v2591_v7  ;;  %v8474_v14 = vshll.u32 %v8286_v16, 16 }
 0x32b   : > { %2967 = vmatprep.mubr.bf16.mxu0 %v8270_v56  ;;  %5907 = vmatprep.subr.bf16.mxu1 %v6570_v26  ;;  %9439 = vst [vmem:[#allocation23_spill] sm:$0xff] %v8457_v63  ;;  %v2643_v43 = vor.u32 %v2642_v4, %v8460_v9 }
 0x32c   : > { %5444 = vmatpush3.bf16.msra.mxu0 %v6599_v38  ;;  %v2544_v38 = vrot.slane %v8362_v58, 7 }
 0x32d   : > { %5876 = vmatmul.mubr.bf16.gmra.mrb[108].mxu1 %v8438_v47  ;;  %5445 = vmatprep.subr.bf16.mxu0 %v6602_v41  ;;  %v8488_v41 = vsel %vm7221_vm5, %v2643_v43, %v8421_v49 }
 0x32e   : > { %5879 = vmatprep.mubr.bf16.mxu1 %v8446_v31  ;;  %5908 = vmatpush3.bf16.msra.mxu1 %v6570_v26  ;;  %v8469_v26 = vsel %vm7154_vm2, %v8331_v62, %v2543_v44  ;;  %v2644_v62 = vrot.slane %v8464_v12, 1  ;;  %v2547_v36 = vor.u32 %v8335_v11, %v2544_v38  ;;  %v8501_v44 = vshll.u32 %v8289_v52, 16 }
 0x32f   : > { %5909 = vmatprep.subr.bf16.mxu1 %v6571_v18 }
 0x330   : > { %5446 = vmatpush3.bf16.msra.mxu0 %v6603_v0  ;;  %v8497_v0 = vshrl.u32 %v8286_v16, 16  ;;  %v2645_v7 = vor.u32 %v2644_v62, %v8494_v42  ;;  %v8506_v4 = vsel %vm7154_vm2, %v8362_v58, %v2547_v36  ;;  %v2648_v38 = vrot.slane %v8501_v44, 1 }
 0x331   : > { %v2650_v36 = vrot.slane %v8511_v22, 1 }
 0x332   : > { %2968 = vmatmul.mubr.bf16.gmra.mrb[176].mxu0 %v8469_v26  ;;  %5910 = vmatpush3.bf16.msra.mxu1 %v6571_v18  ;;  %v2646_v18 = vrot.slane %v8474_v14, 1  ;;  %v8518_v43 = vsel %vm7221_vm5, %v2645_v7, %v8464_v12  ;;  %v8534_v7 = vshrl.u32 %v8291_v15, 16 }
 0x333   : > { %2975 = vmatprep.mubr.bf16.mxu0 %v8272_v23  ;;  %5567 = vmatprep.subr.bf16.mxu1 %v6574_v1  ;;  %v2548_v1 = vrot.slane %v8365_v55, 7 }
 0x334   : > { %v2647_v11 = vor.u32 %v2646_v18, %v8497_v0  ;;  %v8531_v18 = vshrl.u32 %v8289_v52, 16 }
 0x335   : > { %5880 = vmatmul.mubr.bf16.gmra.mrb[112].mxu1 %v8481_v32  ;;  %v2551_v62 = vor.u32 %v8343_v6, %v2548_v1  ;;  %v2552_v6 = vrot.slane %v8397_v20, 7 }
 0x336   : > { %5883 = vmatprep.mubr.bf16.mxu1 %v8488_v41  ;;  %v8525_v58 = vsel %vm7221_vm5, %v2647_v11, %v8474_v14  ;;  %v2649_v63 = vor.u32 %v2648_v38, %v8531_v18  ;;  %v2651_v11 = vor.u32 %v2650_v36, %v8534_v7  ;;  %v2652_v38 = vrot.slane %v8403_v46, 1 }
 0x337   : > { %v8540_v17 = vsel %vm7154_vm2, %v8365_v55, %v2551_v62  ;;  %v2555_v62 = vor.u32 %v8369_v40, %v2552_v6  ;;  %v6575_v6 = vld [vmem:[#allocation8 + $0x180] sm:$0xff]  }
 0x338   : > { %v8549_v1 = vsel %vm7221_vm5, %v2649_v63, %v8501_v44  ;;  %v8556_v55 = vsel %vm7221_vm5, %v2651_v11, %v8511_v22  ;;  %v2653_v36 = vor.u32 %v2652_v38, %v8379_v21 }
 0x339   : > { %v8564_v63 = vsel %vm7154_vm2, %v8397_v20, %v2555_v62  ;;  %v2560_v20 = vrot.slane %v8452_v51, 7  ;;  %v6581_v62 = vld [vmem:[#allocation8 + $0x190] sm:$0xff]  }
 0x33a   : > { %2976 = vmatmul.mubr.bf16.gmra.mrb[180].mxu0 %v8506_v4  ;;  %v8572_v11 = vsel %vm7221_vm5, %v2653_v36, %v8403_v46  ;;  %v6576_v46 = vld [vmem:[#allocation8 + $0x1c8] sm:$0xff]  }
 0x33b   : > { %2983 = vmatprep.mubr.bf16.mxu0 %v8274_v37  ;;  %v2563_v38 = vor.u32 %v8409_v60, %v2560_v20  ;;  %v6582_v60 = vld [vmem:[#allocation8 + $0x1d8] sm:$0xff]  }
 0x33d   : > { %5884 = vmatmul.mubr.bf16.gmra.mrb[116].mxu1 %v8518_v43 }
 0x33e   : > { %5887 = vmatprep.mubr.bf16.mxu1 %v8525_v58 }
 0x342   : > { %2984 = vmatmul.mubr.bf16.gmra.mrb[184].mxu0 %v8540_v17 }
 0x343   : > { %2991 = vmatprep.mubr.bf16.mxu0 %v8276_v10  ;;  %v2556_v10 = vrot.slane %v8400_v45, 7 }
 0x345   : > { %5888 = vmatmul.mubr.bf16.gmra.mrb[120].mxu1 %v8549_v1  ;;  %v2559_v40 = vor.u32 %v8374_v3, %v2556_v10  ;;  %v6577_v10 = vld [vmem:[#allocation8 + $0x188] sm:$0xff]   ;;  %v8591_v3 = vsel %vm7154_vm2, %v8452_v51, %v2563_v38  ;;  %v6586_v51 = vld [vmem:[#allocation8 + $0x1e0] sm:$0xff]  }
 0x346   : > { %5891 = vmatprep.mubr.bf16.mxu1 %v8556_v55 }
 0x347   : > { %v8580_v21 = vsel %vm7154_vm2, %v8400_v45, %v2559_v40  ;;  %v2564_v45 = vrot.slane %v8460_v9, 7  ;;  %v6583_v40 = vld [vmem:[#allocation8 + $0x198] sm:$0xff]  }
 0x349   : > { %v2567_v36 = vor.u32 %v8421_v49, %v2564_v45  ;;  %v6588_v49 = vld [vmem:[#allocation8 + $0x1e8] sm:$0xff]   ;;  %v2572_v45 = vrot.slane %v8497_v0, 7 }
 0x34a   : > { %2992 = vmatmul.mubr.bf16.gmra.mrb[188].mxu0 %v8564_v63 }
 0x34b   : > { %2999 = vmatprep.mubr.bf16.mxu0 %v8278_v33  ;;  %v8602_v20 = vsel %vm7154_vm2, %v8460_v9, %v2567_v36  ;;  %v6594_v9 = vld [vmem:[#allocation8 + $0x1f0] sm:$0xff]   ;;  %v6601_v36 = vld [vmem:[#allocation8 + $0x1b8] sm:$0xff]  }
 0x34d   : > { %5892 = vmatmul.mubr.bf16.gmra.mrb[124].mxu1 %v8572_v11 }
 0x34e   : > { %5911 = vmatprep.mubr.bf16.mxu1 %v8320_v30  ;;  %v6580_v30 = vld [vmem:[#allocation8 + $0x1d0] sm:$0xff]  }
 0x352   : > { %3000 = vmatmul.mubr.bf16.gmra.mrb[192].mxu0 %v8580_v21 }
 0x353   : > { %3007 = vmatprep.mubr.bf16.mxu0 %v8280_v13 }
 0x355   : > { %5912 = vmatmul.mubr.bf16.vlgmr.msra.gmra.mrb[96].mxu1 %v8314_v59 }
 0x356   : > { %5915 = vmatprep.mubr.bf16.mxu1 %v8350_v24  ;;  %5568 = vmatpush3.bf16.msra.mxu1 %v6575_v6  ;;  %v2568_v6 = vrot.slane %v8494_v42, 7 }
 0x357   : > { %5569 = vmatprep.subr.bf16.mxu1 %v6576_v46  ;;  %v6587_v46 = vld [vmem:[#allocation8 + $0x1a0] sm:$0xff]  }
 0x358   : > { %v2571_v38 = vor.u32 %v8464_v12, %v2568_v6  ;;  %v6600_v12 = vld [vmem:[#allocation8 + $0x1f8] sm:$0xff]  }
 0x35a   : > { %3008 = vmatmul.mubr.bf16.gmra.mrb[196].mxu0 %v8591_v3  ;;  %5570 = vmatpush3.bf16.msra.mxu1 %v6577_v10  ;;  %v6589_v10 = vld [vmem:[#allocation8 + $0x1a8] sm:$0xff]  }
 0x35b   : > { %3015 = vmatprep.mubr.bf16.mxu0 %v8282_v34  ;;  %5571 = vmatprep.subr.bf16.mxu1 %v6580_v30  ;;  %v8613_v30 = vsel %vm7154_vm2, %v8494_v42, %v2571_v38  ;;  %v6604_v42 = vld [vmem:[#allocation8 + $0x200] sm:$0xff]  }
 0x35d   : > { %5916 = vmatmul.mubr.bf16.gmra.mrb[100].mxu1 %v8357_v48 }
 0x35e   : > { %5919 = vmatprep.mubr.bf16.mxu1 %v8384_v54  ;;  %5572 = vmatpush3.bf16.msra.mxu1 %v6581_v62  ;;  %v6595_v62 = vld [vmem:[#allocation8 + $0x1b0] sm:$0xff]  }
 0x35f   : > { %5573 = vmatprep.subr.bf16.mxu1 %v6582_v60  ;;  %v2575_v60 = vor.u32 %v8474_v14, %v2572_v45 }
 0x362   : > { %3016 = vmatmul.mubr.bf16.gmra.mrb[200].mxu0 %v8602_v20  ;;  %5574 = vmatpush3.bf16.msra.mxu1 %v6583_v40  ;;  %v8624_v40 = vsel %vm7154_vm2, %v8497_v0, %v2575_v60  ;;  %v2580_v0 = vrot.slane %v8534_v7, 7 }
 0x363   : > { %3023 = vmatprep.mubr.bf16.mxu0 %v8284_v35  ;;  %5575 = vmatprep.subr.bf16.mxu1 %v6586_v51  ;;  %v2576_v51 = vrot.slane %v8531_v18, 7 }
 0x365   : > { %5920 = vmatmul.mubr.bf16.gmra.mrb[104].mxu1 %v8391_v19  ;;  %v2579_v14 = vor.u32 %v8501_v44, %v2576_v51 }
 0x366   : > { %5923 = vmatprep.mubr.bf16.mxu1 %v8438_v47  ;;  %5576 = vmatpush3.bf16.msra.mxu1 %v6587_v46  ;;  %v2583_v46 = vor.u32 %v8511_v22, %v2580_v0  ;;  %v6605_v22 = vld [vmem:[#allocation8 + $0x208] sm:$0xff]  }
 0x367   : > { %5577 = vmatprep.subr.bf16.mxu1 %v6588_v49  ;;  %v8635_v6 = vsel %vm7154_vm2, %v8531_v18, %v2579_v14  ;;  %v2654_v18 = vrot.slane %v8426_v5, 1 }
 0x368   : > { %v8646_v44 = vsel %vm7154_vm2, %v8534_v7, %v2583_v46 }
 0x369   : > { %v2655_v49 = vor.u32 %v2654_v18, %v8412_v53 }
 0x36a   : > { %3024 = vmatmul.mubr.bf16.gmra.mrb[204].mxu0 %v8613_v30  ;;  %5578 = vmatpush3.bf16.msra.mxu1 %v6589_v10 }
 0x36b   : > { %3031 = vmatprep.mubr.bf16.mxu0 %v8286_v16  ;;  %5579 = vmatprep.subr.bf16.mxu1 %v6594_v9  ;;  %v8659_v25 = vsel %vm7221_vm5, %v2655_v49, %v8426_v5 }
 0x36d   : > { %5924 = vmatmul.mubr.bf16.gmra.mrb[108].mxu1 %v8446_v31 }
 0x36e   : > { %5927 = vmatprep.mubr.bf16.mxu1 %v8481_v32  ;;  %5580 = vmatpush3.bf16.msra.mxu1 %v6595_v62  ;;  %v9442_v62 = vld [vmem:[#allocation23_spill] sm:$0xff] }
 0x36f   : > { %5581 = vmatprep.subr.bf16.mxu1 %v6600_v12 }
 0x372   : > { %3032 = vmatmul.mubr.bf16.gmra.mrb[208].mxu0 %v8624_v40  ;;  %5582 = vmatpush3.bf16.msra.mxu1 %v6601_v36 }
 0x373   : > { %3039 = vmatprep.mubr.bf16.mxu0 %v8289_v52  ;;  %5943 = vmatprep.subr.bf16.mxu1 %v6604_v42 }
 0x375   : > { %5928 = vmatmul.mubr.bf16.gmra.mrb[112].mxu1 %v8488_v41 }
 0x376   : > { %5931 = vmatprep.mubr.bf16.mxu1 %v8518_v43 }
 0x37a   : > { %3040 = vmatmul.mubr.bf16.gmra.mrb[212].mxu0 %v8635_v6 }
 0x37b   : > { %3047 = vmatprep.mubr.bf16.mxu0 %v8291_v15 }
 0x37d   : > { %5932 = vmatmul.mubr.bf16.gmra.mrb[116].mxu1 %v8525_v58 }
 0x37e   : > { %5935 = vmatprep.mubr.bf16.mxu1 %v8549_v1 }
 0x382   : > { %3048 = vmatmul.mubr.bf16.gmra.mrb[216].mxu0 %v8646_v44 }
 0x383   : > { %3055 = vmatprep.mubr.bf16.mxu0 %v8293_v57 }
 0x385   : > { %5936 = vmatmul.mubr.bf16.gmra.mrb[120].mxu1 %v8556_v55 }
 0x386   : > { %5939 = vmatprep.mubr.bf16.mxu1 %v8572_v11 }
 0x38a   : > { %3056 = vmatmul.mubr.bf16.gmra.mrb[220].mxu0 %v8433_v50 }
 0x38b   : > { %3482 = vmatprep.mubr.bf16.mxu0 %v8297_v61  ;;  %v6606_v61 = vld [vmem:[#allocation8 + $0x210] sm:$0xff]  }
 0x38d   : > { %5940 = vmatmul.mubr.bf16.gmra.mrb[124].mxu1 %v8659_v25 }
 0x38e   : > { %4029 = vmatprep.mubr.bf16.mxu1 %v8266_v8 }
 0x392   : > { %3483 = vmatmul.mubr.bf16.vlgmr.msra.gmra.mrb[224].mxu0 %v8339_v2  ;;  %v6609_v2 = vld [vmem:[#allocation8 + $0x228] sm:$0xff]  }
 0x393   : > { %3490 = vmatprep.mubr.bf16.mxu0 %v8266_v8  ;;  %v6608_v8 = vld [vmem:[#allocation8 + $0x220] sm:$0xff]  }
 0x395   : > { %4030 = vmatmul.mubr.bf16.vlgmr.msra.gmra.mrb[128].mxu1 %v8306_v28 }
 0x396   : > { %4037 = vmatprep.mubr.bf16.mxu1 %v8268_v39  ;;  %5944 = vmatpush3.bf16.msra.mxu1 %v6604_v42 }
 0x397   : > { %5945 = vmatprep.subr.bf16.mxu1 %v6605_v22 }
 0x39a   : > { %3491 = vmatmul.mubr.bf16.gmra.mrb[228].mxu0 %v8306_v28  ;;  %5946 = vmatpush3.bf16.msra.mxu1 %v6605_v22  ;;  %v6611_v28 = vld [vmem:[#allocation8 + $0x238] sm:$0xff]  }
 0x39b   : > { %3498 = vmatprep.mubr.bf16.mxu0 %v8268_v39  ;;  %5947 = vmatprep.subr.bf16.mxu1 %v6606_v61  ;;  %v6610_v39 = vld [vmem:[#allocation8 + $0x230] sm:$0xff]  }
 0x39d   : > { %4038 = vmatmul.mubr.bf16.gmra.mrb[132].mxu1 %v8417_v29 }
 0x39e   : > { %4045 = vmatprep.mubr.bf16.mxu1 %v8270_v56  ;;  %5948 = vmatpush3.bf16.msra.mxu1 %v6606_v61 }
 0x39f   : > { %5949 = vmatprep.subr.bf16.mxu1 %v6607_v27 }
 0x3a2   : > { %3499 = vmatmul.mubr.bf16.gmra.mrb[232].mxu0 %v8417_v29  ;;  %5950 = vmatpush3.bf16.msra.mxu1 %v6607_v27 }
 0x3a3   : > { %3506 = vmatprep.mubr.bf16.mxu0 %v8270_v56  ;;  %5951 = vmatprep.subr.bf16.mxu1 %v6608_v8  ;;  %v9440_v56 = vld [vmem:[#allocation27_spill] sm:$0xff] }
 0x3a5   : > { %4046 = vmatmul.mubr.bf16.gmra.mrb[136].mxu1 %v8469_v26 }
 0x3a6   : > { %4053 = vmatprep.mubr.bf16.mxu1 %v8272_v23  ;;  %5952 = vmatpush3.bf16.msra.mxu1 %v6608_v8 }
 0x3a7   : > { %5953 = vmatprep.subr.bf16.mxu1 %v6609_v2 }
 0x3aa   : > { %3507 = vmatmul.mubr.bf16.gmra.mrb[236].mxu0 %v8469_v26  ;;  %5954 = vmatpush3.bf16.msra.mxu1 %v6609_v2 }
 0x3ab   : > { %3514 = vmatprep.mubr.bf16.mxu0 %v8272_v23  ;;  %5955 = vmatprep.subr.bf16.mxu1 %v6610_v39 }
 0x3ad   : > { %4054 = vmatmul.mubr.bf16.gmra.mrb[140].mxu1 %v8506_v4 }
 0x3ae   : > { %4061 = vmatprep.mubr.bf16.mxu1 %v8274_v37  ;;  %5956 = vmatpush3.bf16.msra.mxu1 %v6610_v39 }
 0x3af   : > { %5957 = vmatprep.subr.bf16.mxu1 %v6611_v28 }
 0x3b2   : > { %3515 = vmatmul.mubr.bf16.gmra.mrb[240].mxu0 %v8506_v4  ;;  %5958 = vmatpush3.bf16.msra.mxu1 %v6611_v28 }
 0x3b3   : > { %3522 = vmatprep.mubr.bf16.mxu0 %v8274_v37 }
 0x3b5   : > { %4062 = vmatmul.mubr.bf16.gmra.mrb[144].mxu1 %v8540_v17 }
 0x3b6   : > { %4069 = vmatprep.mubr.bf16.mxu1 %v9440_v56 }
 0x3ba   : > { %3523 = vmatmul.mubr.bf16.gmra.mrb[244].mxu0 %v8540_v17 }
 0x3bb   : > { %3530 = vmatprep.mubr.bf16.mxu0 %v9440_v56 }
 0x3bd   : > { %4070 = vmatmul.mubr.bf16.gmra.mrb[148].mxu1 %v8564_v63 }
 0x3be   : > { %4077 = vmatprep.mubr.bf16.mxu1 %v8278_v33 }
 0x3c2   : > { %3531 = vmatmul.mubr.bf16.gmra.mrb[248].mxu0 %v8564_v63 }
 0x3c3   : > { %3538 = vmatprep.mubr.bf16.mxu0 %v8278_v33 }
 0x3c5   : > { %4078 = vmatmul.mubr.bf16.gmra.mrb[152].mxu1 %v8580_v21 }
 0x3c6   : > { %4085 = vmatprep.mubr.bf16.mxu1 %v8280_v13 }
 0x3ca   : > { %3539 = vmatmul.mubr.bf16.gmra.mrb[252].mxu0 %v8580_v21 }
 0x3cb   : > { %3546 = vmatprep.mubr.bf16.mxu0 %v8280_v13 }
 0x3cd   : > { %4086 = vmatmul.mubr.bf16.gmra.mrb[156].mxu1 %v8591_v3 }
 0x3ce   : > { %4093 = vmatprep.mubr.bf16.mxu1 %v8282_v34 }
 0x3d2   : > { %3547 = vmatmul.mubr.bf16.gmra.mrb[0].mxu0 %v8591_v3 }
 0x3d3   : > { %3554 = vmatprep.mubr.bf16.mxu0 %v8282_v34 }
 0x3d5   : > { %4094 = vmatmul.mubr.bf16.gmra.mrb[160].mxu1 %v8602_v20 }
 0x3d6   : > { %4101 = vmatprep.mubr.bf16.mxu1 %v8284_v35 }
 0x3da   : > { %3555 = vmatmul.mubr.bf16.gmra.mrb[4].mxu0 %v8602_v20 }
 0x3db   : > { %3562 = vmatprep.mubr.bf16.mxu0 %v8284_v35 }
 0x3dd   : > { %4102 = vmatmul.mubr.bf16.gmra.mrb[164].mxu1 %v8613_v30 }
 0x3de   : > { %4109 = vmatprep.mubr.bf16.mxu1 %v8286_v16 }
 0x3e2   : > { %3563 = vmatmul.mubr.bf16.gmra.mrb[8].mxu0 %v8613_v30 }
 0x3e3   : > { %3570 = vmatprep.mubr.bf16.mxu0 %v8286_v16 }
 0x3e5   : > { %4110 = vmatmul.mubr.bf16.gmra.mrb[168].mxu1 %v8624_v40  ;;  %v5311_v17 = vpop.f32.mrb[160].mxu0 }
 0x3e6   : > { %4117 = vmatprep.mubr.bf16.mxu1 %v8289_v52  ;;  %v5312_v23 = vpop.f32.mrb[161].mxu0 }
 0x3e7   : > { %v8707_v37 = vadd.f32 %v5312_v23, %v5311_v17  ;;  %v5314_v33 = vpop.f32.mrb[162].mxu0 }
 0x3e8   : > { %v5315_v13 = vpop.f32.mrb[163].mxu0 }
 0x3e9   : > { %v8709_v34 = vadd.f32 %v5315_v13, %v5314_v33 }
 0x3ea   : > { %3571 = vmatmul.mubr.bf16.gmra.mrb[12].mxu0 %v8624_v40 }
 0x3eb   : > { %3578 = vmatprep.mubr.bf16.mxu0 %v8289_v52 }
 0x3ed   : > { %4118 = vmatmul.mubr.bf16.gmra.mrb[172].mxu1 %v8635_v6  ;;  %v5317_v35 = vpop.f32.mrb[164].mxu0 }
 0x3ee   : > { %4125 = vmatprep.mubr.bf16.mxu1 %v8291_v15  ;;  %v5318_v16 = vpop.f32.mrb[165].mxu0 }
 0x3ef   : > { %v8715_v53 = vadd.f32 %v5318_v16, %v5317_v35  ;;  %v5320_v29 = vpop.f32.mrb[166].mxu0 }
 0x3f0   : > { %v5321_v5 = vpop.f32.mrb[167].mxu0 }
 0x3f1   : > { %v8717_v26 = vadd.f32 %v5321_v5, %v5320_v29 }
 0x3f2   : > { %3579 = vmatmul.mubr.bf16.gmra.mrb[16].mxu0 %v8635_v6 }
 0x3f3   : > { %3586 = vmatprep.mubr.bf16.mxu0 %v8291_v15  ;;  %v9441_v15 = vld [vmem:[#allocation21_spill] sm:$0xff] }
 0x3f5   : > { %4126 = vmatmul.mubr.bf16.gmra.mrb[176].mxu1 %v8646_v44  ;;  %v5323_v4 = vpop.f32.mrb[168].mxu0 }
 0x3f6   : > { %4133 = vmatprep.mubr.bf16.mxu1 %v8293_v57  ;;  %v5324_v52 = vpop.f32.mrb[169].mxu0 }
 0x3f7   : > { %v8723_v7 = vadd.f32 %v5324_v52, %v5323_v4  ;;  %v5326_v63 = vpop.f32.mrb[170].mxu0 }
 0x3f8   : > { %v5327_v21 = vpop.f32.mrb[171].mxu0 }
 0x3f9   : > { %v8725_v3 = vadd.f32 %v5327_v21, %v5326_v63 }
 0x3fa   : > { %3587 = vmatmul.mubr.bf16.gmra.mrb[20].mxu0 %v8646_v44 }
 0x3fb   : > { %3594 = vmatprep.mubr.bf16.mxu0 %v8293_v57 }
 0x3fd   : > { %4134 = vmatmul.mubr.bf16.gmra.mrb[180].mxu1 %v8433_v50  ;;  %v5329_v20 = vpop.f32.mrb[172].mxu0 }
 0x3fe   : > { %4141 = vmatprep.mubr.bf16.mxu1 %v9441_v15  ;;  %v5330_v38 = vpop.f32.mrb[173].mxu0 }
 0x3ff   : > { %v8731_v10 = vadd.f32 %v5330_v38, %v5329_v20  ;;  %v5332_v9 = vpop.f32.mrb[174].mxu0 }
 0x400   : > { %v5333_v30 = vpop.f32.mrb[175].mxu0 }
 0x401   : > { %v8733_v45 = vadd.f32 %v5333_v30, %v5332_v9 }
 0x402   : > { %3595 = vmatmul.mubr.bf16.gmra.mrb[24].mxu0 %v8433_v50 }
 0x403   : > { %3602 = vmatprep.mubr.bf16.mxu0 %v9441_v15 }
 0x405   : > { %4142 = vmatmul.mubr.bf16.gmra.mrb[184].mxu1 %v9442_v62  ;;  %v5335_v12 = vpop.f32.mrb[176].mxu0 }
 0x406   : > { %4149 = vmatprep.mubr.bf16.mxu1 %v8293_v57  ;;  %v5336_v60 = vpop.f32.mrb[177].mxu0 }
 0x407   : > { %v8739_v36 = vadd.f32 %v5336_v60, %v5335_v12  ;;  %v5338_v42 = vpop.f32.mrb[178].mxu0 }
 0x408   : > { %v5339_v40 = vpop.f32.mrb[179].mxu0 }
 0x409   : > { %v8741_v51 = vadd.f32 %v5339_v40, %v5338_v42 }
 0x40a   : > { %3603 = vmatmul.mubr.bf16.gmra.mrb[28].mxu0 %v9442_v62 }
 0x40d   : > { %4150 = vmatmul.mubr.bf16.gmra.mrb[188].mxu1 %v8433_v50  ;;  %v5341_v14 = vpop.f32.mrb[180].mxu0 }
 0x40e   : > { %5959 = vmatprep.mubr.bf16.mxu1 %v8314_v59  ;;  %v5342_v6 = vpop.f32.mrb[181].mxu0 }
 0x40f   : > { %v8746_v0 = vadd.f32 %v5342_v6, %v5341_v14  ;;  %v5344_v46 = vpop.f32.mrb[182].mxu0 }
 0x410   : > { %v5345_v44 = vpop.f32.mrb[183].mxu0 }
 0x411   : > { %v8748_v57 = vadd.f32 %v5345_v44, %v5344_v46 }
 0x415   : > { %5960 = vmatmul.mubr.bf16.vlgmr.msra.gmra.mrb[96].mxu1 %v8350_v24  ;;  %v5347_v18 = vpop.f32.mrb[184].mxu0 }
 0x416   : > { %5963 = vmatprep.mubr.bf16.mxu1 %v8357_v48  ;;  %v5348_v49 = vpop.f32.mrb[185].mxu0 }
 0x417   : > { %v8752_v22 = vadd.f32 %v5348_v49, %v5347_v18  ;;  %v5350_v61 = vpop.f32.mrb[186].mxu0 }
 0x418   : > { %v5351_v50 = vpop.f32.mrb[187].mxu0 }
 0x419   : > { %v8754_v27 = vadd.f32 %v5351_v50, %v5350_v61 }
 0x41d   : > { %5964 = vmatmul.mubr.bf16.gmra.mrb[100].mxu1 %v8384_v54  ;;  %v5353_v59 = vpop.f32.mrb[188].mxu0 }
 0x41e   : > { %5967 = vmatprep.mubr.bf16.mxu1 %v8391_v19  ;;  %v5354_v8 = vpop.f32.mrb[189].mxu0 }
 0x41f   : > { %v8758_v2 = vadd.f32 %v5354_v8, %v5353_v59  ;;  %v5356_v39 = vpop.f32.mrb[190].mxu0 }
 0x420   : > { %v5357_v24 = vpop.f32.mrb[191].mxu0 }
 0x421   : > { %v8760_v28 = vadd.f32 %v5357_v24, %v5356_v39 }
 0x425   : > { %5968 = vmatmul.mubr.bf16.gmra.mrb[104].mxu1 %v8438_v47  ;;  %v5359_v48 = vpop.f32.mrb[192].mxu0 }
 0x426   : > { %5971 = vmatprep.mubr.bf16.mxu1 %v8446_v31  ;;  %v5360_v56 = vpop.f32.mrb[193].mxu0 }
 0x427   : > { %v8764_v17 = vadd.f32 %v5360_v56, %v5359_v48  ;;  %v5362_v23 = vpop.f32.mrb[194].mxu0  ;;  %v8805_v48 = vld [vmem:[#allocation10] ss:$0 sm:$0xff] }
 0x428   : > { %v5363_v54 = vpop.f32.mrb[195].mxu0 }
 0x429   : > { %v8766_v33 = vadd.f32 %v5363_v54, %v5362_v23  ;;  %v6155_v54 = vadd.f32 %v8707_v37, %v8805_v48 }
 0x42d   : > { %5972 = vmatmul.mubr.bf16.gmra.mrb[108].mxu1 %v8481_v32  ;;  %v5365_v19 = vpop.f32.mrb[196].mxu0 }
 0x42e   : > { %5975 = vmatprep.mubr.bf16.mxu1 %v8488_v41  ;;  %v5366_v13 = vpop.f32.mrb[197].mxu0 }
 0x42f   : > { %v8770_v35 = vadd.f32 %v5366_v13, %v5365_v19  ;;  %v5368_v16 = vpop.f32.mrb[198].mxu0 }
 0x430   : > { %v5369_v47 = vpop.f32.mrb[199].mxu0 }
 0x431   : > { %v8772_v29 = vadd.f32 %v5369_v47, %v5368_v16 }
 0x435   : > { %5976 = vmatmul.mubr.bf16.gmra.mrb[112].mxu1 %v8518_v43  ;;  %v5371_v31 = vpop.f32.mrb[200].mxu0 }
 0x436   : > { %5979 = vmatprep.mubr.bf16.mxu1 %v8525_v58  ;;  %v5372_v5 = vpop.f32.mrb[201].mxu0 }
 0x437   : > { %v8776_v4 = vadd.f32 %v5372_v5, %v5371_v31  ;;  %v5374_v52 = vpop.f32.mrb[202].mxu0  ;;  %v6163_v31 = vadd.f32 %v8709_v34, %v8805_v48 }
 0x438   : > { %v5375_v32 = vpop.f32.mrb[203].mxu0 }
 0x439   : > { %v8778_v63 = vadd.f32 %v5375_v32, %v5374_v52 }
 0x43d   : > { %5980 = vmatmul.mubr.bf16.gmra.mrb[116].mxu1 %v8549_v1  ;;  %v5377_v41 = vpop.f32.mrb[204].mxu0 }
 0x43e   : > { %5983 = vmatprep.mubr.bf16.mxu1 %v8556_v55  ;;  %v5378_v21 = vpop.f32.mrb[205].mxu0 }
 0x43f   : > { %v8782_v20 = vadd.f32 %v5378_v21, %v5377_v41  ;;  %v5380_v15 = vpop.f32.mrb[206].mxu0 }
 0x440   : > { %v5381_v43 = vpop.f32.mrb[207].mxu0 }
 0x441   : > { %v8784_v38 = vadd.f32 %v5381_v43, %v5380_v15 }
 0x445   : > { %5984 = vmatmul.mubr.bf16.gmra.mrb[120].mxu1 %v8572_v11  ;;  %v5383_v58 = vpop.f32.mrb[208].mxu0 }
 0x446   : > { %5987 = vmatprep.mubr.bf16.mxu1 %v8659_v25  ;;  %v5384_v9 = vpop.f32.mrb[209].mxu0 }
 0x447   : > { %v8788_v30 = vadd.f32 %v5384_v9, %v5383_v58  ;;  %v5386_v62 = vpop.f32.mrb[210].mxu0 }
 0x448   : > { %v5387_v1 = vpop.f32.mrb[211].mxu0 }
 0x449   : > { %v8790_v12 = vadd.f32 %v5387_v1, %v5386_v62 }
 0x44d   : > { %5988 = vmatmul.mubr.bf16.gmra.mrb[124].mxu1 %v8572_v11  ;;  %v5389_v55 = vpop.f32.mrb[212].mxu0 }
 0x44e   : > { %v5390_v60 = vpop.f32.mrb[213].mxu0 }
 0x44f   : > { %v8793_v42 = vadd.f32 %v5390_v60, %v5389_v55  ;;  %v5392_v40 = vpop.f32.mrb[214].mxu0  ;;  %v6151_v55 = vadd.f32 %v8715_v53, %v8805_v48 }
 0x450   : > { %v5393_v14 = vpop.f32.mrb[215].mxu0 }
 0x451   : > { %v8795_v6 = vadd.f32 %v5393_v14, %v5392_v40 }
 0x455   : > { %v5395_v46 = vpop.f32.mrb[216].mxu0 }
 0x456   : > { %v5396_v44 = vpop.f32.mrb[217].mxu0 }
 0x457   : > { %v8797_v25 = vadd.f32 %v5396_v44, %v5395_v46  ;;  %v5398_v18 = vpop.f32.mrb[218].mxu0  ;;  %v6159_v46 = vadd.f32 %v8717_v26, %v8805_v48 }
 0x458   : > { %v5399_v49 = vpop.f32.mrb[219].mxu0 }
 0x459   : > { %v8799_v61 = vadd.f32 %v5399_v49, %v5398_v18 }
 0x45d   : > { %v5401_v50 = vpop.f32.mrb[220].mxu0 }
 0x45e   : > { %v5402_v59 = vpop.f32.mrb[221].mxu0 }
 0x45f   : > { %v8801_v8 = vadd.f32 %v5402_v59, %v5401_v50  ;;  %v5404_v11 = vpop.f32.mrb[222].mxu0 }
 0x460   : > { %v5405_v39 = vpop.f32.mrb[223].mxu0 }
 0x461   : > { %v8803_v24 = vadd.f32 %v5405_v39, %v5404_v11 }
 0x465   : > { %v5447_v56 = vpop.f32.mrb[224].mxu0 }
 0x466   : > { %v5448_v23 = vpop.f32.mrb[225].mxu0 }
 0x467   : > { %v5449_v19 = vadd.f32 %v5448_v23, %v5447_v56  ;;  %v5450_v13 = vpop.f32.mrb[226].mxu0 }
 0x468   : > { %v5583_v16 = vpop.f32.mrb[128].mxu1  ;;  %v5451_v47 = vpop.f32.mrb[227].mxu0 }
 0x469   : > { %v6156_v5 = vadd.f32 %v6155_v54, %v5449_v19  ;;  %v5584_v52 = vpop.f32.mrb[129].mxu1  ;;  %v5452_v32 = vadd.f32 %v5451_v47, %v5450_v13  ;;  %v6171_v13 = vadd.f32 %v8723_v7, %v8805_v48 }
 0x46a   : > { %v5585_v41 = vadd.f32 %v5584_v52, %v5583_v16  ;;  %v5586_v21 = vpop.f32.mrb[130].mxu1 }
 0x46b   : > { %v6164_v15 = vadd.f32 %v6163_v31, %v5452_v32  ;;  %v5587_v43 = vpop.f32.mrb[131].mxu1 }
 0x46c   : > { %v5588_v58 = vadd.f32 %v5587_v43, %v5586_v21  ;;  %v8811_v9 = vadd.f32 %v6156_v5, %v5585_v41  ;;  %v6179_v5 = vadd.f32 %v8725_v3, %v8805_v48 }
 0x46d   : > { %v5453_v62 = vpop.f32.mrb[228].mxu0 }
 0x46e   : > { %v5454_v1 = vpop.f32.mrb[229].mxu0  ;;  %v8813_v37 = vadd.f32 %v6164_v15, %v5588_v58 }
 0x46f   : > { %v5455_v60 = vadd.f32 %v5454_v1, %v5453_v62  ;;  %v5456_v40 = vpop.f32.mrb[230].mxu0 }
 0x470   : > { %v5589_v34 = vpop.f32.mrb[132].mxu1  ;;  %v5457_v14 = vpop.f32.mrb[231].mxu0 }
 0x471   : > { %v6152_v44 = vadd.f32 %v6151_v55, %v5455_v60  ;;  %v5590_v18 = vpop.f32.mrb[133].mxu1  ;;  %v5458_v49 = vadd.f32 %v5457_v14, %v5456_v40  ;;  %v6167_v40 = vadd.f32 %v8731_v10, %v8805_v48 }
 0x472   : > { %v5591_v50 = vadd.f32 %v5590_v18, %v5589_v34  ;;  %v5592_v59 = vpop.f32.mrb[134].mxu1 }
 0x473   : > { %v6160_v11 = vadd.f32 %v6159_v46, %v5458_v49  ;;  %v5593_v39 = vpop.f32.mrb[135].mxu1 }
 0x474   : > { %v5594_v56 = vadd.f32 %v5593_v39, %v5592_v59  ;;  %v8819_v23 = vadd.f32 %v6152_v44, %v5591_v50  ;;  %v6175_v44 = vadd.f32 %v8733_v45, %v8805_v48 }
 0x475   : > { %v5459_v54 = vpop.f32.mrb[232].mxu0 }
 0x476   : > { %v5460_v19 = vpop.f32.mrb[233].mxu0  ;;  %v8821_v53 = vadd.f32 %v6160_v11, %v5594_v56 }
 0x477   : > { %v5461_v16 = vadd.f32 %v5460_v19, %v5459_v54  ;;  %v5462_v47 = vpop.f32.mrb[234].mxu0 }
 0x478   : > { %v5595_v26 = vpop.f32.mrb[136].mxu1  ;;  %v5463_v31 = vpop.f32.mrb[235].mxu0 }
 0x479   : > { %v6172_v52 = vadd.f32 %v6171_v13, %v5461_v16  ;;  %v5596_v32 = vpop.f32.mrb[137].mxu1  ;;  %v5464_v41 = vadd.f32 %v5463_v31, %v5462_v47  ;;  %v6187_v47 = vadd.f32 %v8739_v36, %v8805_v48 }
 0x47a   : > { %v5597_v21 = vadd.f32 %v5596_v32, %v5595_v26  ;;  %v5598_v15 = vpop.f32.mrb[138].mxu1 }
 0x47b   : > { %v6180_v43 = vadd.f32 %v6179_v5, %v5464_v41  ;;  %v5599_v58 = vpop.f32.mrb[139].mxu1 }
 0x47c   : > { %v5600_v62 = vadd.f32 %v5599_v58, %v5598_v15  ;;  %v8827_v1 = vadd.f32 %v6172_v52, %v5597_v21  ;;  %v6195_v52 = vadd.f32 %v8741_v51, %v8805_v48 }
 0x47d   : > { %v5465_v55 = vpop.f32.mrb[236].mxu0 }
 0x47e   : > { %v5466_v60 = vpop.f32.mrb[237].mxu0  ;;  %v8829_v7 = vadd.f32 %v6180_v43, %v5600_v62 }
 0x47f   : > { %v5467_v34 = vadd.f32 %v5466_v60, %v5465_v55  ;;  %v5468_v14 = vpop.f32.mrb[238].mxu0 }
 0x480   : > { %v5601_v3 = vpop.f32.mrb[140].mxu1  ;;  %v5469_v46 = vpop.f32.mrb[239].mxu0 }
 0x481   : > { %v6168_v18 = vadd.f32 %v6167_v40, %v5467_v34  ;;  %v5602_v49 = vpop.f32.mrb[141].mxu1  ;;  %v5470_v50 = vadd.f32 %v5469_v46, %v5468_v14  ;;  %v6183_v14 = vadd.f32 %v8746_v0, %v8805_v48 }
 0x482   : > { %v5603_v59 = vadd.f32 %v5602_v49, %v5601_v3  ;;  %v5604_v11 = vpop.f32.mrb[142].mxu1 }
 0x483   : > { %v6176_v39 = vadd.f32 %v6175_v44, %v5470_v50  ;;  %v5605_v56 = vpop.f32.mrb[143].mxu1 }
 0x484   : > { %v5606_v54 = vadd.f32 %v5605_v56, %v5604_v11  ;;  %v8835_v19 = vadd.f32 %v6168_v18, %v5603_v59  ;;  %v6191_v18 = vadd.f32 %v8748_v57, %v8805_v48 }
 0x485   : > { %v5471_v13 = vpop.f32.mrb[240].mxu0 }
 0x486   : > { %v5472_v16 = vpop.f32.mrb[241].mxu0  ;;  %v8837_v10 = vadd.f32 %v6176_v39, %v5606_v54 }
 0x487   : > { %v5473_v26 = vadd.f32 %v5472_v16, %v5471_v13  ;;  %v5474_v31 = vpop.f32.mrb[242].mxu0 }
 0x488   : > { %v5607_v45 = vpop.f32.mrb[144].mxu1  ;;  %v5475_v5 = vpop.f32.mrb[243].mxu0 }
 0x489   : > { %v6188_v32 = vadd.f32 %v6187_v47, %v5473_v26  ;;  %v5608_v41 = vpop.f32.mrb[145].mxu1  ;;  %v5476_v21 = vadd.f32 %v5475_v5, %v5474_v31  ;;  %v6203_v31 = vadd.f32 %v8752_v22, %v8805_v48 }
 0x48a   : > { %v5609_v15 = vadd.f32 %v5608_v41, %v5607_v45  ;;  %v5610_v43 = vpop.f32.mrb[146].mxu1 }
 0x48b   : > { %v6196_v58 = vadd.f32 %v6195_v52, %v5476_v21  ;;  %v5611_v62 = vpop.f32.mrb[147].mxu1 }
 0x48c   : > { %v5612_v55 = vadd.f32 %v5611_v62, %v5610_v43  ;;  %v8843_v60 = vadd.f32 %v6188_v32, %v5609_v15  ;;  %v6211_v32 = vadd.f32 %v8754_v27, %v8805_v48 }
 0x48d   : > { %v5477_v40 = vpop.f32.mrb[244].mxu0 }
 0x48e   : > { %v5478_v34 = vpop.f32.mrb[245].mxu0  ;;  %v8845_v36 = vadd.f32 %v6196_v58, %v5612_v55 }
 0x48f   : > { %v5479_v3 = vadd.f32 %v5478_v34, %v5477_v40  ;;  %v5480_v46 = vpop.f32.mrb[246].mxu0 }
 0x490   : > { %v5613_v51 = vpop.f32.mrb[148].mxu1  ;;  %v5481_v44 = vpop.f32.mrb[247].mxu0 }
 0x491   : > { %v6184_v49 = vadd.f32 %v6183_v14, %v5479_v3  ;;  %v5614_v50 = vpop.f32.mrb[149].mxu1  ;;  %v5482_v59 = vadd.f32 %v5481_v44, %v5480_v46  ;;  %v6199_v46 = vadd.f32 %v8758_v2, %v8805_v48 }
 0x492   : > { %v5615_v11 = vadd.f32 %v5614_v50, %v5613_v51  ;;  %v5616_v39 = vpop.f32.mrb[150].mxu1 }
 0x493   : > { %v6192_v56 = vadd.f32 %v6191_v18, %v5482_v59  ;;  %v5617_v54 = vpop.f32.mrb[151].mxu1 }
 0x494   : > { %v5618_v13 = vadd.f32 %v5617_v54, %v5616_v39  ;;  %v8851_v16 = vadd.f32 %v6184_v49, %v5615_v11  ;;  %v6207_v49 = vadd.f32 %v8760_v28, %v8805_v48 }
 0x495   : > { %v5483_v47 = vpop.f32.mrb[248].mxu0 }
 0x496   : > { %v5484_v26 = vpop.f32.mrb[249].mxu0  ;;  %v8853_v0 = vadd.f32 %v6192_v56, %v5618_v13 }
 0x497   : > { %v5485_v45 = vadd.f32 %v5484_v26, %v5483_v47  ;;  %v5486_v5 = vpop.f32.mrb[250].mxu0 }
 0x498   : > { %v5619_v57 = vpop.f32.mrb[152].mxu1  ;;  %v5487_v52 = vpop.f32.mrb[251].mxu0 }
 0x499   : > { %v6204_v41 = vadd.f32 %v6203_v31, %v5485_v45  ;;  %v5620_v21 = vpop.f32.mrb[153].mxu1  ;;  %v5488_v15 = vadd.f32 %v5487_v52, %v5486_v5  ;;  %v6219_v5 = vadd.f32 %v8764_v17, %v8805_v48 }
 0x49a   : > { %v5621_v43 = vadd.f32 %v5620_v21, %v5619_v57  ;;  %v5622_v58 = vpop.f32.mrb[154].mxu1 }
 0x49b   : > { %v6212_v62 = vadd.f32 %v6211_v32, %v5488_v15  ;;  %v5623_v55 = vpop.f32.mrb[155].mxu1 }
 0x49c   : > { %v5624_v40 = vadd.f32 %v5623_v55, %v5622_v58  ;;  %v8859_v34 = vadd.f32 %v6204_v41, %v5621_v43  ;;  %v6227_v41 = vadd.f32 %v8766_v33, %v8805_v48 }
 0x49d   : > { %v5489_v14 = vpop.f32.mrb[252].mxu0 }
 0x49e   : > { %v5490_v3 = vpop.f32.mrb[253].mxu0  ;;  %v8861_v22 = vadd.f32 %v6212_v62, %v5624_v40 }
 0x49f   : > { %v5491_v51 = vadd.f32 %v5490_v3, %v5489_v14  ;;  %v5492_v44 = vpop.f32.mrb[254].mxu0 }
 0x4a0   : > { %v5625_v27 = vpop.f32.mrb[156].mxu1  ;;  %v5493_v18 = vpop.f32.mrb[255].mxu0 }
 0x4a1   : > { %v6200_v50 = vadd.f32 %v6199_v46, %v5491_v51  ;;  %v5626_v59 = vpop.f32.mrb[157].mxu1  ;;  %v5494_v11 = vadd.f32 %v5493_v18, %v5492_v44  ;;  %v6215_v44 = vadd.f32 %v8770_v35, %v8805_v48 }
 0x4a2   : > { %v5627_v39 = vadd.f32 %v5626_v59, %v5625_v27  ;;  %v5628_v56 = vpop.f32.mrb[158].mxu1 }
 0x4a3   : > { %v6208_v54 = vadd.f32 %v6207_v49, %v5494_v11  ;;  %v5629_v13 = vpop.f32.mrb[159].mxu1 }
 0x4a4   : > { %v5630_v47 = vadd.f32 %v5629_v13, %v5628_v56  ;;  %v8867_v26 = vadd.f32 %v6200_v50, %v5627_v39  ;;  %v6223_v50 = vadd.f32 %v8772_v29, %v8805_v48 }
 0x4a5   : > { %v5495_v31 = vpop.f32.mrb[0].mxu0 }
 0x4a6   : > { %v5496_v45 = vpop.f32.mrb[1].mxu0  ;;  %v8869_v2 = vadd.f32 %v6208_v54, %v5630_v47 }
 0x4a7   : > { %v5497_v57 = vadd.f32 %v5496_v45, %v5495_v31  ;;  %v5498_v52 = vpop.f32.mrb[2].mxu0 }
 0x4a8   : > { %v5631_v28 = vpop.f32.mrb[160].mxu1  ;;  %v5499_v32 = vpop.f32.mrb[3].mxu0 }
 0x4a9   : > { %v6220_v21 = vadd.f32 %v6219_v5, %v5497_v57  ;;  %v5632_v15 = vpop.f32.mrb[161].mxu1  ;;  %v5500_v43 = vadd.f32 %v5499_v32, %v5498_v52  ;;  %v6235_v52 = vadd.f32 %v8776_v4, %v8805_v48 }
 0x4aa   : > { %v5633_v58 = vadd.f32 %v5632_v15, %v5631_v28  ;;  %v5634_v62 = vpop.f32.mrb[162].mxu1 }
 0x4ab   : > { %v6228_v55 = vadd.f32 %v6227_v41, %v5500_v43  ;;  %v5635_v40 = vpop.f32.mrb[163].mxu1 }
 0x4ac   : > { %v5636_v14 = vadd.f32 %v5635_v40, %v5634_v62  ;;  %v8875_v3 = vadd.f32 %v6220_v21, %v5633_v58  ;;  %v6243_v21 = vadd.f32 %v8778_v63, %v8805_v48 }
 0x4ad   : > { %v5501_v46 = vpop.f32.mrb[4].mxu0 }
 0x4ae   : > { %v5502_v51 = vpop.f32.mrb[5].mxu0  ;;  %v8877_v17 = vadd.f32 %v6228_v55, %v5636_v14 }
 0x4af   : > { %v5503_v27 = vadd.f32 %v5502_v51, %v5501_v46  ;;  %v5504_v18 = vpop.f32.mrb[6].mxu0 }
 0x4b0   : > { %v5637_v33 = vpop.f32.mrb[164].mxu1  ;;  %v5505_v49 = vpop.f32.mrb[7].mxu0 }
 0x4b1   : > { %v6216_v59 = vadd.f32 %v6215_v44, %v5503_v27  ;;  %v5638_v11 = vpop.f32.mrb[165].mxu1  ;;  %v5506_v39 = vadd.f32 %v5505_v49, %v5504_v18  ;;  %v6231_v18 = vadd.f32 %v8782_v20, %v8805_v48 }
 0x4b2   : > { %v5639_v56 = vadd.f32 %v5638_v11, %v5637_v33  ;;  %v5640_v54 = vpop.f32.mrb[166].mxu1 }
 0x4b3   : > { %v6224_v13 = vadd.f32 %v6223_v50, %v5506_v39  ;;  %v5641_v47 = vpop.f32.mrb[167].mxu1 }
 0x4b4   : > { %v5642_v31 = vadd.f32 %v5641_v47, %v5640_v54  ;;  %v8883_v45 = vadd.f32 %v6216_v59, %v5639_v56  ;;  %v6239_v59 = vadd.f32 %v8784_v38, %v8805_v48 }
 0x4b5   : > { %v5507_v5 = vpop.f32.mrb[8].mxu0 }
 0x4b6   : > { %v5508_v57 = vpop.f32.mrb[9].mxu0  ;;  %v8885_v35 = vadd.f32 %v6224_v13, %v5642_v31 }
 0x4b7   : > { %v5509_v28 = vadd.f32 %v5508_v57, %v5507_v5  ;;  %v5510_v32 = vpop.f32.mrb[10].mxu0 }
 0x4b8   : > { %v5643_v29 = vpop.f32.mrb[168].mxu1  ;;  %v5511_v41 = vpop.f32.mrb[11].mxu0 }
 0x4b9   : > { %v6236_v15 = vadd.f32 %v6235_v52, %v5509_v28  ;;  %v5644_v43 = vpop.f32.mrb[169].mxu1  ;;  %v5512_v58 = vadd.f32 %v5511_v41, %v5510_v32  ;;  %v6251_v32 = vadd.f32 %v8788_v30, %v8805_v48 }
 0x4ba   : > { %v5645_v62 = vadd.f32 %v5644_v43, %v5643_v29  ;;  %v5646_v55 = vpop.f32.mrb[170].mxu1 }
 0x4bb   : > { %v6244_v40 = vadd.f32 %v6243_v21, %v5512_v58  ;;  %v5647_v14 = vpop.f32.mrb[171].mxu1 }
 0x4bc   : > { %v5648_v46 = vadd.f32 %v5647_v14, %v5646_v55  ;;  %v8891_v51 = vadd.f32 %v6236_v15, %v5645_v62  ;;  %v6259_v15 = vadd.f32 %v8790_v12, %v8805_v48 }
 0x4bd   : > { %v5513_v44 = vpop.f32.mrb[12].mxu0 }
 0x4be   : > { %v5514_v27 = vpop.f32.mrb[13].mxu0  ;;  %v8893_v4 = vadd.f32 %v6244_v40, %v5648_v46 }
 0x4bf   : > { %v5515_v33 = vadd.f32 %v5514_v27, %v5513_v44  ;;  %v5516_v49 = vpop.f32.mrb[14].mxu0 }
 0x4c0   : > { %v5649_v63 = vpop.f32.mrb[172].mxu1  ;;  %v5517_v50 = vpop.f32.mrb[15].mxu0 }
 0x4c1   : > { %v6232_v11 = vadd.f32 %v6231_v18, %v5515_v33  ;;  %v5650_v39 = vpop.f32.mrb[173].mxu1  ;;  %v5518_v56 = vadd.f32 %v5517_v50, %v5516_v49  ;;  %v6247_v49 = vadd.f32 %v8793_v42, %v8805_v48 }
 0x4c2   : > { %v5651_v54 = vadd.f32 %v5650_v39, %v5649_v63  ;;  %v5652_v13 = vpop.f32.mrb[174].mxu1 }
 0x4c3   : > { %v6240_v47 = vadd.f32 %v6239_v59, %v5518_v56  ;;  %v5653_v31 = vpop.f32.mrb[175].mxu1 }
 0x4c4   : > { %v5654_v5 = vadd.f32 %v5653_v31, %v5652_v13  ;;  %v8899_v57 = vadd.f32 %v6232_v11, %v5651_v54  ;;  %v6255_v11 = vadd.f32 %v8795_v6, %v8805_v48 }
 0x4c5   : > { %v5519_v52 = vpop.f32.mrb[16].mxu0 }
 0x4c6   : > { %v5520_v28 = vpop.f32.mrb[17].mxu0  ;;  %v8901_v20 = vadd.f32 %v6240_v47, %v5654_v5 }
 0x4c7   : > { %v5521_v29 = vadd.f32 %v5520_v28, %v5519_v52  ;;  %v5522_v41 = vpop.f32.mrb[18].mxu0 }
 0x4c8   : > { %v5655_v38 = vpop.f32.mrb[176].mxu1  ;;  %v5523_v21 = vpop.f32.mrb[19].mxu0 }
 0x4c9   : > { %v6252_v43 = vadd.f32 %v6251_v32, %v5521_v29  ;;  %v5656_v58 = vpop.f32.mrb[177].mxu1  ;;  %v5524_v62 = vadd.f32 %v5523_v21, %v5522_v41  ;;  %v6267_v41 = vadd.f32 %v8797_v25, %v8805_v48 }
 0x4ca   : > { %v5657_v55 = vadd.f32 %v5656_v58, %v5655_v38  ;;  %v5658_v40 = vpop.f32.mrb[178].mxu1 }
 0x4cb   : > { %v6260_v14 = vadd.f32 %v6259_v15, %v5524_v62  ;;  %v5659_v46 = vpop.f32.mrb[179].mxu1 }
 0x4cc   : > { %v5660_v44 = vadd.f32 %v5659_v46, %v5658_v40  ;;  %v8907_v27 = vadd.f32 %v6252_v43, %v5657_v55  ;;  %v6275_v43 = vadd.f32 %v8799_v61, %v8805_v48 }
 0x4cd   : > { %v5525_v18 = vpop.f32.mrb[20].mxu0 }
 0x4ce   : > { %v5526_v33 = vpop.f32.mrb[21].mxu0  ;;  %v8909_v30 = vadd.f32 %v6260_v14, %v5660_v44 }
 0x4cf   : > { %v5527_v63 = vadd.f32 %v5526_v33, %v5525_v18  ;;  %v5528_v50 = vpop.f32.mrb[22].mxu0 }
 0x4d0   : > { %v5661_v12 = vpop.f32.mrb[180].mxu1  ;;  %v5529_v59 = vpop.f32.mrb[23].mxu0 }
 0x4d1   : > { %v6248_v39 = vadd.f32 %v6247_v49, %v5527_v63  ;;  %v5662_v56 = vpop.f32.mrb[181].mxu1  ;;  %v5530_v54 = vadd.f32 %v5529_v59, %v5528_v50  ;;  %v6263_v50 = vadd.f32 %v8801_v8, %v8805_v48 }
 0x4d2   : > { %v5663_v13 = vadd.f32 %v5662_v56, %v5661_v12  ;;  %v5664_v47 = vpop.f32.mrb[182].mxu1 }
 0x4d3   : > { %v6256_v31 = vadd.f32 %v6255_v11, %v5530_v54  ;;  %v5665_v5 = vpop.f32.mrb[183].mxu1 }
 0x4d4   : > { %v5666_v52 = vadd.f32 %v5665_v5, %v5664_v47  ;;  %v8915_v28 = vadd.f32 %v6248_v39, %v5663_v13  ;;  %v6271_v39 = vadd.f32 %v8803_v24, %v8805_v48 }
 0x4d5   : > { %v5531_v32 = vpop.f32.mrb[24].mxu0 }
 0x4d6   : > { %v5532_v29 = vpop.f32.mrb[25].mxu0  ;;  %v8917_v42 = vadd.f32 %v6256_v31, %v5666_v52 }
 0x4d7   : > { %v5533_v38 = vadd.f32 %v5532_v29, %v5531_v32  ;;  %v5534_v21 = vpop.f32.mrb[26].mxu0 }
 0x4d8   : > { %v5667_v6 = vpop.f32.mrb[184].mxu1  ;;  %v5535_v15 = vpop.f32.mrb[27].mxu0 }
 0x4d9   : > { %v6268_v58 = vadd.f32 %v6267_v41, %v5533_v38  ;;  %v5668_v62 = vpop.f32.mrb[185].mxu1  ;;  %v5536_v55 = vadd.f32 %v5535_v15, %v5534_v21 }
 0x4da   : > { %v5669_v40 = vadd.f32 %v5668_v62, %v5667_v6  ;;  %v5670_v14 = vpop.f32.mrb[186].mxu1 }
 0x4db   : > { %v6276_v46 = vadd.f32 %v6275_v43, %v5536_v55  ;;  %v5671_v44 = vpop.f32.mrb[187].mxu1 }
 0x4dc   : > { %v5672_v18 = vadd.f32 %v5671_v44, %v5670_v14  ;;  %v8923_v33 = vadd.f32 %v6268_v58, %v5669_v40 }
 0x4dd   : > { %v5537_v49 = vpop.f32.mrb[28].mxu0 }
 0x4de   : > { %v5538_v63 = vpop.f32.mrb[29].mxu0  ;;  %v8925_v25 = vadd.f32 %v6276_v46, %v5672_v18 }
 0x4df   : > { %v5539_v12 = vadd.f32 %v5538_v63, %v5537_v49  ;;  %v5540_v59 = vpop.f32.mrb[30].mxu0 }
 0x4e0   : > { %v5673_v61 = vpop.f32.mrb[188].mxu1  ;;  %v5541_v11 = vpop.f32.mrb[31].mxu0 }
 0x4e1   : > { %v6264_v56 = vadd.f32 %v6263_v50, %v5539_v12  ;;  %v5674_v54 = vpop.f32.mrb[189].mxu1  ;;  %v5542_v13 = vadd.f32 %v5541_v11, %v5540_v59 }
 0x4e2   : > { %v5675_v47 = vadd.f32 %v5674_v54, %v5673_v61  ;;  %v5676_v31 = vpop.f32.mrb[190].mxu1 }
 0x4e3   : > { %v6272_v5 = vadd.f32 %v6271_v39, %v5542_v13  ;;  %v5677_v52 = vpop.f32.mrb[191].mxu1 }
 0x4e4   : > { %v5678_v32 = vadd.f32 %v5677_v52, %v5676_v31  ;;  %v8931_v29 = vadd.f32 %v6264_v56, %v5675_v47 }
 0x4e6   : > { %v8933_v41 = vadd.f32 %v6272_v5, %v5678_v32 }
 0x4e8   : > { %v5961_v8 = vpop.f32.mrb[96].mxu1 }
 0x4e9   : > { %v8936_v38 = vadd.f32 %v8819_v23, %v5961_v8  ;;  %v4192_v21 = vpop.f32.mrb[97].mxu1 }
 0x4ea   : > { %v8939_v6 = vadd.f32 %v8811_v9, %v4192_v21  ;;  %v5962_v24 = vpop.f32.mrb[98].mxu1 }
 0x4eb   : > { %v8942_v48 = vadd.f32 %v8821_v53, %v5962_v24  ;;  %v4195_v15 = vpop.f32.mrb[99].mxu1  ;;  %v4390_v9 = vmul.f32 %v8936_v38, %v8936_v38 }
 0x4ec   : > { %v8945_v43 = vadd.f32 %v8813_v37, %v4195_v15  ;;  %v4388_v58 = vmul.f32 %v8939_v6, %v8939_v6 }
 0x4ed   : > { %v4391_v46 = vmul.f32 %v8942_v48, %v8942_v48 }
 0x4ee   : > { %v4351_v62 = vadd.f32 %v8945_v43, %v8939_v6  ;;  %v4389_v23 = vmul.f32 %v8945_v43, %v8945_v43 }
 0x4f0   : > { %v4352_v55 = vadd.f32 %v8936_v38, %v4351_v62  ;;  %v4420_v53 = vadd.f32 %v4389_v23, %v4388_v58  ;;  %v5965_v40 = vpop.f32.mrb[100].mxu1 }
 0x4f1   : > { %v8957_v14 = vadd.f32 %v8835_v19, %v5965_v40  ;;  %v4208_v37 = vpop.f32.mrb[101].mxu1 }
 0x4f2   : > { %v4421_v44 = vadd.f32 %v4420_v53, %v4390_v9  ;;  %v8962_v18 = vadd.f32 %v8827_v1, %v4208_v37  ;;  %v4353_v49 = vadd.f32 %v8942_v48, %v4352_v55  ;;  %v5966_v63 = vpop.f32.mrb[102].mxu1 }
 0x4f3   : > { %v8966_v50 = vadd.f32 %v8837_v10, %v5966_v63  ;;  %v4211_v12 = vpop.f32.mrb[103].mxu1  ;;  %v4394_v10 = vmul.f32 %v8957_v14, %v8957_v14 }
 0x4f4   : > { %v4354_v59 = vadd.f32 %v8962_v18, %v4353_v49  ;;  %v4392_v19 = vmul.f32 %v8962_v18, %v8962_v18  ;;  %v4422_v61 = vadd.f32 %v4421_v44, %v4391_v46  ;;  %v8972_v11 = vadd.f32 %v8829_v7, %v4211_v12 }
 0x4f5   : > { %v4395_v7 = vmul.f32 %v8966_v50, %v8966_v50 }
 0x4f6   : > { %v4423_v39 = vadd.f32 %v4422_v61, %v4392_v19  ;;  %v4355_v1 = vadd.f32 %v8972_v11, %v4354_v59  ;;  %v4393_v56 = vmul.f32 %v8972_v11, %v8972_v11 }
 0x4f8   : > { %v4356_v54 = vadd.f32 %v8957_v14, %v4355_v1  ;;  %v4424_v13 = vadd.f32 %v4423_v39, %v4393_v56  ;;  %v5969_v47 = vpop.f32.mrb[104].mxu1 }
 0x4f9   : > { %v8981_v31 = vadd.f32 %v8851_v16, %v5969_v47  ;;  %v4224_v5 = vpop.f32.mrb[105].mxu1 }
 0x4fa   : > { %v4425_v52 = vadd.f32 %v4424_v13, %v4394_v10  ;;  %v8986_v32 = vadd.f32 %v8843_v60, %v4224_v5  ;;  %v4357_v8 = vadd.f32 %v8966_v50, %v4356_v54  ;;  %v5970_v21 = vpop.f32.mrb[106].mxu1 }
 0x4fb   : > { %v8990_v24 = vadd.f32 %v8853_v0, %v5970_v21  ;;  %v4227_v15 = vpop.f32.mrb[107].mxu1  ;;  %v4398_v0 = vmul.f32 %v8981_v31, %v8981_v31 }
 0x4fc   : > { %v4358_v58 = vadd.f32 %v8986_v32, %v4357_v8  ;;  %v4396_v16 = vmul.f32 %v8986_v32, %v8986_v32  ;;  %v4426_v62 = vadd.f32 %v4425_v52, %v4395_v7  ;;  %v8996_v23 = vadd.f32 %v8845_v36, %v4227_v15 }
 0x4fd   : > { %v4399_v36 = vmul.f32 %v8990_v24, %v8990_v24 }
 0x4fe   : > { %v4427_v9 = vadd.f32 %v4426_v62, %v4396_v16  ;;  %v4359_v60 = vadd.f32 %v8996_v23, %v4358_v58  ;;  %v4397_v55 = vmul.f32 %v8996_v23, %v8996_v23 }
 0x500   : > { %v4360_v53 = vadd.f32 %v8981_v31, %v4359_v60  ;;  %v4428_v40 = vadd.f32 %v4427_v9, %v4397_v55  ;;  %v5973_v37 = vpop.f32.mrb[108].mxu1 }
 0x501   : > { %v9005_v46 = vadd.f32 %v8867_v26, %v5973_v37  ;;  %v4240_v44 = vpop.f32.mrb[109].mxu1 }
 0x502   : > { %v4429_v49 = vadd.f32 %v4428_v40, %v4398_v0  ;;  %v9010_v63 = vadd.f32 %v8859_v34, %v4240_v44  ;;  %v4361_v12 = vadd.f32 %v8990_v24, %v4360_v53  ;;  %v5974_v59 = vpop.f32.mrb[110].mxu1 }
 0x503   : > { %v9014_v19 = vadd.f32 %v8869_v2, %v5974_v59  ;;  %v4243_v61 = vpop.f32.mrb[111].mxu1  ;;  %v4402_v2 = vmul.f32 %v9005_v46, %v9005_v46 }
 0x504   : > { %v4362_v39 = vadd.f32 %v9010_v63, %v4361_v12  ;;  %v4400_v26 = vmul.f32 %v9010_v63, %v9010_v63  ;;  %v4430_v1 = vadd.f32 %v4429_v49, %v4399_v36  ;;  %v9020_v56 = vadd.f32 %v8861_v22, %v4243_v61 }
 0x505   : > { %v4403_v22 = vmul.f32 %v9014_v19, %v9014_v19 }
 0x506   : > { %v4431_v10 = vadd.f32 %v4430_v1, %v4400_v26  ;;  %v4363_v34 = vadd.f32 %v9020_v56, %v4362_v39  ;;  %v4401_v54 = vmul.f32 %v9020_v56, %v9020_v56 }
 0x508   : > { %v4364_v13 = vadd.f32 %v9005_v46, %v4363_v34  ;;  %v4432_v47 = vadd.f32 %v4431_v10, %v4401_v54  ;;  %v5977_v5 = vpop.f32.mrb[112].mxu1 }
 0x509   : > { %v9029_v7 = vadd.f32 %v8883_v45, %v5977_v5  ;;  %v4256_v52 = vpop.f32.mrb[113].mxu1 }
 0x50a   : > { %v4433_v8 = vadd.f32 %v4432_v47, %v4402_v2  ;;  %v9034_v21 = vadd.f32 %v8875_v3, %v4256_v52  ;;  %v4365_v15 = vadd.f32 %v9014_v19, %v4364_v13  ;;  %v5978_v58 = vpop.f32.mrb[114].mxu1 }
 0x50b   : > { %v9038_v16 = vadd.f32 %v8885_v35, %v5978_v58  ;;  %v4259_v62 = vpop.f32.mrb[115].mxu1  ;;  %v4406_v35 = vmul.f32 %v9029_v7, %v9029_v7 }
 0x50c   : > { %v4366_v9 = vadd.f32 %v9034_v21, %v4365_v15  ;;  %v4404_v45 = vmul.f32 %v9034_v21, %v9034_v21  ;;  %v4434_v60 = vadd.f32 %v4433_v8, %v4403_v22  ;;  %v9044_v55 = vadd.f32 %v8877_v17, %v4259_v62 }
 0x50d   : > { %v4407_v17 = vmul.f32 %v9038_v16, %v9038_v16 }
 0x50e   : > { %v4435_v0 = vadd.f32 %v4434_v60, %v4404_v45  ;;  %v4367_v3 = vadd.f32 %v9044_v55, %v4366_v9  ;;  %v4405_v53 = vmul.f32 %v9044_v55, %v9044_v55 }
 0x510   : > { %v4368_v40 = vadd.f32 %v9029_v7, %v4367_v3  ;;  %v4436_v37 = vadd.f32 %v4435_v0, %v4405_v53  ;;  %v5981_v44 = vpop.f32.mrb[116].mxu1 }
 0x511   : > { %v9053_v36 = vadd.f32 %v8899_v57, %v5981_v44  ;;  %v4272_v49 = vpop.f32.mrb[117].mxu1 }
 0x512   : > { %v4437_v12 = vadd.f32 %v4436_v37, %v4406_v35  ;;  %v9058_v59 = vadd.f32 %v8891_v51, %v4272_v49  ;;  %v4369_v61 = vadd.f32 %v9038_v16, %v4368_v40  ;;  %v5982_v39 = vpop.f32.mrb[118].mxu1 }
 0x513   : > { %v9062_v26 = vadd.f32 %v8901_v20, %v5982_v39  ;;  %v4275_v1 = vpop.f32.mrb[119].mxu1  ;;  %v4410_v20 = vmul.f32 %v9053_v36, %v9053_v36 }
 0x514   : > { %v4370_v10 = vadd.f32 %v9058_v59, %v4369_v61  ;;  %v4408_v57 = vmul.f32 %v9058_v59, %v9058_v59  ;;  %v4438_v34 = vadd.f32 %v4437_v12, %v4407_v17  ;;  %v9068_v54 = vadd.f32 %v8893_v4, %v4275_v1 }
 0x515   : > { %v4411_v4 = vmul.f32 %v9062_v26, %v9062_v26 }
 0x516   : > { %v4439_v2 = vadd.f32 %v4438_v34, %v4408_v57  ;;  %v4371_v51 = vadd.f32 %v9068_v54, %v4370_v10  ;;  %v4409_v13 = vmul.f32 %v9068_v54, %v9068_v54 }
 0x518   : > { %v4372_v47 = vadd.f32 %v9053_v36, %v4371_v51  ;;  %v4440_v5 = vadd.f32 %v4439_v2, %v4409_v13  ;;  %v5985_v52 = vpop.f32.mrb[120].mxu1 }
 0x519   : > { %v9077_v22 = vadd.f32 %v8915_v28, %v5985_v52  ;;  %v4288_v8 = vpop.f32.mrb[121].mxu1 }
 0x51a   : > { %v4441_v15 = vadd.f32 %v4440_v5, %v4410_v20  ;;  %v9082_v58 = vadd.f32 %v8907_v27, %v4288_v8  ;;  %v4373_v62 = vadd.f32 %v9062_v26, %v4372_v47  ;;  %v5986_v9 = vpop.f32.mrb[122].mxu1 }
 0x51b   : > { %v9086_v45 = vadd.f32 %v8917_v42, %v5986_v9  ;;  %v4291_v60 = vpop.f32.mrb[123].mxu1  ;;  %v4414_v42 = vmul.f32 %v9077_v22, %v9077_v22 }
 0x51c   : > { %v4374_v0 = vadd.f32 %v9082_v58, %v4373_v62  ;;  %v4412_v28 = vmul.f32 %v9082_v58, %v9082_v58  ;;  %v4442_v3 = vadd.f32 %v4441_v15, %v4411_v4  ;;  %v9092_v53 = vadd.f32 %v8909_v30, %v4291_v60 }
 0x51d   : > { %v4415_v30 = vmul.f32 %v9086_v45, %v9086_v45 }
 0x51e   : > { %v4443_v35 = vadd.f32 %v4442_v3, %v4412_v28  ;;  %v4375_v27 = vadd.f32 %v9092_v53, %v4374_v0  ;;  %v4413_v40 = vmul.f32 %v9092_v53, %v9092_v53 }
 0x520   : > { %v4376_v37 = vadd.f32 %v9077_v22, %v4375_v27  ;;  %v4444_v44 = vadd.f32 %v4443_v35, %v4413_v40  ;;  %v5989_v49 = vpop.f32.mrb[124].mxu1 }
 0x521   : > { %v9101_v17 = vadd.f32 %v8931_v29, %v5989_v49  ;;  %v4304_v12 = vpop.f32.mrb[125].mxu1 }
 0x522   : > { %v4445_v61 = vadd.f32 %v4444_v44, %v4414_v42  ;;  %v9106_v39 = vadd.f32 %v8923_v33, %v4304_v12  ;;  %v4377_v1 = vadd.f32 %v9086_v45, %v4376_v37  ;;  %v5990_v10 = vpop.f32.mrb[126].mxu1 }
 0x523   : > { %v9110_v57 = vadd.f32 %v8933_v41, %v5990_v10  ;;  %v4307_v34 = vpop.f32.mrb[127].mxu1  ;;  %v4418_v41 = vmul.f32 %v9101_v17, %v9101_v17 }
 0x524   : > { %v4378_v2 = vadd.f32 %v9106_v39, %v4377_v1  ;;  %v4416_v29 = vmul.f32 %v9106_v39, %v9106_v39  ;;  %v4446_v51 = vadd.f32 %v4445_v61, %v4415_v30  ;;  %v9116_v13 = vadd.f32 %v8925_v25, %v4307_v34 }
 0x525   : > { %v4419_v8 = vmul.f32 %v9110_v57, %v9110_v57 }
 0x526   : > { %v4447_v20 = vadd.f32 %v4446_v51, %v4416_v29  ;;  %v4379_v33 = vadd.f32 %v9116_v13, %v4378_v2  ;;  %v4417_v47 = vmul.f32 %v9116_v13, %v9116_v13 }
 0x528   : > { %v4380_v5 = vadd.f32 %v9101_v17, %v4379_v33  ;;  %v4448_v52 = vadd.f32 %v4447_v20, %v4417_v47 }
 0x52a   : > { %v4381_v4 = vadd.f32 %v9110_v57, %v4380_v5  ;;  %v4449_v15 = vadd.f32 %v4448_v52, %v4418_v41 }
 0x52c   : > { %v4382_v25 = vrot.slane %v4381_v4, 4  ;;  %v4450_v62 = vadd.f32 %v4449_v15, %v4419_v8 }
 0x52e   : > { %v4383_v9 = vadd.f32 %v4382_v25, %v4381_v4  ;;  %v4451_v60 = vrot.slane %v4450_v62, 4  ;;  %v6616_v25 = vld [vmem:[%s7125_s17 + $0xe8] sm:$0xff] }
 0x530   : > { %v4384_v0 = vrot.slane %v4383_v9, 2  ;;  %v4452_v28 = vadd.f32 %v4451_v60, %v4450_v62 }
 0x532   : > { %v4385_v3 = vadd.f32 %v4384_v0, %v4383_v9  ;;  %v4453_v35 = vrot.slane %v4452_v28, 2 }
 0x534   : > { %v4386_v27 = vrot.slane %v4385_v3, 1  ;;  %v4454_v40 = vadd.f32 %v4453_v35, %v4452_v28 }
 0x536   : > { %v4387_v42 = vadd.f32 %v4386_v27, %v4385_v3  ;;  %v4455_v37 = vrot.slane %v4454_v40, 1 }
 0x538   : > { %v4456_v44 = vadd.f32 %v4455_v37, %v4454_v40  ;;  %v9127_v49 = vmul.f32 0.00390625, %v4387_v42 }
 0x53a   : > { %v4458_v12 = vmul.f32 0.00390625, %v4456_v44  ;;  %v4459_v30 = vmul.f32 %v9127_v49, %v9127_v49  ;;  %v4491_v61 = vsub.f32 %v9116_v13, %v9127_v49  ;;  %v4471_v10 = vsub.f32 %v8996_v23, %v9127_v49 }
 0x53b   : > { %v4473_v34 = vsub.f32 %v8990_v24, %v9127_v49  ;;  %v4474_v29 = vsub.f32 %v9010_v63, %v9127_v49  ;;  %v4475_v51 = vsub.f32 %v9020_v56, %v9127_v49  ;;  %v4476_v20 = vsub.f32 %v9005_v46, %v9127_v49 }
 0x53c   : > { %v4460_v1 = vsub.f32 %v4458_v12, %v4459_v30  ;;  %v4477_v13 = vsub.f32 %v9014_v19, %v9127_v49  ;;  %v4478_v33 = vsub.f32 %v9034_v21, %v9127_v49  ;;  %v4479_v23 = vsub.f32 %v9044_v55, %v9127_v49 }
 0x53d   : > { %v4480_v24 = vsub.f32 %v9029_v7, %v9127_v49  ;;  %v4481_v63 = vsub.f32 %v9038_v16, %v9127_v49  ;;  %v4482_v56 = vsub.f32 %v9058_v59, %v9127_v49  ;;  %v4483_v46 = vsub.f32 %v9068_v54, %v9127_v49 }
 0x53e   : > { %v4461_v2 = vmax.f32 %v4460_v1, 0.0  ;;  %v4484_v19 = vsub.f32 %v9053_v36, %v9127_v49  ;;  %v4485_v21 = vsub.f32 %v9062_v26, %v9127_v49  ;;  %v4486_v55 = vsub.f32 %v9082_v58, %v9127_v49 }
 0x53f   : > { %v4487_v7 = vsub.f32 %v9092_v53, %v9127_v49  ;;  %v4488_v16 = vsub.f32 %v9077_v22, %v9127_v49  ;;  %v4489_v59 = vsub.f32 %v9086_v45, %v9127_v49  ;;  %v4490_v54 = vsub.f32 %v9106_v39, %v9127_v49 }
 0x540   : > { %v4494_v47 = vadd.f32 1e-05, %v4461_v2  ;;  %v4492_v36 = vsub.f32 %v9101_v17, %v9127_v49  ;;  %v4493_v26 = vsub.f32 %v9110_v57, %v9127_v49  ;;  %v4462_v58 = vsub.f32 %v8939_v6, %v9127_v49 }
 0x541   : > { %v4463_v53 = vsub.f32 %v8945_v43, %v9127_v49  ;;  %v4464_v22 = vsub.f32 %v8936_v38, %v9127_v49  ;;  %v4465_v45 = vsub.f32 %v8942_v48, %v9127_v49  ;;  %v4466_v39 = vsub.f32 %v8962_v18, %v9127_v49 }
 0x542   : > { %6614 = vrsqrt.f32 %v4494_v47  ;;  %v4467_v17 = vsub.f32 %v8972_v11, %v9127_v49  ;;  %v4468_v6 = vsub.f32 %v8957_v14, %v9127_v49  ;;  %v4469_v43 = vsub.f32 %v8966_v50, %v9127_v49  ;;  %v6620_v47 = vld [vmem:[%s7125_s17 + $0x18] sm:$0xff] }
 0x543   : > { %v4470_v38 = vsub.f32 %v8986_v32, %v9127_v49  ;;  %v4472_v48 = vsub.f32 %v8981_v31, %v9127_v49 }
 0x54c   : > { %v6615_v57 = vpop.eup %6614 }
 0x54d   : > { %v4525_v41 = vmul.f32 %v6615_v57, %v4491_v61  ;;  %v4496_v5 = vmul.f32 %v6615_v57, %v4462_v58  ;;  %v4497_v18 = vmul.f32 %v6615_v57, %v4463_v53  ;;  %v4498_v52 = vmul.f32 %v6615_v57, %v4464_v22  ;;  %v6627_v53 = vld [vmem:[%s7125_s17 + $0x50] sm:$0xff] }
 0x54e   : > { %v4499_v8 = vmul.f32 %v6615_v57, %v4465_v45  ;;  %v4500_v11 = vmul.f32 %v6615_v57, %v4466_v39  ;;  %v4501_v4 = vmul.f32 %v6615_v57, %v4467_v17  ;;  %v4502_v15 = vmul.f32 %v6615_v57, %v4468_v6  ;;  %v6628_v45 = vld [vmem:[%s7125_s17 + $0x58] sm:$0xff]  ;;  %v6629_v17 = vld [vmem:[%s7125_s17 + $0x60] sm:$0xff]  ;;  %v6630_v6 = vld [vmem:[%s7125_s17 + $0x68] sm:$0xff] }
 0x54f   : > { %v4557_v14 = vadd.f32 %v6616_v25, %v4525_v41  ;;  %v4503_v62 = vmul.f32 %v6615_v57, %v4469_v43  ;;  %v4504_v9 = vmul.f32 %v6615_v57, %v4470_v38  ;;  %v4505_v50 = vmul.f32 %v6615_v57, %v4471_v10  ;;  %v6631_v38 = vld [vmem:[%s7125_s17 + $0x70] sm:$0xff]  ;;  %v6632_v41 = vld [vmem:[%s7125_s17 + $0x78] sm:$0xff] }
 0x550   : > { %v4506_v60 = vmul.f32 %v6615_v57, %v4472_v48  ;;  %v4507_v0 = vmul.f32 %v6615_v57, %v4473_v34  ;;  %v4508_v32 = vmul.f32 %v6615_v57, %v4474_v29  ;;  %v4509_v28 = vmul.f32 %v6615_v57, %v4475_v51  ;;  %v6617_v51 = vld [vmem:[%s7125_s17] sm:$0xff]  ;;  %v6636_v25 = vld [vmem:[%s7125_s17 + $0x98] sm:$0xff] }
 0x551   : > { %4589 = vst [vmem:[%s9198_s24 + $0xe8] sm:$0xff] %v4557_v14  ;;  %v4510_v31 = vmul.f32 %v6615_v57, %v4476_v20  ;;  %v4511_v3 = vmul.f32 %v6615_v57, %v4477_v13  ;;  %v4512_v35 = vmul.f32 %v6615_v57, %v4478_v33  ;;  %v4513_v27 = vmul.f32 %v6615_v57, %v4479_v23  ;;  %v6618_v13 = vld [vmem:[%s7125_s17 + $0x8] sm:$0xff]  ;;  %v6619_v23 = vld [vmem:[%s7125_s17 + $0x10] sm:$0xff] }
 0x552   : > { %v4514_v40 = vmul.f32 %v6615_v57, %v4480_v24  ;;  %v9201_v42 = vmul.f32 %v6615_v57, %v4481_v63  ;;  %v9203_v37 = vmul.f32 %v6615_v57, %v4482_v56  ;;  %v9205_v44 = vmul.f32 %v6615_v57, %v4483_v46  ;;  %v6621_v56 = vld [vmem:[%s7125_s17 + $0x20] sm:$0xff] }
 0x553   : > { %v9207_v49 = vmul.f32 %v6615_v57, %v4484_v19  ;;  %v9209_v12 = vmul.f32 %v6615_v57, %v4485_v21  ;;  %v9211_v30 = vmul.f32 %v6615_v57, %v4486_v55  ;;  %v9213_v61 = vmul.f32 %v6615_v57, %v4487_v7  ;;  %v6622_v19 = vld [vmem:[%s7125_s17 + $0x28] sm:$0xff]  ;;  %v6623_v55 = vld [vmem:[%s7125_s17 + $0x30] sm:$0xff] }
 0x554   : > { %v9215_v1 = vmul.f32 %v6615_v57, %v4488_v16  ;;  %v9217_v10 = vmul.f32 %v6615_v57, %v4489_v59  ;;  %v9219_v34 = vmul.f32 %v6615_v57, %v4490_v54  ;;  %v9221_v2 = vmul.f32 %v6615_v57, %v4492_v36  ;;  %v6624_v16 = vld [vmem:[%s7125_s17 + $0x38] sm:$0xff]  ;;  %v6625_v54 = vld [vmem:[%s7125_s17 + $0x40] sm:$0xff] }
 0x555   : > { %v9223_v29 = vmul.f32 %v6615_v57, %v4493_v26  ;;  %v4528_v20 = vadd.f32 %v6617_v51, %v4496_v5  ;;  %v4529_v33 = vadd.f32 %v6618_v13, %v4497_v18  ;;  %v4530_v24 = vadd.f32 %v6619_v23, %v4498_v52  ;;  %v6626_v26 = vld [vmem:[%s7125_s17 + $0x48] sm:$0xff]  ;;  %v6633_v18 = vld [vmem:[%s7125_s17 + $0x80] sm:$0xff]  ;;  %v6647_v51 = vld [vmem:[%s7125_s17 + $0xf8] sm:$0xff] }
 0x556   : > { %v4531_v63 = vadd.f32 %v6620_v47, %v4499_v8  ;;  %v4532_v46 = vadd.f32 %v6621_v56, %v4500_v11  ;;  %v4533_v21 = vadd.f32 %v6622_v19, %v4501_v4  ;;  %v4534_v7 = vadd.f32 %v6623_v55, %v4502_v15  ;;  %v6634_v8 = vld [vmem:[%s7125_s17 + $0x88] sm:$0xff]  ;;  %v6635_v4 = vld [vmem:[%s7125_s17 + $0x90] sm:$0xff] }
 0x557   : > { %v4535_v59 = vadd.f32 %v6624_v16, %v4503_v62  ;;  %v4536_v36 = vadd.f32 %v6625_v54, %v4504_v9  ;;  %v4537_v58 = vadd.f32 %v6626_v26, %v4505_v50  ;;  %v4538_v22 = vadd.f32 %v6627_v53, %v4506_v60  ;;  %4560 = vst [vmem:[%s9198_s24] sm:$0xff] %v4528_v20  ;;  %v6637_v62 = vld [vmem:[%s7125_s17 + $0xa0] sm:$0xff]  ;;  %v6638_v50 = vld [vmem:[%s7125_s17 + $0xa8] sm:$0xff] }
 0x558   : > { %4561 = vst [vmem:[%s9198_s24 + $0x8] sm:$0xff] %v4529_v33  ;;  %4562 = vst [vmem:[%s9198_s24 + $0x10] sm:$0xff] %v4530_v24  ;;  %v4539_v39 = vadd.f32 %v6628_v45, %v4507_v0  ;;  %v4540_v57 = vadd.f32 %v6629_v17, %v4508_v32  ;;  %v4541_v43 = vadd.f32 %v6630_v6, %v4509_v28  ;;  %v6639_v0 = vld [vmem:[%s7125_s17 + $0xb0] sm:$0xff]  ;;  %v6640_v28 = vld [vmem:[%s7125_s17 + $0xb8] sm:$0xff] }
 0x559   : > { %v4542_v48 = vadd.f32 %v6631_v38, %v4510_v31  ;;  %4563 = vst [vmem:[%s9198_s24 + $0x18] sm:$0xff] %v4531_v63  ;;  %4564 = vst [vmem:[%s9198_s24 + $0x20] sm:$0xff] %v4532_v46  ;;  %v4543_v5 = vadd.f32 %v6632_v41, %v4511_v3  ;;  %v4544_v52 = vadd.f32 %v6633_v18, %v4512_v35  ;;  %v6641_v3 = vld [vmem:[%s7125_s17 + $0xc0] sm:$0xff] }
 0x55a   : > { %4565 = vst [vmem:[%s9198_s24 + $0x28] sm:$0xff] %v4533_v21  ;;  %4566 = vst [vmem:[%s9198_s24 + $0x30] sm:$0xff] %v4534_v7  ;;  %v4545_v11 = vadd.f32 %v6634_v8, %v4513_v27  ;;  %v4546_v15 = vadd.f32 %v6635_v4, %v4514_v40  ;;  %v4547_v14 = vadd.f32 %v6636_v25, %v9201_v42  ;;  %v6642_v27 = vld [vmem:[%s7125_s17 + $0xc8] sm:$0xff]  ;;  %v6643_v42 = vld [vmem:[%s7125_s17 + $0xd0] sm:$0xff] }
 0x55b   : > { %4567 = vst [vmem:[%s9198_s24 + $0x38] sm:$0xff] %v4535_v59  ;;  %4568 = vst [vmem:[%s9198_s24 + $0x40] sm:$0xff] %v4536_v36  ;;  %v4548_v9 = vadd.f32 %v6637_v62, %v9203_v37  ;;  %v4549_v60 = vadd.f32 %v6638_v50, %v9205_v44  ;;  %v4550_v32 = vadd.f32 %v6639_v0, %v9207_v49  ;;  %v6644_v44 = vld [vmem:[%s7125_s17 + $0xd8] sm:$0xff] }
 0x55c   : > { %4569 = vst [vmem:[%s9198_s24 + $0x48] sm:$0xff] %v4537_v58  ;;  %4570 = vst [vmem:[%s9198_s24 + $0x50] sm:$0xff] %v4538_v22  ;;  %v4551_v31 = vadd.f32 %v6640_v28, %v9209_v12  ;;  %v4552_v35 = vadd.f32 %v6641_v3, %v9211_v30  ;;  %v4553_v40 = vadd.f32 %v6642_v27, %v9213_v61  ;;  %v6645_v12 = vld [vmem:[%s7125_s17 + $0xe0] sm:$0xff]  ;;  %v6646_v61 = vld [vmem:[%s7125_s17 + $0xf0] sm:$0xff] }
 0x55d   : > { %4571 = vst [vmem:[%s9198_s24 + $0x58] sm:$0xff] %v4539_v39  ;;  %4572 = vst [vmem:[%s9198_s24 + $0x60] sm:$0xff] %v4540_v57  ;;  %v4554_v37 = vadd.f32 %v6643_v42, %v9215_v1  ;;  %v4555_v49 = vadd.f32 %v6644_v44, %v9217_v10  ;;  %v4556_v30 = vadd.f32 %v6645_v12, %v9219_v34 }
 0x55e   : > { %4573 = vst [vmem:[%s9198_s24 + $0x68] sm:$0xff] %v4541_v43  ;;  %4574 = vst [vmem:[%s9198_s24 + $0x70] sm:$0xff] %v4542_v48  ;;  %v4558_v1 = vadd.f32 %v6646_v61, %v9221_v2  ;;  %v4559_v20 = vadd.f32 %v6647_v51, %v9223_v29 }
 0x55f   : > { %4575 = vst [vmem:[%s9198_s24 + $0x78] sm:$0xff] %v4543_v5  ;;  %4576 = vst [vmem:[%s9198_s24 + $0x80] sm:$0xff] %v4544_v52 }
 0x560   : > { %4577 = vst [vmem:[%s9198_s24 + $0x88] sm:$0xff] %v4545_v11  ;;  %4578 = vst [vmem:[%s9198_s24 + $0x90] sm:$0xff] %v4546_v15 }
 0x561   : > { %4579 = vst [vmem:[%s9198_s24 + $0x98] sm:$0xff] %v4547_v14  ;;  %4580 = vst [vmem:[%s9198_s24 + $0xa0] sm:$0xff] %v4548_v9 }
 0x562   : > { %4581 = vst [vmem:[%s9198_s24 + $0xa8] sm:$0xff] %v4549_v60  ;;  %4582 = vst [vmem:[%s9198_s24 + $0xb0] sm:$0xff] %v4550_v32 }
 0x563   : > { %4583 = vst [vmem:[%s9198_s24 + $0xb8] sm:$0xff] %v4551_v31  ;;  %4584 = vst [vmem:[%s9198_s24 + $0xc0] sm:$0xff] %v4552_v35 }
 0x564   : > { %4585 = vst [vmem:[%s9198_s24 + $0xc8] sm:$0xff] %v4553_v40  ;;  %4586 = vst [vmem:[%s9198_s24 + $0xd0] sm:$0xff] %v4554_v37 }
 0x565   : > { %4587 = vst [vmem:[%s9198_s24 + $0xd8] sm:$0xff] %v4555_v49  ;;  %4588 = vst [vmem:[%s9198_s24 + $0xe0] sm:$0xff] %v4556_v30 }
 0x566   : > { %4590 = vst [vmem:[%s9198_s24 + $0xf0] sm:$0xff] %v4558_v1  ;;  %4591 = vst [vmem:[%s9198_s24 + $0xf8] sm:$0xff] %v4559_v20 }
 0x567   : > { %6803 = shalt.err (!%p6800_p13)
}
 0x568   : > { %s6804_s16 = scalar_lea.hbm %s9286_s15, 4096  ;;  %s6808_s7 = scalar_lea.hbm %s9359_s5, 8192 }
 0x569   : > { %p6805_p9 = scmp.ne.s32.totalorder %s9286_s15, %s6804_s16  ;;  %p6809_p6 = scmp.lt.u32.totalorder %s9286_s15, %s9359_s5 }
 0x56a   : > { %p6810_p4 = scmp.lt.u32.totalorder %s6808_s7, %s6804_s16  ;;  %p6812_p3 = scmp.lt.u32.totalorder %s6804_s16, %s9286_s15 }
 0x56b   : > { %p6806_p0 = pnand %p6805_p9, %p7067_p10 }
 0x56c   : > { %p6811_p8 = por %p6810_p4, %p6809_p6 }
 0x56d   : > { %p6807_p11 = pneg %p6806_p0 }
 0x56e   : > { %p6813_p5 = por %p6812_p3, %p6811_p8 }
 0x570   : > { %p6814_p7 = pnand %p6813_p5, %p6807_p11 }
 0x572   : > { %6817 = shalt.err (!%p6814_p7)
}
 0x573   : > { %s6876_s26 = smov 128   ;;  %s6877_s13 = smov 8  }
 0x574   : > { %6393 = dma.vmem_to_hbm [thread:$0]  (%p7067_p10), %s9290_s11, 4096, %s9286_s15, %s4593_s22, %s6876_s26, %s6876_s26, %s6877_s13  }
 0x575 PF: > { %s4621_s8 = sand.u32 1, %s6852_s18   ;;  %p9443_p12 = scmp.ne.s32.totalorder %s9378_s25, 0 }
 0x576   : > { %p9444_p2 = scmp.ge.s32.totalorder %s6864_s21, 2  ;;  %s4622_s30 = scalar_lea.sflag [#allocation4], %s4621_s8 }
 0x578   : > { %p6413_p1 = pnand %p9444_p2, %p9443_p12 }
 0x57a   : > { %6847 = dma.done.wait (!%p6413_p1), %s4622_s30, 4096  }
 0x57b   : > { %6849 = vsyncadd (!%p6413_p1), %s4622_s30, 4294963200  ;;  %p20_p13 = scmp.ge.s32.totalorder %s7057_s14, 4   ;;  %s9445_s18 = smov %s6856_s19 }
 0x57c   : > { %s9446_s19 = smov %s6860_s20  ;;  %s9447_s20 = smov %s7073_s28 }
 0x57d   : > { %s9448_s21 = smov %s7057_s14  ;;  %22 = sbr.rel (!%p20_p13) target bundleno = 7 (0x7), region = 105 }
 0x584   :  { %4627 = vsyncpa [#allocation3], 1 }
 0x585   :  { %4629 = vsyncpa [#allocation3 + $0x1], 1 }
 0x586   :  { %4630 = vsyncpa [#allocation6], 1 }
 0x587   :  { %4631 = vsyncpa [#allocation9], 1 }
 0x588   :  { %4632 = vsyncpa [#allocation4], 1 }
 0x589   :  { %4634 = vsyncpa [#allocation4 + $0x1], 1 }

</bundles_post_ra>
